<compile_context>
chip_gen: v6e
topology: v6e:2x2x1
jax: 0.10.0
libtpu: 0.0.40
codegen_flags: <defaults>
</compile_context>

<pallas_src>
import functools

import jax
import jax.numpy as jnp
import numpy as np
from jax.experimental import pallas as pl
from jax.experimental.pallas import tpu as pltpu


_VMEM_BUDGET = 48 * 1024 * 1024   # conservative: fits under v7x's 64 MiB physical
_MAX_TC = 32                      # cap on time steps per grid chunk
_STEP_UNROLL = 8                  # static unroll depth inside the step loop


# --------------------------------------------------------------------------- #
# Helpers
# --------------------------------------------------------------------------- #
def _round_up(x, m):
    return ((x + m - 1) // m) * m


def _cdiv(a, b):
    return -(-a // b)


def _vmem_whole():
    # Whole array resident in VMEM (loop-invariant weights; no double buffering).
    return pl.BlockSpec(memory_space=pltpu.MemorySpace.VMEM)


def _plan_chunk(T, Bp, Dp, Hp, Cp, num_layers):
    """VMEM-budget-driven time chunk + explicit vmem_limit_bytes."""
    w_bytes = 0
    d = Dp
    for _ in range(num_layers):
        w_bytes += d * 3 * Hp * 2          # W_ih (bf16)
        w_bytes += Hp * 3 * Hp * 2         # W_hh (bf16)
        w_bytes += 3 * Hp * 4 + Hp * 4     # fused bias + n-gate bias (f32)
        d = Hp
    w_bytes += Hp * Cp * 2 + Cp * 4        # W_out (bf16) + b_out (f32)
    fixed = w_bytes + num_layers * Bp * Hp * 4 + 2 * Bp * Cp * 4
    per_t = Bp * (2 * Dp * 2               # double-buffered bf16 x chunk
                  + 3 * Hp * 4             # xg scratch (f32)
                  + 2 * Hp * 4)            # act ping-pong (f32)
    avail = max(_VMEM_BUDGET - fixed, per_t)
    tc_max = int(max(1, min(_MAX_TC, avail // per_t)))
    nc = _cdiv(T, tc_max)                  # number of time chunks
    tc = _cdiv(T, nc)                      # rebalanced: padding < nc steps
    Tp = nc * tc
    est = fixed + tc * per_t
    vmem_limit = int(min(max(2 * est, 32 << 20), 60 << 20))
    return tc, nc, Tp, vmem_limit


# --------------------------------------------------------------------------- #
# In-kernel sequential step loop for one layer over one time chunk.
# --------------------------------------------------------------------------- #
def _layer_steps(h, xg_ref, w_hh, b_hn, out_buf, *, c, tc, bp, hp,
                 t_valid, t_padded):
    mask_tail = t_padded != t_valid        # static: any padded tail steps?

    def one_step(t, hcur):
        row = t * bp
        if not isinstance(row, (int, np.integer)):
            row = pl.multiple_of(row, 8)
        # Single fused-gate recurrent matmul per step (bf16 operands, f32 acc).
        gh = jnp.dot(hcur.astype(jnp.bfloat16), w_hh,
                     preferred_element_type=jnp.float32)
        xg_t = xg_ref[pl.ds(row, bp), :]                       # (bp, 3hp) f32
        r = jax.nn.sigmoid(xg_t[:, :hp] + gh[:, :hp])
        z = jax.nn.sigmoid(xg_t[:, hp:2 * hp] + gh[:, hp:2 * hp])
        n = jnp.tanh(xg_t[:, 2 * hp:] + r * (gh[:, 2 * hp:] + b_hn))
        h_new = n + z * (hcur - n)                             # == (1-z)*n + z*h
        if mask_tail:
            valid = (c * tc + t) < t_valid
            h_new = jnp.where(valid, h_new, hcur)
        if out_buf is not None:
            out_buf[pl.ds(row, bp), :] = h_new
        return h_new

    if tc <= _STEP_UNROLL:                 # small chunk: full static unroll
        for t in range(tc):
            h = one_step(t, h)
    else:                                  # bounded unroll: keeps vregs sane
        n_blocks = tc // _STEP_UNROLL

        def block(i, hcur):
            base = i * _STEP_UNROLL
            for u in range(_STEP_UNROLL):
                hcur = one_step(base + u, hcur)
            return hcur

        h = jax.lax.fori_loop(0, n_blocks, block, h)
        for t in range(n_blocks * _STEP_UNROLL, tc):
            h = one_step(t, h)
    return h


# --------------------------------------------------------------------------- #
# Fused multi-layer GRU + output-head kernel.
# Grid = (num_time_chunks,), sequential ("arbitrary"); per-layer hidden states
# live in VMEM scratch and are carried across grid steps.
# --------------------------------------------------------------------------- #
def gru_fused_kernel(x_ref, *refs, num_layers, tc, bp, hp, t_valid, t_padded):
    # Unpack: per-layer weights, output head, logits output, scratch buffers.
    idx = 0
    layer_refs = []
    for _ in range(num_layers):
        layer_refs.append(refs[idx:idx + 4])
        idx += 4
    wout_ref, bout_ref = refs[idx], refs[idx + 1]
    idx += 2
    logits_ref = refs[idx]
    idx += 1
    h_refs = refs[idx:idx + num_layers]
    idx += num_layers
    xg_ref = refs[idx]
    act_a, act_b = refs[idx + 1], refs[idx + 2]

    c = pl.program_id(0)

    @pl.when(c == 0)
    def _init():
        for l in range(num_layers):
            h_refs[l][...] = jnp.zeros_like(h_refs[l])

    in_buf = None
    out_buf = act_a
    h = None
    for l in range(num_layers):
        wih_ref, whh_ref, bfused_ref, bhn_ref = layer_refs[l]
        is_last = l == num_layers - 1
        if l == 0:
            src = x_ref[...]                          # streamed bf16 chunk
        else:
            src = in_buf[...].astype(jnp.bfloat16)    # prev layer's chunk (VMEM)
        # Hoisted fused-gate input projection: ONE big MXU matmul per chunk.
        xg_ref[...] = (jnp.dot(src, wih_ref[...],
                               preferred_element_type=jnp.float32)
                       + bfused_ref[...])
        w_hh = whh_ref[...]                           # (hp, 3hp) bf16, invariant
        b_hn = jnp.broadcast_to(bhn_ref[...], (bp, hp))
        h = _layer_steps(h_refs[l][...], xg_ref, w_hh, b_hn,
                         None if is_last else out_buf,
                         c=c, tc=tc, bp=bp, hp=hp,
                         t_valid=t_valid, t_padded=t_padded)
        h_refs[l][...] = h
        if not is_last:                               # ping-pong the chunk slab
            in_buf, out_buf = out_buf, (act_b if out_buf is act_a else act_a)

    @pl.when(c == pl.num_programs(0) - 1)
    def _head():                                      # fused final Linear
        logits_ref[...] = (jnp.dot(h.astype(jnp.bfloat16), wout_ref[...],
                                   preferred_element_type=jnp.float32)
                           + bout_ref[...]).astype(logits_ref.dtype)


# --------------------------------------------------------------------------- #
# One-time weight preparation (hoisted out of the forward path).
# PyTorch gate order (r, z, n); padded lanes stay exactly zero so padded hidden
# lanes remain zero through the recurrence.
# --------------------------------------------------------------------------- #
def prepare_params(params, input_size, hidden_size, num_classes):
    H, C = hidden_size, num_classes
    Hp = _round_up(H, 128)
    Cp = _round_up(C, 128)
    layers = []
    d_in = input_size
    for (w_ih, w_hh, b_ih, b_hh) in params["gru"]:
        d_in_p = _round_up(d_in, 128)
        w_ih = np.asarray(w_ih, np.float32)
        w_hh = np.asarray(w_hh, np.float32)
        b_ih = np.asarray(b_ih, np.float32)
        b_hh = np.asarray(b_hh, np.float32)
        wih_t = np.zeros((d_in_p, 3 * Hp), np.float32)
        whh_t = np.zeros((Hp, 3 * Hp), np.float32)
        b_fused = np.zeros((1, 3 * Hp), np.float32)
        b_hn = np.zeros((1, Hp), np.float32)
        for g in range(3):
            wih_t[:d_in, g * Hp:g * Hp + H] = w_ih[g * H:(g + 1) * H, :].T
            whh_t[:H, g * Hp:g * Hp + H] = w_hh[g * H:(g + 1) * H, :].T
            b_fused[0, g * Hp:g * Hp + H] = b_ih[g * H:(g + 1) * H]
        # Fold r/z segments of b_hh into the fused input bias (added to the same
        # pre-activation); keep only the n-gate segment for the per-step path.
        b_fused[0, 0:H] += b_hh[0:H]
        b_fused[0, Hp:Hp + H] += b_hh[H:2 * H]
        b_hn[0, :H] = b_hh[2 * H:3 * H]
        layers.append((jnp.asarray(wih_t, jnp.bfloat16),
                       jnp.asarray(whh_t, jnp.bfloat16),
                       jnp.asarray(b_fused, jnp.float32),
                       jnp.asarray(b_hn, jnp.float32)))
        d_in = H
    w_out = np.asarray(params["w_out"], np.float32)
    b_out = np.asarray(params["b_out"], np.float32)
    wout_t = np.zeros((Hp, Cp), np.float32)
    wout_t[:H, :C] = w_out.T
    bout = np.zeros((1, Cp), np.float32)
    bout[0, :C] = b_out
    return {"layers": layers,
            "w_out": jnp.asarray(wout_t, jnp.bfloat16),
            "b_out": jnp.asarray(bout, jnp.float32)}


# --------------------------------------------------------------------------- #
# Forward: batch-first (B, T, D) -> logits (B, num_classes)
# --------------------------------------------------------------------------- #
def gru_forward(x, prep, *, num_classes):
    B, T, D = x.shape
    layers = prep["layers"]
    num_layers = len(layers)
    Dp = layers[0][0].shape[0]
    Hp = layers[0][1].shape[0]
    Cp = prep["w_out"].shape[1]
    Bp = _round_up(B, 8)

    tc, nc, Tp, vmem_limit = _plan_chunk(T, Bp, Dp, Hp, Cp, num_layers)
    rows = tc * Bp

    # time-major, zero-padded, bf16, flattened to (Tp*Bp, Dp) rows
    x_t = jnp.transpose(x, (1, 0, 2)).astype(jnp.bfloat16)
    x_p = jnp.zeros((Tp, Bp, Dp), jnp.bfloat16).at[:T, :B, :D].set(x_t)
    x2d = x_p.reshape(Tp * Bp, Dp)

    flat_w = []
    for lw in layers:
        flat_w.extend(lw)
    flat_w.extend([prep["w_out"], prep["b_out"]])

    kernel = functools.partial(gru_fused_kernel, num_layers=num_layers,
                               tc=tc, bp=Bp, hp=Hp, t_valid=T, t_padded=Tp)

    logits_p = pl.pallas_call(
        kernel,
        out_shape=jax.ShapeDtypeStruct((Bp, Cp), jnp.float32),
        grid=(nc,),
        in_specs=[pl.BlockSpec((rows, Dp), lambda c: (c, 0))]     # streamed x chunk
                 + [_vmem_whole() for _ in flat_w],               # resident weights
        out_specs=pl.BlockSpec((Bp, Cp), lambda c: (0, 0)),       # written last chunk
        scratch_shapes=(
            [pltpu.VMEM((Bp, Hp), jnp.float32) for _ in range(num_layers)]  # h_l
            + [pltpu.VMEM((rows, 3 * Hp), jnp.float32),   # fused-gate projection
               pltpu.VMEM((rows, Hp), jnp.float32),       # act ping
               pltpu.VMEM((rows, Hp), jnp.float32)]),     # act pong
        compiler_params=pltpu.CompilerParams(
            dimension_semantics=("arbitrary",),           # time recurrence
            vmem_limit_bytes=vmem_limit),
    )(x2d, *flat_w)

    return logits_p[:B, :num_classes]


# --------------------------------------------------------------------------- #
# Parameter init (PyTorch-like shapes/init) and pure-JAX reference.
# --------------------------------------------------------------------------- #
def init_params(key, input_size, hidden_size, num_layers, num_classes):
    layers = []
    bound = 1.0 / float(np.sqrt(hidden_size))
    for l in range(num_layers):
        d = input_size if l == 0 else hidden_size
        key, k1, k2, k3, k4 = jax.random.split(key, 5)
        w_ih = jax.random.uniform(k1, (3 * hidden_size, d), jnp.float32, -bound, bound)
        w_hh = jax.random.uniform(k2, (3 * hidden_size, hidden_size), jnp.float32, -bound, bound)
        b_ih = jax.random.uniform(k3, (3 * hidden_size,), jnp.float32, -bound, bound)
        b_hh = jax.random.uniform(k4, (3 * hidden_size,), jnp.float32, -bound, bound)
        layers.append((w_ih, w_hh, b_ih, b_hh))
    key, k1, k2 = jax.random.split(key, 3)
    w_out = jax.random.uniform(k1, (num_classes, hidden_size), jnp.float32, -bound, bound)
    b_out = jax.random.uniform(k2, (num_classes,), jnp.float32, -bound, bound)
    return {"gru": layers, "w_out": w_out, "b_out": b_out}


def gru_ref(x, params):
    B = x.shape[0]
    cur = x
    for (w_ih, w_hh, b_ih, b_hh) in params["gru"]:
        H = w_hh.shape[1]

        def step(h, xt):
            gi = xt @ w_ih.T + b_ih
            gh = h @ w_hh.T + b_hh
            i_r, i_z, i_n = jnp.split(gi, 3, axis=-1)
            h_r, h_z, h_n = jnp.split(gh, 3, axis=-1)
            r = jax.nn.sigmoid(i_r + h_r)
            z = jax.nn.sigmoid(i_z + h_z)
            n = jnp.tanh(i_n + r * h_n)
            h_new = (1.0 - z) * n + z * h
            return h_new, h_new

        h0 = jnp.zeros((B, H), jnp.float32)
        _, outs = jax.lax.scan(step, h0, jnp.transpose(cur, (1, 0, 2)))
        cur = jnp.transpose(outs, (1, 0, 2))
    return cur[:, -1, :] @ params["w_out"].T + params["b_out"]


if __name__ == "__main__":
    input_size, hidden_size, num_layers, num_classes = 16, 32, 2, 2

    key = jax.random.PRNGKey(0)
    key, kp = jax.random.split(key)
    params = init_params(kp, input_size, hidden_size, num_layers, num_classes)

    # One-time weight prep (transpose, gate fusion, padding, bf16), hoisted
    # out of the forward path and reused across calls.
    prep = prepare_params(params, input_size, hidden_size, num_classes)
    fwd = jax.jit(functools.partial(gru_forward, num_classes=num_classes))

    # (2, 8): single chunk, full static unroll.  (3, 39): multi-chunk grid with
    # carried hidden state, padded batch, masked tail steps, bounded-unroll loop.
    for (B, T) in [(2, 8), (3, 39)]:
        key, kx = jax.random.split(key)
        x = jax.random.normal(kx, (B, T, input_size), jnp.float32)
        out = fwd(x, prep)
        jax.block_until_ready(out)
        ref = gru_ref(x, params)
        assert out.shape == (B, num_classes)
        # bf16 MXU operands (f32 accumulation) -> loosened tolerance vs f32 ref.
        np.testing.assert_allclose(np.asarray(out), np.asarray(ref),
                                   rtol=5e-2, atol=5e-2)

    print("KERNEL_OK")
</pallas_src>

<mosaic_0001>
module attributes {stable_mosaic.version = 11 : i64} {
  func.func @gru_fused_kernel(%arg0: i32, %arg1: memref<64x128xbf16, #tpu.memory_space<vmem>>, %arg2: memref<128x384xbf16, #tpu.memory_space<vmem>>, %arg3: memref<128x384xbf16, #tpu.memory_space<vmem>>, %arg4: memref<1x384xf32, #tpu.memory_space<vmem>>, %arg5: memref<1x128xf32, #tpu.memory_space<vmem>>, %arg6: memref<128x384xbf16, #tpu.memory_space<vmem>>, %arg7: memref<128x384xbf16, #tpu.memory_space<vmem>>, %arg8: memref<1x384xf32, #tpu.memory_space<vmem>>, %arg9: memref<1x128xf32, #tpu.memory_space<vmem>>, %arg10: memref<128x128xbf16, #tpu.memory_space<vmem>>, %arg11: memref<1x128xf32, #tpu.memory_space<vmem>>, %arg12: memref<8x128xf32, #tpu.memory_space<vmem>>, %arg13: memref<8x128xf32, #tpu.memory_space<vmem>>, %arg14: memref<8x128xf32, #tpu.memory_space<vmem>>, %arg15: memref<64x384xf32, #tpu.memory_space<vmem>>, %arg16: memref<64x128xf32, #tpu.memory_space<vmem>>, %arg17: memref<64x128xf32, #tpu.memory_space<vmem>>) attributes {dimension_semantics = [#tpu.dimension_semantics<arbitrary>], iteration_bounds = array<i64: 1>, scalar_prefetch = 0 : i64, scratch_operands = 5 : i64, tpu.core_type = #tpu.core_type<tc>, window_params = [{transform_indices = @transform_0, window_bounds = array<i64: 64, 128>}, {pipeline_mode = #tpu.pipeline_mode<synchronous>, transform_indices = @transform_1, window_bounds = array<i64: 128, 384>}, {pipeline_mode = #tpu.pipeline_mode<synchronous>, transform_indices = @transform_2, window_bounds = array<i64: 128, 384>}, {pipeline_mode = #tpu.pipeline_mode<synchronous>, transform_indices = @transform_3, window_bounds = array<i64: 1, 384>}, {pipeline_mode = #tpu.pipeline_mode<synchronous>, transform_indices = @transform_4, window_bounds = array<i64: 1, 128>}, {pipeline_mode = #tpu.pipeline_mode<synchronous>, transform_indices = @transform_5, window_bounds = array<i64: 128, 384>}, {pipeline_mode = #tpu.pipeline_mode<synchronous>, transform_indices = @transform_6, window_bounds = array<i64: 128, 384>}, {pipeline_mode = #tpu.pipeline_mode<synchronous>, transform_indices = @transform_7, window_bounds = array<i64: 1, 384>}, {pipeline_mode = #tpu.pipeline_mode<synchronous>, transform_indices = @transform_8, window_bounds = array<i64: 1, 128>}, {pipeline_mode = #tpu.pipeline_mode<synchronous>, transform_indices = @transform_9, window_bounds = array<i64: 128, 128>}, {pipeline_mode = #tpu.pipeline_mode<synchronous>, transform_indices = @transform_10, window_bounds = array<i64: 1, 128>}, {pipeline_mode = #tpu.pipeline_mode<synchronous>, transform_indices = @transform_11, window_bounds = array<i64: 8, 128>}]} {
    %c0_i32 = arith.constant 0 : i32
    %0 = arith.cmpi eq, %arg0, %c0_i32 : i32
    %1 = arith.extui %0 : i1 to i32
    %c0_i32_0 = arith.constant 0 : i32
    %2 = arith.cmpi ne, %1, %c0_i32_0 : i32
    scf.if %2 {
      %cst_124 = arith.constant 0.000000e+00 : f32
      %489 = vector.broadcast %cst_124 : f32 to vector<8x128xf32>
      %c0_125 = arith.constant 0 : index
      %c0_126 = arith.constant 0 : index
      %490 = vector.load %arg13[%c0_125, %c0_126] : memref<8x128xf32, #tpu.memory_space<vmem>>, vector<8x128xf32>
      tpu.vector_store %arg13[%c0_125, %c0_126], %489 {strides = array<i32>} : memref<8x128xf32, #tpu.memory_space<vmem>>, vector<8x128xf32>,
      %cst_127 = arith.constant 0.000000e+00 : f32
      %491 = vector.broadcast %cst_127 : f32 to vector<8x128xf32>
      %c0_128 = arith.constant 0 : index
      %c0_129 = arith.constant 0 : index
      %492 = vector.load %arg14[%c0_128, %c0_129] : memref<8x128xf32, #tpu.memory_space<vmem>>, vector<8x128xf32>
      tpu.vector_store %arg14[%c0_128, %c0_129], %491 {strides = array<i32>} : memref<8x128xf32, #tpu.memory_space<vmem>>, vector<8x128xf32>,
    } else {
    }
    %c0 = arith.constant 0 : index
    %c0_1 = arith.constant 0 : index
    %3 = vector.load %arg1[%c0, %c0_1] : memref<64x128xbf16, #tpu.memory_space<vmem>>, vector<64x128xbf16>
    %c0_2 = arith.constant 0 : index
    %c0_3 = arith.constant 0 : index
    %4 = vector.load %arg2[%c0_2, %c0_3] : memref<128x384xbf16, #tpu.memory_space<vmem>>, vector<128x384xbf16>
    %cst = arith.constant dense<0.000000e+00> : vector<64x384xf32>
    %5 = tpu.matmul %3, %4, %cst {dimension_numbers = #tpu.dot_dimension_numbers<[1], [0], [0], [1], [0, 0, 1, 1], [], []>} : vector<64x128xbf16>, vector<128x384xbf16>, vector<64x384xf32> -> vector<64x384xf32>
    %c0_4 = arith.constant 0 : index
    %c0_5 = arith.constant 0 : index
    %6 = vector.load %arg4[%c0_4, %c0_5] : memref<1x384xf32, #tpu.memory_space<vmem>>, vector<1x384xf32>
    %7 = vector.broadcast %6 : vector<1x384xf32> to vector<64x384xf32>
    %8 = arith.addf %5, %7 : vector<64x384xf32>
    %c0_6 = arith.constant 0 : index
    %c0_7 = arith.constant 0 : index
    %9 = vector.load %arg15[%c0_6, %c0_7] : memref<64x384xf32, #tpu.memory_space<vmem>>, vector<64x384xf32>
    tpu.vector_store %arg15[%c0_6, %c0_7], %8 {strides = array<i32>} : memref<64x384xf32, #tpu.memory_space<vmem>>, vector<64x384xf32>,
    %c0_8 = arith.constant 0 : index
    %c0_9 = arith.constant 0 : index
    %10 = vector.load %arg3[%c0_8, %c0_9] : memref<128x384xbf16, #tpu.memory_space<vmem>>, vector<128x384xbf16>
    %c0_10 = arith.constant 0 : index
    %c0_11 = arith.constant 0 : index
    %11 = vector.load %arg5[%c0_10, %c0_11] : memref<1x128xf32, #tpu.memory_space<vmem>>, vector<1x128xf32>
    %12 = vector.shape_cast %11 : vector<1x128xf32> to vector<1x128xf32>
    %13 = vector.broadcast %12 : vector<1x128xf32> to vector<8x128xf32>
    %c0_12 = arith.constant 0 : index
    %c0_13 = arith.constant 0 : index
    %14 = vector.load %arg13[%c0_12, %c0_13] : memref<8x128xf32, #tpu.memory_space<vmem>>, vector<8x128xf32>
    %15 = arith.truncf %14 : vector<8x128xf32> to vector<8x128xbf16>
    %cst_14 = arith.constant dense<0.000000e+00> : vector<8x384xf32>
    %16 = tpu.matmul %15, %10, %cst_14 {dimension_numbers = #tpu.dot_dimension_numbers<[1], [0], [0], [1], [0, 0, 1, 1], [], []>} : vector<8x128xbf16>, vector<128x384xbf16>, vector<8x384xf32> -> vector<8x384xf32>
    %c0_15 = arith.constant 0 : index
    %c0_16 = arith.constant 0 : index
    %17 = vector.load %arg15[%c0_15, %c0_16] : memref<64x384xf32, #tpu.memory_space<vmem>>, vector<8x384xf32>
    %18 = vector.extract_strided_slice %17 {offsets = [0, 0], sizes = [8, 128], strides = [1, 1]} : vector<8x384xf32> to vector<8x128xf32>
    %19 = vector.extract_strided_slice %16 {offsets = [0, 0], sizes = [8, 128], strides = [1, 1]} : vector<8x384xf32> to vector<8x128xf32>
    %20 = arith.addf %18, %19 : vector<8x128xf32>
    %21 = arith.negf %20 : vector<8x128xf32>
    %22 = math.exp %21 : vector<8x128xf32>
    %cst_17 = arith.constant 1.000000e+00 : f32
    %23 = vector.broadcast %cst_17 : f32 to vector<8x128xf32>
    %24 = arith.addf %23, %22 : vector<8x128xf32>
    %25 = arith.divf %23, %24 : vector<8x128xf32>
    %26 = vector.extract_strided_slice %17 {offsets = [0, 128], sizes = [8, 128], strides = [1, 1]} : vector<8x384xf32> to vector<8x128xf32>
    %27 = vector.extract_strided_slice %16 {offsets = [0, 128], sizes = [8, 128], strides = [1, 1]} : vector<8x384xf32> to vector<8x128xf32>
    %28 = arith.addf %26, %27 : vector<8x128xf32>
    %29 = arith.negf %28 : vector<8x128xf32>
    %30 = math.exp %29 : vector<8x128xf32>
    %cst_18 = arith.constant 1.000000e+00 : f32
    %31 = vector.broadcast %cst_18 : f32 to vector<8x128xf32>
    %32 = arith.addf %31, %30 : vector<8x128xf32>
    %33 = arith.divf %31, %32 : vector<8x128xf32>
    %34 = vector.extract_strided_slice %17 {offsets = [0, 256], sizes = [8, 128], strides = [1, 1]} : vector<8x384xf32> to vector<8x128xf32>
    %35 = vector.extract_strided_slice %16 {offsets = [0, 256], sizes = [8, 128], strides = [1, 1]} : vector<8x384xf32> to vector<8x128xf32>
    %36 = arith.addf %35, %13 : vector<8x128xf32>
    %37 = arith.mulf %25, %36 : vector<8x128xf32>
    %38 = arith.addf %34, %37 : vector<8x128xf32>
    %39 = math.tanh %38 : vector<8x128xf32>
    %40 = arith.subf %14, %39 : vector<8x128xf32>
    %41 = arith.mulf %33, %40 : vector<8x128xf32>
    %42 = arith.addf %39, %41 : vector<8x128xf32>
    %c0_19 = arith.constant 0 : index
    %c0_20 = arith.constant 0 : index
    %43 = vector.load %arg16[%c0_19, %c0_20] : memref<64x128xf32, #tpu.memory_space<vmem>>, vector<8x128xf32>
    tpu.vector_store %arg16[%c0_19, %c0_20], %42 {strides = array<i32>} : memref<64x128xf32, #tpu.memory_space<vmem>>, vector<8x128xf32>,
    %44 = arith.truncf %42 : vector<8x128xf32> to vector<8x128xbf16>
    %cst_21 = arith.constant dense<0.000000e+00> : vector<8x384xf32>
    %45 = tpu.matmul %44, %10, %cst_21 {dimension_numbers = #tpu.dot_dimension_numbers<[1], [0], [0], [1], [0, 0, 1, 1], [], []>} : vector<8x128xbf16>, vector<128x384xbf16>, vector<8x384xf32> -> vector<8x384xf32>
    %c8 = arith.constant 8 : index
    %c0_22 = arith.constant 0 : index
    %46 = vector.load %arg15[%c8, %c0_22] : memref<64x384xf32, #tpu.memory_space<vmem>>, vector<8x384xf32>
    %47 = vector.extract_strided_slice %46 {offsets = [0, 0], sizes = [8, 128], strides = [1, 1]} : vector<8x384xf32> to vector<8x128xf32>
    %48 = vector.extract_strided_slice %45 {offsets = [0, 0], sizes = [8, 128], strides = [1, 1]} : vector<8x384xf32> to vector<8x128xf32>
    %49 = arith.addf %47, %48 : vector<8x128xf32>
    %50 = arith.negf %49 : vector<8x128xf32>
    %51 = math.exp %50 : vector<8x128xf32>
    %cst_23 = arith.constant 1.000000e+00 : f32
    %52 = vector.broadcast %cst_23 : f32 to vector<8x128xf32>
    %53 = arith.addf %52, %51 : vector<8x128xf32>
    %54 = arith.divf %52, %53 : vector<8x128xf32>
    %55 = vector.extract_strided_slice %46 {offsets = [0, 128], sizes = [8, 128], strides = [1, 1]} : vector<8x384xf32> to vector<8x128xf32>
    %56 = vector.extract_strided_slice %45 {offsets = [0, 128], sizes = [8, 128], strides = [1, 1]} : vector<8x384xf32> to vector<8x128xf32>
    %57 = arith.addf %55, %56 : vector<8x128xf32>
    %58 = arith.negf %57 : vector<8x128xf32>
    %59 = math.exp %58 : vector<8x128xf32>
    %cst_24 = arith.constant 1.000000e+00 : f32
    %60 = vector.broadcast %cst_24 : f32 to vector<8x128xf32>
    %61 = arith.addf %60, %59 : vector<8x128xf32>
    %62 = arith.divf %60, %61 : vector<8x128xf32>
    %63 = vector.extract_strided_slice %46 {offsets = [0, 256], sizes = [8, 128], strides = [1, 1]} : vector<8x384xf32> to vector<8x128xf32>
    %64 = vector.extract_strided_slice %45 {offsets = [0, 256], sizes = [8, 128], strides = [1, 1]} : vector<8x384xf32> to vector<8x128xf32>
    %65 = arith.addf %64, %13 : vector<8x128xf32>
    %66 = arith.mulf %54, %65 : vector<8x128xf32>
    %67 = arith.addf %63, %66 : vector<8x128xf32>
    %68 = math.tanh %67 : vector<8x128xf32>
    %69 = arith.subf %42, %68 : vector<8x128xf32>
    %70 = arith.mulf %62, %69 : vector<8x128xf32>
    %71 = arith.addf %68, %70 : vector<8x128xf32>
    %c8_25 = arith.constant 8 : index
    %c0_26 = arith.constant 0 : index
    %72 = vector.load %arg16[%c8_25, %c0_26] : memref<64x128xf32, #tpu.memory_space<vmem>>, vector<8x128xf32>
    tpu.vector_store %arg16[%c8_25, %c0_26], %71 {strides = array<i32>} : memref<64x128xf32, #tpu.memory_space<vmem>>, vector<8x128xf32>,
    %73 = arith.truncf %71 : vector<8x128xf32> to vector<8x128xbf16>
    %cst_27 = arith.constant dense<0.000000e+00> : vector<8x384xf32>
    %74 = tpu.matmul %73, %10, %cst_27 {dimension_numbers = #tpu.dot_dimension_numbers<[1], [0], [0], [1], [0, 0, 1, 1], [], []>} : vector<8x128xbf16>, vector<128x384xbf16>, vector<8x384xf32> -> vector<8x384xf32>
    %c16 = arith.constant 16 : index
    %c0_28 = arith.constant 0 : index
    %75 = vector.load %arg15[%c16, %c0_28] : memref<64x384xf32, #tpu.memory_space<vmem>>, vector<8x384xf32>
    %76 = vector.extract_strided_slice %75 {offsets = [0, 0], sizes = [8, 128], strides = [1, 1]} : vector<8x384xf32> to vector<8x128xf32>
    %77 = vector.extract_strided_slice %74 {offsets = [0, 0], sizes = [8, 128], strides = [1, 1]} : vector<8x384xf32> to vector<8x128xf32>
    %78 = arith.addf %76, %77 : vector<8x128xf32>
    %79 = arith.negf %78 : vector<8x128xf32>
    %80 = math.exp %79 : vector<8x128xf32>
    %cst_29 = arith.constant 1.000000e+00 : f32
    %81 = vector.broadcast %cst_29 : f32 to vector<8x128xf32>
    %82 = arith.addf %81, %80 : vector<8x128xf32>
    %83 = arith.divf %81, %82 : vector<8x128xf32>
    %84 = vector.extract_strided_slice %75 {offsets = [0, 128], sizes = [8, 128], strides = [1, 1]} : vector<8x384xf32> to vector<8x128xf32>
    %85 = vector.extract_strided_slice %74 {offsets = [0, 128], sizes = [8, 128], strides = [1, 1]} : vector<8x384xf32> to vector<8x128xf32>
    %86 = arith.addf %84, %85 : vector<8x128xf32>
    %87 = arith.negf %86 : vector<8x128xf32>
    %88 = math.exp %87 : vector<8x128xf32>
    %cst_30 = arith.constant 1.000000e+00 : f32
    %89 = vector.broadcast %cst_30 : f32 to vector<8x128xf32>
    %90 = arith.addf %89, %88 : vector<8x128xf32>
    %91 = arith.divf %89, %90 : vector<8x128xf32>
    %92 = vector.extract_strided_slice %75 {offsets = [0, 256], sizes = [8, 128], strides = [1, 1]} : vector<8x384xf32> to vector<8x128xf32>
    %93 = vector.extract_strided_slice %74 {offsets = [0, 256], sizes = [8, 128], strides = [1, 1]} : vector<8x384xf32> to vector<8x128xf32>
    %94 = arith.addf %93, %13 : vector<8x128xf32>
    %95 = arith.mulf %83, %94 : vector<8x128xf32>
    %96 = arith.addf %92, %95 : vector<8x128xf32>
    %97 = math.tanh %96 : vector<8x128xf32>
    %98 = arith.subf %71, %97 : vector<8x128xf32>
    %99 = arith.mulf %91, %98 : vector<8x128xf32>
    %100 = arith.addf %97, %99 : vector<8x128xf32>
    %c16_31 = arith.constant 16 : index
    %c0_32 = arith.constant 0 : index
    %101 = vector.load %arg16[%c16_31, %c0_32] : memref<64x128xf32, #tpu.memory_space<vmem>>, vector<8x128xf32>
    tpu.vector_store %arg16[%c16_31, %c0_32], %100 {strides = array<i32>} : memref<64x128xf32, #tpu.memory_space<vmem>>, vector<8x128xf32>,
    %102 = arith.truncf %100 : vector<8x128xf32> to vector<8x128xbf16>
    %cst_33 = arith.constant dense<0.000000e+00> : vector<8x384xf32>
    %103 = tpu.matmul %102, %10, %cst_33 {dimension_numbers = #tpu.dot_dimension_numbers<[1], [0], [0], [1], [0, 0, 1, 1], [], []>} : vector<8x128xbf16>, vector<128x384xbf16>, vector<8x384xf32> -> vector<8x384xf32>
    %c24 = arith.constant 24 : index
    %c0_34 = arith.constant 0 : index
    %104 = vector.load %arg15[%c24, %c0_34] : memref<64x384xf32, #tpu.memory_space<vmem>>, vector<8x384xf32>
    %105 = vector.extract_strided_slice %104 {offsets = [0, 0], sizes = [8, 128], strides = [1, 1]} : vector<8x384xf32> to vector<8x128xf32>
    %106 = vector.extract_strided_slice %103 {offsets = [0, 0], sizes = [8, 128], strides = [1, 1]} : vector<8x384xf32> to vector<8x128xf32>
    %107 = arith.addf %105, %106 : vector<8x128xf32>
    %108 = arith.negf %107 : vector<8x128xf32>
    %109 = math.exp %108 : vector<8x128xf32>
    %cst_35 = arith.constant 1.000000e+00 : f32
    %110 = vector.broadcast %cst_35 : f32 to vector<8x128xf32>
    %111 = arith.addf %110, %109 : vector<8x128xf32>
    %112 = arith.divf %110, %111 : vector<8x128xf32>
    %113 = vector.extract_strided_slice %104 {offsets = [0, 128], sizes = [8, 128], strides = [1, 1]} : vector<8x384xf32> to vector<8x128xf32>
    %114 = vector.extract_strided_slice %103 {offsets = [0, 128], sizes = [8, 128], strides = [1, 1]} : vector<8x384xf32> to vector<8x128xf32>
    %115 = arith.addf %113, %114 : vector<8x128xf32>
    %116 = arith.negf %115 : vector<8x128xf32>
    %117 = math.exp %116 : vector<8x128xf32>
    %cst_36 = arith.constant 1.000000e+00 : f32
    %118 = vector.broadcast %cst_36 : f32 to vector<8x128xf32>
    %119 = arith.addf %118, %117 : vector<8x128xf32>
    %120 = arith.divf %118, %119 : vector<8x128xf32>
    %121 = vector.extract_strided_slice %104 {offsets = [0, 256], sizes = [8, 128], strides = [1, 1]} : vector<8x384xf32> to vector<8x128xf32>
    %122 = vector.extract_strided_slice %103 {offsets = [0, 256], sizes = [8, 128], strides = [1, 1]} : vector<8x384xf32> to vector<8x128xf32>
    %123 = arith.addf %122, %13 : vector<8x128xf32>
    %124 = arith.mulf %112, %123 : vector<8x128xf32>
    %125 = arith.addf %121, %124 : vector<8x128xf32>
    %126 = math.tanh %125 : vector<8x128xf32>
    %127 = arith.subf %100, %126 : vector<8x128xf32>
    %128 = arith.mulf %120, %127 : vector<8x128xf32>
    %129 = arith.addf %126, %128 : vector<8x128xf32>
    %c24_37 = arith.constant 24 : index
    %c0_38 = arith.constant 0 : index
    %130 = vector.load %arg16[%c24_37, %c0_38] : memref<64x128xf32, #tpu.memory_space<vmem>>, vector<8x128xf32>
    tpu.vector_store %arg16[%c24_37, %c0_38], %129 {strides = array<i32>} : memref<64x128xf32, #tpu.memory_space<vmem>>, vector<8x128xf32>,
    %131 = arith.truncf %129 : vector<8x128xf32> to vector<8x128xbf16>
    %cst_39 = arith.constant dense<0.000000e+00> : vector<8x384xf32>
    %132 = tpu.matmul %131, %10, %cst_39 {dimension_numbers = #tpu.dot_dimension_numbers<[1], [0], [0], [1], [0, 0, 1, 1], [], []>} : vector<8x128xbf16>, vector<128x384xbf16>, vector<8x384xf32> -> vector<8x384xf32>
    %c32 = arith.constant 32 : index
    %c0_40 = arith.constant 0 : index
    %133 = vector.load %arg15[%c32, %c0_40] : memref<64x384xf32, #tpu.memory_space<vmem>>, vector<8x384xf32>
    %134 = vector.extract_strided_slice %133 {offsets = [0, 0], sizes = [8, 128], strides = [1, 1]} : vector<8x384xf32> to vector<8x128xf32>
    %135 = vector.extract_strided_slice %132 {offsets = [0, 0], sizes = [8, 128], strides = [1, 1]} : vector<8x384xf32> to vector<8x128xf32>
    %136 = arith.addf %134, %135 : vector<8x128xf32>
    %137 = arith.negf %136 : vector<8x128xf32>
    %138 = math.exp %137 : vector<8x128xf32>
    %cst_41 = arith.constant 1.000000e+00 : f32
    %139 = vector.broadcast %cst_41 : f32 to vector<8x128xf32>
    %140 = arith.addf %139, %138 : vector<8x128xf32>
    %141 = arith.divf %139, %140 : vector<8x128xf32>
    %142 = vector.extract_strided_slice %133 {offsets = [0, 128], sizes = [8, 128], strides = [1, 1]} : vector<8x384xf32> to vector<8x128xf32>
    %143 = vector.extract_strided_slice %132 {offsets = [0, 128], sizes = [8, 128], strides = [1, 1]} : vector<8x384xf32> to vector<8x128xf32>
    %144 = arith.addf %142, %143 : vector<8x128xf32>
    %145 = arith.negf %144 : vector<8x128xf32>
    %146 = math.exp %145 : vector<8x128xf32>
    %cst_42 = arith.constant 1.000000e+00 : f32
    %147 = vector.broadcast %cst_42 : f32 to vector<8x128xf32>
    %148 = arith.addf %147, %146 : vector<8x128xf32>
    %149 = arith.divf %147, %148 : vector<8x128xf32>
    %150 = vector.extract_strided_slice %133 {offsets = [0, 256], sizes = [8, 128], strides = [1, 1]} : vector<8x384xf32> to vector<8x128xf32>
    %151 = vector.extract_strided_slice %132 {offsets = [0, 256], sizes = [8, 128], strides = [1, 1]} : vector<8x384xf32> to vector<8x128xf32>
    %152 = arith.addf %151, %13 : vector<8x128xf32>
    %153 = arith.mulf %141, %152 : vector<8x128xf32>
    %154 = arith.addf %150, %153 : vector<8x128xf32>
    %155 = math.tanh %154 : vector<8x128xf32>
    %156 = arith.subf %129, %155 : vector<8x128xf32>
    %157 = arith.mulf %149, %156 : vector<8x128xf32>
    %158 = arith.addf %155, %157 : vector<8x128xf32>
    %c32_43 = arith.constant 32 : index
    %c0_44 = arith.constant 0 : index
    %159 = vector.load %arg16[%c32_43, %c0_44] : memref<64x128xf32, #tpu.memory_space<vmem>>, vector<8x128xf32>
    tpu.vector_store %arg16[%c32_43, %c0_44], %158 {strides = array<i32>} : memref<64x128xf32, #tpu.memory_space<vmem>>, vector<8x128xf32>,
    %160 = arith.truncf %158 : vector<8x128xf32> to vector<8x128xbf16>
    %cst_45 = arith.constant dense<0.000000e+00> : vector<8x384xf32>
    %161 = tpu.matmul %160, %10, %cst_45 {dimension_numbers = #tpu.dot_dimension_numbers<[1], [0], [0], [1], [0, 0, 1, 1], [], []>} : vector<8x128xbf16>, vector<128x384xbf16>, vector<8x384xf32> -> vector<8x384xf32>
    %c40 = arith.constant 40 : index
    %c0_46 = arith.constant 0 : index
    %162 = vector.load %arg15[%c40, %c0_46] : memref<64x384xf32, #tpu.memory_space<vmem>>, vector<8x384xf32>
    %163 = vector.extract_strided_slice %162 {offsets = [0, 0], sizes = [8, 128], strides = [1, 1]} : vector<8x384xf32> to vector<8x128xf32>
    %164 = vector.extract_strided_slice %161 {offsets = [0, 0], sizes = [8, 128], strides = [1, 1]} : vector<8x384xf32> to vector<8x128xf32>
    %165 = arith.addf %163, %164 : vector<8x128xf32>
    %166 = arith.negf %165 : vector<8x128xf32>
    %167 = math.exp %166 : vector<8x128xf32>
    %cst_47 = arith.constant 1.000000e+00 : f32
    %168 = vector.broadcast %cst_47 : f32 to vector<8x128xf32>
    %169 = arith.addf %168, %167 : vector<8x128xf32>
    %170 = arith.divf %168, %169 : vector<8x128xf32>
    %171 = vector.extract_strided_slice %162 {offsets = [0, 128], sizes = [8, 128], strides = [1, 1]} : vector<8x384xf32> to vector<8x128xf32>
    %172 = vector.extract_strided_slice %161 {offsets = [0, 128], sizes = [8, 128], strides = [1, 1]} : vector<8x384xf32> to vector<8x128xf32>
    %173 = arith.addf %171, %172 : vector<8x128xf32>
    %174 = arith.negf %173 : vector<8x128xf32>
    %175 = math.exp %174 : vector<8x128xf32>
    %cst_48 = arith.constant 1.000000e+00 : f32
    %176 = vector.broadcast %cst_48 : f32 to vector<8x128xf32>
    %177 = arith.addf %176, %175 : vector<8x128xf32>
    %178 = arith.divf %176, %177 : vector<8x128xf32>
    %179 = vector.extract_strided_slice %162 {offsets = [0, 256], sizes = [8, 128], strides = [1, 1]} : vector<8x384xf32> to vector<8x128xf32>
    %180 = vector.extract_strided_slice %161 {offsets = [0, 256], sizes = [8, 128], strides = [1, 1]} : vector<8x384xf32> to vector<8x128xf32>
    %181 = arith.addf %180, %13 : vector<8x128xf32>
    %182 = arith.mulf %170, %181 : vector<8x128xf32>
    %183 = arith.addf %179, %182 : vector<8x128xf32>
    %184 = math.tanh %183 : vector<8x128xf32>
    %185 = arith.subf %158, %184 : vector<8x128xf32>
    %186 = arith.mulf %178, %185 : vector<8x128xf32>
    %187 = arith.addf %184, %186 : vector<8x128xf32>
    %c40_49 = arith.constant 40 : index
    %c0_50 = arith.constant 0 : index
    %188 = vector.load %arg16[%c40_49, %c0_50] : memref<64x128xf32, #tpu.memory_space<vmem>>, vector<8x128xf32>
    tpu.vector_store %arg16[%c40_49, %c0_50], %187 {strides = array<i32>} : memref<64x128xf32, #tpu.memory_space<vmem>>, vector<8x128xf32>,
    %189 = arith.truncf %187 : vector<8x128xf32> to vector<8x128xbf16>
    %cst_51 = arith.constant dense<0.000000e+00> : vector<8x384xf32>
    %190 = tpu.matmul %189, %10, %cst_51 {dimension_numbers = #tpu.dot_dimension_numbers<[1], [0], [0], [1], [0, 0, 1, 1], [], []>} : vector<8x128xbf16>, vector<128x384xbf16>, vector<8x384xf32> -> vector<8x384xf32>
    %c48 = arith.constant 48 : index
    %c0_52 = arith.constant 0 : index
    %191 = vector.load %arg15[%c48, %c0_52] : memref<64x384xf32, #tpu.memory_space<vmem>>, vector<8x384xf32>
    %192 = vector.extract_strided_slice %191 {offsets = [0, 0], sizes = [8, 128], strides = [1, 1]} : vector<8x384xf32> to vector<8x128xf32>
    %193 = vector.extract_strided_slice %190 {offsets = [0, 0], sizes = [8, 128], strides = [1, 1]} : vector<8x384xf32> to vector<8x128xf32>
    %194 = arith.addf %192, %193 : vector<8x128xf32>
    %195 = arith.negf %194 : vector<8x128xf32>
    %196 = math.exp %195 : vector<8x128xf32>
    %cst_53 = arith.constant 1.000000e+00 : f32
    %197 = vector.broadcast %cst_53 : f32 to vector<8x128xf32>
    %198 = arith.addf %197, %196 : vector<8x128xf32>
    %199 = arith.divf %197, %198 : vector<8x128xf32>
    %200 = vector.extract_strided_slice %191 {offsets = [0, 128], sizes = [8, 128], strides = [1, 1]} : vector<8x384xf32> to vector<8x128xf32>
    %201 = vector.extract_strided_slice %190 {offsets = [0, 128], sizes = [8, 128], strides = [1, 1]} : vector<8x384xf32> to vector<8x128xf32>
    %202 = arith.addf %200, %201 : vector<8x128xf32>
    %203 = arith.negf %202 : vector<8x128xf32>
    %204 = math.exp %203 : vector<8x128xf32>
    %cst_54 = arith.constant 1.000000e+00 : f32
    %205 = vector.broadcast %cst_54 : f32 to vector<8x128xf32>
    %206 = arith.addf %205, %204 : vector<8x128xf32>
    %207 = arith.divf %205, %206 : vector<8x128xf32>
    %208 = vector.extract_strided_slice %191 {offsets = [0, 256], sizes = [8, 128], strides = [1, 1]} : vector<8x384xf32> to vector<8x128xf32>
    %209 = vector.extract_strided_slice %190 {offsets = [0, 256], sizes = [8, 128], strides = [1, 1]} : vector<8x384xf32> to vector<8x128xf32>
    %210 = arith.addf %209, %13 : vector<8x128xf32>
    %211 = arith.mulf %199, %210 : vector<8x128xf32>
    %212 = arith.addf %208, %211 : vector<8x128xf32>
    %213 = math.tanh %212 : vector<8x128xf32>
    %214 = arith.subf %187, %213 : vector<8x128xf32>
    %215 = arith.mulf %207, %214 : vector<8x128xf32>
    %216 = arith.addf %213, %215 : vector<8x128xf32>
    %c48_55 = arith.constant 48 : index
    %c0_56 = arith.constant 0 : index
    %217 = vector.load %arg16[%c48_55, %c0_56] : memref<64x128xf32, #tpu.memory_space<vmem>>, vector<8x128xf32>
    tpu.vector_store %arg16[%c48_55, %c0_56], %216 {strides = array<i32>} : memref<64x128xf32, #tpu.memory_space<vmem>>, vector<8x128xf32>,
    %218 = arith.truncf %216 : vector<8x128xf32> to vector<8x128xbf16>
    %cst_57 = arith.constant dense<0.000000e+00> : vector<8x384xf32>
    %219 = tpu.matmul %218, %10, %cst_57 {dimension_numbers = #tpu.dot_dimension_numbers<[1], [0], [0], [1], [0, 0, 1, 1], [], []>} : vector<8x128xbf16>, vector<128x384xbf16>, vector<8x384xf32> -> vector<8x384xf32>
    %c56 = arith.constant 56 : index
    %c0_58 = arith.constant 0 : index
    %220 = vector.load %arg15[%c56, %c0_58] : memref<64x384xf32, #tpu.memory_space<vmem>>, vector<8x384xf32>
    %221 = vector.extract_strided_slice %220 {offsets = [0, 0], sizes = [8, 128], strides = [1, 1]} : vector<8x384xf32> to vector<8x128xf32>
    %222 = vector.extract_strided_slice %219 {offsets = [0, 0], sizes = [8, 128], strides = [1, 1]} : vector<8x384xf32> to vector<8x128xf32>
    %223 = arith.addf %221, %222 : vector<8x128xf32>
    %224 = arith.negf %223 : vector<8x128xf32>
    %225 = math.exp %224 : vector<8x128xf32>
    %cst_59 = arith.constant 1.000000e+00 : f32
    %226 = vector.broadcast %cst_59 : f32 to vector<8x128xf32>
    %227 = arith.addf %226, %225 : vector<8x128xf32>
    %228 = arith.divf %226, %227 : vector<8x128xf32>
    %229 = vector.extract_strided_slice %220 {offsets = [0, 128], sizes = [8, 128], strides = [1, 1]} : vector<8x384xf32> to vector<8x128xf32>
    %230 = vector.extract_strided_slice %219 {offsets = [0, 128], sizes = [8, 128], strides = [1, 1]} : vector<8x384xf32> to vector<8x128xf32>
    %231 = arith.addf %229, %230 : vector<8x128xf32>
    %232 = arith.negf %231 : vector<8x128xf32>
    %233 = math.exp %232 : vector<8x128xf32>
    %cst_60 = arith.constant 1.000000e+00 : f32
    %234 = vector.broadcast %cst_60 : f32 to vector<8x128xf32>
    %235 = arith.addf %234, %233 : vector<8x128xf32>
    %236 = arith.divf %234, %235 : vector<8x128xf32>
    %237 = vector.extract_strided_slice %220 {offsets = [0, 256], sizes = [8, 128], strides = [1, 1]} : vector<8x384xf32> to vector<8x128xf32>
    %238 = vector.extract_strided_slice %219 {offsets = [0, 256], sizes = [8, 128], strides = [1, 1]} : vector<8x384xf32> to vector<8x128xf32>
    %239 = arith.addf %238, %13 : vector<8x128xf32>
    %240 = arith.mulf %228, %239 : vector<8x128xf32>
    %241 = arith.addf %237, %240 : vector<8x128xf32>
    %242 = math.tanh %241 : vector<8x128xf32>
    %243 = arith.subf %216, %242 : vector<8x128xf32>
    %244 = arith.mulf %236, %243 : vector<8x128xf32>
    %245 = arith.addf %242, %244 : vector<8x128xf32>
    %c56_61 = arith.constant 56 : index
    %c0_62 = arith.constant 0 : index
    %246 = vector.load %arg16[%c56_61, %c0_62] : memref<64x128xf32, #tpu.memory_space<vmem>>, vector<8x128xf32>
    tpu.vector_store %arg16[%c56_61, %c0_62], %245 {strides = array<i32>} : memref<64x128xf32, #tpu.memory_space<vmem>>, vector<8x128xf32>,
    %c0_63 = arith.constant 0 : index
    %c0_64 = arith.constant 0 : index
    %247 = vector.load %arg13[%c0_63, %c0_64] : memref<8x128xf32, #tpu.memory_space<vmem>>, vector<8x128xf32>
    tpu.vector_store %arg13[%c0_63, %c0_64], %245 {strides = array<i32>} : memref<8x128xf32, #tpu.memory_space<vmem>>, vector<8x128xf32>,
    %c0_65 = arith.constant 0 : index
    %c0_66 = arith.constant 0 : index
    %248 = vector.load %arg16[%c0_65, %c0_66] : memref<64x128xf32, #tpu.memory_space<vmem>>, vector<64x128xf32>
    %249 = arith.truncf %248 : vector<64x128xf32> to vector<64x128xbf16>
    %c0_67 = arith.constant 0 : index
    %c0_68 = arith.constant 0 : index
    %250 = vector.load %arg6[%c0_67, %c0_68] : memref<128x384xbf16, #tpu.memory_space<vmem>>, vector<128x384xbf16>
    %cst_69 = arith.constant dense<0.000000e+00> : vector<64x384xf32>
    %251 = tpu.matmul %249, %250, %cst_69 {dimension_numbers = #tpu.dot_dimension_numbers<[1], [0], [0], [1], [0, 0, 1, 1], [], []>} : vector<64x128xbf16>, vector<128x384xbf16>, vector<64x384xf32> -> vector<64x384xf32>
    %c0_70 = arith.constant 0 : index
    %c0_71 = arith.constant 0 : index
    %252 = vector.load %arg8[%c0_70, %c0_71] : memref<1x384xf32, #tpu.memory_space<vmem>>, vector<1x384xf32>
    %253 = vector.broadcast %252 : vector<1x384xf32> to vector<64x384xf32>
    %254 = arith.addf %251, %253 : vector<64x384xf32>
    %c0_72 = arith.constant 0 : index
    %c0_73 = arith.constant 0 : index
    %255 = vector.load %arg15[%c0_72, %c0_73] : memref<64x384xf32, #tpu.memory_space<vmem>>, vector<64x384xf32>
    tpu.vector_store %arg15[%c0_72, %c0_73], %254 {strides = array<i32>} : memref<64x384xf32, #tpu.memory_space<vmem>>, vector<64x384xf32>,
    %c0_74 = arith.constant 0 : index
    %c0_75 = arith.constant 0 : index
    %256 = vector.load %arg7[%c0_74, %c0_75] : memref<128x384xbf16, #tpu.memory_space<vmem>>, vector<128x384xbf16>
    %c0_76 = arith.constant 0 : index
    %c0_77 = arith.constant 0 : index
    %257 = vector.load %arg9[%c0_76, %c0_77] : memref<1x128xf32, #tpu.memory_space<vmem>>, vector<1x128xf32>
    %258 = vector.shape_cast %257 : vector<1x128xf32> to vector<1x128xf32>
    %259 = vector.broadcast %258 : vector<1x128xf32> to vector<8x128xf32>
    %c0_78 = arith.constant 0 : index
    %c0_79 = arith.constant 0 : index
    %260 = vector.load %arg14[%c0_78, %c0_79] : memref<8x128xf32, #tpu.memory_space<vmem>>, vector<8x128xf32>
    %261 = arith.truncf %260 : vector<8x128xf32> to vector<8x128xbf16>
    %cst_80 = arith.constant dense<0.000000e+00> : vector<8x384xf32>
    %262 = tpu.matmul %261, %256, %cst_80 {dimension_numbers = #tpu.dot_dimension_numbers<[1], [0], [0], [1], [0, 0, 1, 1], [], []>} : vector<8x128xbf16>, vector<128x384xbf16>, vector<8x384xf32> -> vector<8x384xf32>
    %c0_81 = arith.constant 0 : index
    %c0_82 = arith.constant 0 : index
    %263 = vector.load %arg15[%c0_81, %c0_82] : memref<64x384xf32, #tpu.memory_space<vmem>>, vector<8x384xf32>
    %264 = vector.extract_strided_slice %263 {offsets = [0, 0], sizes = [8, 128], strides = [1, 1]} : vector<8x384xf32> to vector<8x128xf32>
    %265 = vector.extract_strided_slice %262 {offsets = [0, 0], sizes = [8, 128], strides = [1, 1]} : vector<8x384xf32> to vector<8x128xf32>
    %266 = arith.addf %264, %265 : vector<8x128xf32>
    %267 = arith.negf %266 : vector<8x128xf32>
    %268 = math.exp %267 : vector<8x128xf32>
    %cst_83 = arith.constant 1.000000e+00 : f32
    %269 = vector.broadcast %cst_83 : f32 to vector<8x128xf32>
    %270 = arith.addf %269, %268 : vector<8x128xf32>
    %271 = arith.divf %269, %270 : vector<8x128xf32>
    %272 = vector.extract_strided_slice %263 {offsets = [0, 128], sizes = [8, 128], strides = [1, 1]} : vector<8x384xf32> to vector<8x128xf32>
    %273 = vector.extract_strided_slice %262 {offsets = [0, 128], sizes = [8, 128], strides = [1, 1]} : vector<8x384xf32> to vector<8x128xf32>
    %274 = arith.addf %272, %273 : vector<8x128xf32>
    %275 = arith.negf %274 : vector<8x128xf32>
    %276 = math.exp %275 : vector<8x128xf32>
    %cst_84 = arith.constant 1.000000e+00 : f32
    %277 = vector.broadcast %cst_84 : f32 to vector<8x128xf32>
    %278 = arith.addf %277, %276 : vector<8x128xf32>
    %279 = arith.divf %277, %278 : vector<8x128xf32>
    %280 = vector.extract_strided_slice %263 {offsets = [0, 256], sizes = [8, 128], strides = [1, 1]} : vector<8x384xf32> to vector<8x128xf32>
    %281 = vector.extract_strided_slice %262 {offsets = [0, 256], sizes = [8, 128], strides = [1, 1]} : vector<8x384xf32> to vector<8x128xf32>
    %282 = arith.addf %281, %259 : vector<8x128xf32>
    %283 = arith.mulf %271, %282 : vector<8x128xf32>
    %284 = arith.addf %280, %283 : vector<8x128xf32>
    %285 = math.tanh %284 : vector<8x128xf32>
    %286 = arith.subf %260, %285 : vector<8x128xf32>
    %287 = arith.mulf %279, %286 : vector<8x128xf32>
    %288 = arith.addf %285, %287 : vector<8x128xf32>
    %289 = arith.truncf %288 : vector<8x128xf32> to vector<8x128xbf16>
    %cst_85 = arith.constant dense<0.000000e+00> : vector<8x384xf32>
    %290 = tpu.matmul %289, %256, %cst_85 {dimension_numbers = #tpu.dot_dimension_numbers<[1], [0], [0], [1], [0, 0, 1, 1], [], []>} : vector<8x128xbf16>, vector<128x384xbf16>, vector<8x384xf32> -> vector<8x384xf32>
    %c8_86 = arith.constant 8 : index
    %c0_87 = arith.constant 0 : index
    %291 = vector.load %arg15[%c8_86, %c0_87] : memref<64x384xf32, #tpu.memory_space<vmem>>, vector<8x384xf32>
    %292 = vector.extract_strided_slice %291 {offsets = [0, 0], sizes = [8, 128], strides = [1, 1]} : vector<8x384xf32> to vector<8x128xf32>
    %293 = vector.extract_strided_slice %290 {offsets = [0, 0], sizes = [8, 128], strides = [1, 1]} : vector<8x384xf32> to vector<8x128xf32>
    %294 = arith.addf %292, %293 : vector<8x128xf32>
    %295 = arith.negf %294 : vector<8x128xf32>
    %296 = math.exp %295 : vector<8x128xf32>
    %cst_88 = arith.constant 1.000000e+00 : f32
    %297 = vector.broadcast %cst_88 : f32 to vector<8x128xf32>
    %298 = arith.addf %297, %296 : vector<8x128xf32>
    %299 = arith.divf %297, %298 : vector<8x128xf32>
    %300 = vector.extract_strided_slice %291 {offsets = [0, 128], sizes = [8, 128], strides = [1, 1]} : vector<8x384xf32> to vector<8x128xf32>
    %301 = vector.extract_strided_slice %290 {offsets = [0, 128], sizes = [8, 128], strides = [1, 1]} : vector<8x384xf32> to vector<8x128xf32>
    %302 = arith.addf %300, %301 : vector<8x128xf32>
    %303 = arith.negf %302 : vector<8x128xf32>
    %304 = math.exp %303 : vector<8x128xf32>
    %cst_89 = arith.constant 1.000000e+00 : f32
    %305 = vector.broadcast %cst_89 : f32 to vector<8x128xf32>
    %306 = arith.addf %305, %304 : vector<8x128xf32>
    %307 = arith.divf %305, %306 : vector<8x128xf32>
    %308 = vector.extract_strided_slice %291 {offsets = [0, 256], sizes = [8, 128], strides = [1, 1]} : vector<8x384xf32> to vector<8x128xf32>
    %309 = vector.extract_strided_slice %290 {offsets = [0, 256], sizes = [8, 128], strides = [1, 1]} : vector<8x384xf32> to vector<8x128xf32>
    %310 = arith.addf %309, %259 : vector<8x128xf32>
    %311 = arith.mulf %299, %310 : vector<8x128xf32>
    %312 = arith.addf %308, %311 : vector<8x128xf32>
    %313 = math.tanh %312 : vector<8x128xf32>
    %314 = arith.subf %288, %313 : vector<8x128xf32>
    %315 = arith.mulf %307, %314 : vector<8x128xf32>
    %316 = arith.addf %313, %315 : vector<8x128xf32>
    %317 = arith.truncf %316 : vector<8x128xf32> to vector<8x128xbf16>
    %cst_90 = arith.constant dense<0.000000e+00> : vector<8x384xf32>
    %318 = tpu.matmul %317, %256, %cst_90 {dimension_numbers = #tpu.dot_dimension_numbers<[1], [0], [0], [1], [0, 0, 1, 1], [], []>} : vector<8x128xbf16>, vector<128x384xbf16>, vector<8x384xf32> -> vector<8x384xf32>
    %c16_91 = arith.constant 16 : index
    %c0_92 = arith.constant 0 : index
    %319 = vector.load %arg15[%c16_91, %c0_92] : memref<64x384xf32, #tpu.memory_space<vmem>>, vector<8x384xf32>
    %320 = vector.extract_strided_slice %319 {offsets = [0, 0], sizes = [8, 128], strides = [1, 1]} : vector<8x384xf32> to vector<8x128xf32>
    %321 = vector.extract_strided_slice %318 {offsets = [0, 0], sizes = [8, 128], strides = [1, 1]} : vector<8x384xf32> to vector<8x128xf32>
    %322 = arith.addf %320, %321 : vector<8x128xf32>
    %323 = arith.negf %322 : vector<8x128xf32>
    %324 = math.exp %323 : vector<8x128xf32>
    %cst_93 = arith.constant 1.000000e+00 : f32
    %325 = vector.broadcast %cst_93 : f32 to vector<8x128xf32>
    %326 = arith.addf %325, %324 : vector<8x128xf32>
    %327 = arith.divf %325, %326 : vector<8x128xf32>
    %328 = vector.extract_strided_slice %319 {offsets = [0, 128], sizes = [8, 128], strides = [1, 1]} : vector<8x384xf32> to vector<8x128xf32>
    %329 = vector.extract_strided_slice %318 {offsets = [0, 128], sizes = [8, 128], strides = [1, 1]} : vector<8x384xf32> to vector<8x128xf32>
    %330 = arith.addf %328, %329 : vector<8x128xf32>
    %331 = arith.negf %330 : vector<8x128xf32>
    %332 = math.exp %331 : vector<8x128xf32>
    %cst_94 = arith.constant 1.000000e+00 : f32
    %333 = vector.broadcast %cst_94 : f32 to vector<8x128xf32>
    %334 = arith.addf %333, %332 : vector<8x128xf32>
    %335 = arith.divf %333, %334 : vector<8x128xf32>
    %336 = vector.extract_strided_slice %319 {offsets = [0, 256], sizes = [8, 128], strides = [1, 1]} : vector<8x384xf32> to vector<8x128xf32>
    %337 = vector.extract_strided_slice %318 {offsets = [0, 256], sizes = [8, 128], strides = [1, 1]} : vector<8x384xf32> to vector<8x128xf32>
    %338 = arith.addf %337, %259 : vector<8x128xf32>
    %339 = arith.mulf %327, %338 : vector<8x128xf32>
    %340 = arith.addf %336, %339 : vector<8x128xf32>
    %341 = math.tanh %340 : vector<8x128xf32>
    %342 = arith.subf %316, %341 : vector<8x128xf32>
    %343 = arith.mulf %335, %342 : vector<8x128xf32>
    %344 = arith.addf %341, %343 : vector<8x128xf32>
    %345 = arith.truncf %344 : vector<8x128xf32> to vector<8x128xbf16>
    %cst_95 = arith.constant dense<0.000000e+00> : vector<8x384xf32>
    %346 = tpu.matmul %345, %256, %cst_95 {dimension_numbers = #tpu.dot_dimension_numbers<[1], [0], [0], [1], [0, 0, 1, 1], [], []>} : vector<8x128xbf16>, vector<128x384xbf16>, vector<8x384xf32> -> vector<8x384xf32>
    %c24_96 = arith.constant 24 : index
    %c0_97 = arith.constant 0 : index
    %347 = vector.load %arg15[%c24_96, %c0_97] : memref<64x384xf32, #tpu.memory_space<vmem>>, vector<8x384xf32>
    %348 = vector.extract_strided_slice %347 {offsets = [0, 0], sizes = [8, 128], strides = [1, 1]} : vector<8x384xf32> to vector<8x128xf32>
    %349 = vector.extract_strided_slice %346 {offsets = [0, 0], sizes = [8, 128], strides = [1, 1]} : vector<8x384xf32> to vector<8x128xf32>
    %350 = arith.addf %348, %349 : vector<8x128xf32>
    %351 = arith.negf %350 : vector<8x128xf32>
    %352 = math.exp %351 : vector<8x128xf32>
    %cst_98 = arith.constant 1.000000e+00 : f32
    %353 = vector.broadcast %cst_98 : f32 to vector<8x128xf32>
    %354 = arith.addf %353, %352 : vector<8x128xf32>
    %355 = arith.divf %353, %354 : vector<8x128xf32>
    %356 = vector.extract_strided_slice %347 {offsets = [0, 128], sizes = [8, 128], strides = [1, 1]} : vector<8x384xf32> to vector<8x128xf32>
    %357 = vector.extract_strided_slice %346 {offsets = [0, 128], sizes = [8, 128], strides = [1, 1]} : vector<8x384xf32> to vector<8x128xf32>
    %358 = arith.addf %356, %357 : vector<8x128xf32>
    %359 = arith.negf %358 : vector<8x128xf32>
    %360 = math.exp %359 : vector<8x128xf32>
    %cst_99 = arith.constant 1.000000e+00 : f32
    %361 = vector.broadcast %cst_99 : f32 to vector<8x128xf32>
    %362 = arith.addf %361, %360 : vector<8x128xf32>
    %363 = arith.divf %361, %362 : vector<8x128xf32>
    %364 = vector.extract_strided_slice %347 {offsets = [0, 256], sizes = [8, 128], strides = [1, 1]} : vector<8x384xf32> to vector<8x128xf32>
    %365 = vector.extract_strided_slice %346 {offsets = [0, 256], sizes = [8, 128], strides = [1, 1]} : vector<8x384xf32> to vector<8x128xf32>
    %366 = arith.addf %365, %259 : vector<8x128xf32>
    %367 = arith.mulf %355, %366 : vector<8x128xf32>
    %368 = arith.addf %364, %367 : vector<8x128xf32>
    %369 = math.tanh %368 : vector<8x128xf32>
    %370 = arith.subf %344, %369 : vector<8x128xf32>
    %371 = arith.mulf %363, %370 : vector<8x128xf32>
    %372 = arith.addf %369, %371 : vector<8x128xf32>
    %373 = arith.truncf %372 : vector<8x128xf32> to vector<8x128xbf16>
    %cst_100 = arith.constant dense<0.000000e+00> : vector<8x384xf32>
    %374 = tpu.matmul %373, %256, %cst_100 {dimension_numbers = #tpu.dot_dimension_numbers<[1], [0], [0], [1], [0, 0, 1, 1], [], []>} : vector<8x128xbf16>, vector<128x384xbf16>, vector<8x384xf32> -> vector<8x384xf32>
    %c32_101 = arith.constant 32 : index
    %c0_102 = arith.constant 0 : index
    %375 = vector.load %arg15[%c32_101, %c0_102] : memref<64x384xf32, #tpu.memory_space<vmem>>, vector<8x384xf32>
    %376 = vector.extract_strided_slice %375 {offsets = [0, 0], sizes = [8, 128], strides = [1, 1]} : vector<8x384xf32> to vector<8x128xf32>
    %377 = vector.extract_strided_slice %374 {offsets = [0, 0], sizes = [8, 128], strides = [1, 1]} : vector<8x384xf32> to vector<8x128xf32>
    %378 = arith.addf %376, %377 : vector<8x128xf32>
    %379 = arith.negf %378 : vector<8x128xf32>
    %380 = math.exp %379 : vector<8x128xf32>
    %cst_103 = arith.constant 1.000000e+00 : f32
    %381 = vector.broadcast %cst_103 : f32 to vector<8x128xf32>
    %382 = arith.addf %381, %380 : vector<8x128xf32>
    %383 = arith.divf %381, %382 : vector<8x128xf32>
    %384 = vector.extract_strided_slice %375 {offsets = [0, 128], sizes = [8, 128], strides = [1, 1]} : vector<8x384xf32> to vector<8x128xf32>
    %385 = vector.extract_strided_slice %374 {offsets = [0, 128], sizes = [8, 128], strides = [1, 1]} : vector<8x384xf32> to vector<8x128xf32>
    %386 = arith.addf %384, %385 : vector<8x128xf32>
    %387 = arith.negf %386 : vector<8x128xf32>
    %388 = math.exp %387 : vector<8x128xf32>
    %cst_104 = arith.constant 1.000000e+00 : f32
    %389 = vector.broadcast %cst_104 : f32 to vector<8x128xf32>
    %390 = arith.addf %389, %388 : vector<8x128xf32>
    %391 = arith.divf %389, %390 : vector<8x128xf32>
    %392 = vector.extract_strided_slice %375 {offsets = [0, 256], sizes = [8, 128], strides = [1, 1]} : vector<8x384xf32> to vector<8x128xf32>
    %393 = vector.extract_strided_slice %374 {offsets = [0, 256], sizes = [8, 128], strides = [1, 1]} : vector<8x384xf32> to vector<8x128xf32>
    %394 = arith.addf %393, %259 : vector<8x128xf32>
    %395 = arith.mulf %383, %394 : vector<8x128xf32>
    %396 = arith.addf %392, %395 : vector<8x128xf32>
    %397 = math.tanh %396 : vector<8x128xf32>
    %398 = arith.subf %372, %397 : vector<8x128xf32>
    %399 = arith.mulf %391, %398 : vector<8x128xf32>
    %400 = arith.addf %397, %399 : vector<8x128xf32>
    %401 = arith.truncf %400 : vector<8x128xf32> to vector<8x128xbf16>
    %cst_105 = arith.constant dense<0.000000e+00> : vector<8x384xf32>
    %402 = tpu.matmul %401, %256, %cst_105 {dimension_numbers = #tpu.dot_dimension_numbers<[1], [0], [0], [1], [0, 0, 1, 1], [], []>} : vector<8x128xbf16>, vector<128x384xbf16>, vector<8x384xf32> -> vector<8x384xf32>
    %c40_106 = arith.constant 40 : index
    %c0_107 = arith.constant 0 : index
    %403 = vector.load %arg15[%c40_106, %c0_107] : memref<64x384xf32, #tpu.memory_space<vmem>>, vector<8x384xf32>
    %404 = vector.extract_strided_slice %403 {offsets = [0, 0], sizes = [8, 128], strides = [1, 1]} : vector<8x384xf32> to vector<8x128xf32>
    %405 = vector.extract_strided_slice %402 {offsets = [0, 0], sizes = [8, 128], strides = [1, 1]} : vector<8x384xf32> to vector<8x128xf32>
    %406 = arith.addf %404, %405 : vector<8x128xf32>
    %407 = arith.negf %406 : vector<8x128xf32>
    %408 = math.exp %407 : vector<8x128xf32>
    %cst_108 = arith.constant 1.000000e+00 : f32
    %409 = vector.broadcast %cst_108 : f32 to vector<8x128xf32>
    %410 = arith.addf %409, %408 : vector<8x128xf32>
    %411 = arith.divf %409, %410 : vector<8x128xf32>
    %412 = vector.extract_strided_slice %403 {offsets = [0, 128], sizes = [8, 128], strides = [1, 1]} : vector<8x384xf32> to vector<8x128xf32>
    %413 = vector.extract_strided_slice %402 {offsets = [0, 128], sizes = [8, 128], strides = [1, 1]} : vector<8x384xf32> to vector<8x128xf32>
    %414 = arith.addf %412, %413 : vector<8x128xf32>
    %415 = arith.negf %414 : vector<8x128xf32>
    %416 = math.exp %415 : vector<8x128xf32>
    %cst_109 = arith.constant 1.000000e+00 : f32
    %417 = vector.broadcast %cst_109 : f32 to vector<8x128xf32>
    %418 = arith.addf %417, %416 : vector<8x128xf32>
    %419 = arith.divf %417, %418 : vector<8x128xf32>
    %420 = vector.extract_strided_slice %403 {offsets = [0, 256], sizes = [8, 128], strides = [1, 1]} : vector<8x384xf32> to vector<8x128xf32>
    %421 = vector.extract_strided_slice %402 {offsets = [0, 256], sizes = [8, 128], strides = [1, 1]} : vector<8x384xf32> to vector<8x128xf32>
    %422 = arith.addf %421, %259 : vector<8x128xf32>
    %423 = arith.mulf %411, %422 : vector<8x128xf32>
    %424 = arith.addf %420, %423 : vector<8x128xf32>
    %425 = math.tanh %424 : vector<8x128xf32>
    %426 = arith.subf %400, %425 : vector<8x128xf32>
    %427 = arith.mulf %419, %426 : vector<8x128xf32>
    %428 = arith.addf %425, %427 : vector<8x128xf32>
    %429 = arith.truncf %428 : vector<8x128xf32> to vector<8x128xbf16>
    %cst_110 = arith.constant dense<0.000000e+00> : vector<8x384xf32>
    %430 = tpu.matmul %429, %256, %cst_110 {dimension_numbers = #tpu.dot_dimension_numbers<[1], [0], [0], [1], [0, 0, 1, 1], [], []>} : vector<8x128xbf16>, vector<128x384xbf16>, vector<8x384xf32> -> vector<8x384xf32>
    %c48_111 = arith.constant 48 : index
    %c0_112 = arith.constant 0 : index
    %431 = vector.load %arg15[%c48_111, %c0_112] : memref<64x384xf32, #tpu.memory_space<vmem>>, vector<8x384xf32>
    %432 = vector.extract_strided_slice %431 {offsets = [0, 0], sizes = [8, 128], strides = [1, 1]} : vector<8x384xf32> to vector<8x128xf32>
    %433 = vector.extract_strided_slice %430 {offsets = [0, 0], sizes = [8, 128], strides = [1, 1]} : vector<8x384xf32> to vector<8x128xf32>
    %434 = arith.addf %432, %433 : vector<8x128xf32>
    %435 = arith.negf %434 : vector<8x128xf32>
    %436 = math.exp %435 : vector<8x128xf32>
    %cst_113 = arith.constant 1.000000e+00 : f32
    %437 = vector.broadcast %cst_113 : f32 to vector<8x128xf32>
    %438 = arith.addf %437, %436 : vector<8x128xf32>
    %439 = arith.divf %437, %438 : vector<8x128xf32>
    %440 = vector.extract_strided_slice %431 {offsets = [0, 128], sizes = [8, 128], strides = [1, 1]} : vector<8x384xf32> to vector<8x128xf32>
    %441 = vector.extract_strided_slice %430 {offsets = [0, 128], sizes = [8, 128], strides = [1, 1]} : vector<8x384xf32> to vector<8x128xf32>
    %442 = arith.addf %440, %441 : vector<8x128xf32>
    %443 = arith.negf %442 : vector<8x128xf32>
    %444 = math.exp %443 : vector<8x128xf32>
    %cst_114 = arith.constant 1.000000e+00 : f32
    %445 = vector.broadcast %cst_114 : f32 to vector<8x128xf32>
    %446 = arith.addf %445, %444 : vector<8x128xf32>
    %447 = arith.divf %445, %446 : vector<8x128xf32>
    %448 = vector.extract_strided_slice %431 {offsets = [0, 256], sizes = [8, 128], strides = [1, 1]} : vector<8x384xf32> to vector<8x128xf32>
    %449 = vector.extract_strided_slice %430 {offsets = [0, 256], sizes = [8, 128], strides = [1, 1]} : vector<8x384xf32> to vector<8x128xf32>
    %450 = arith.addf %449, %259 : vector<8x128xf32>
    %451 = arith.mulf %439, %450 : vector<8x128xf32>
    %452 = arith.addf %448, %451 : vector<8x128xf32>
    %453 = math.tanh %452 : vector<8x128xf32>
    %454 = arith.subf %428, %453 : vector<8x128xf32>
    %455 = arith.mulf %447, %454 : vector<8x128xf32>
    %456 = arith.addf %453, %455 : vector<8x128xf32>
    %457 = arith.truncf %456 : vector<8x128xf32> to vector<8x128xbf16>
    %cst_115 = arith.constant dense<0.000000e+00> : vector<8x384xf32>
    %458 = tpu.matmul %457, %256, %cst_115 {dimension_numbers = #tpu.dot_dimension_numbers<[1], [0], [0], [1], [0, 0, 1, 1], [], []>} : vector<8x128xbf16>, vector<128x384xbf16>, vector<8x384xf32> -> vector<8x384xf32>
    %c56_116 = arith.constant 56 : index
    %c0_117 = arith.constant 0 : index
    %459 = vector.load %arg15[%c56_116, %c0_117] : memref<64x384xf32, #tpu.memory_space<vmem>>, vector<8x384xf32>
    %460 = vector.extract_strided_slice %459 {offsets = [0, 0], sizes = [8, 128], strides = [1, 1]} : vector<8x384xf32> to vector<8x128xf32>
    %461 = vector.extract_strided_slice %458 {offsets = [0, 0], sizes = [8, 128], strides = [1, 1]} : vector<8x384xf32> to vector<8x128xf32>
    %462 = arith.addf %460, %461 : vector<8x128xf32>
    %463 = arith.negf %462 : vector<8x128xf32>
    %464 = math.exp %463 : vector<8x128xf32>
    %cst_118 = arith.constant 1.000000e+00 : f32
    %465 = vector.broadcast %cst_118 : f32 to vector<8x128xf32>
    %466 = arith.addf %465, %464 : vector<8x128xf32>
    %467 = arith.divf %465, %466 : vector<8x128xf32>
    %468 = vector.extract_strided_slice %459 {offsets = [0, 128], sizes = [8, 128], strides = [1, 1]} : vector<8x384xf32> to vector<8x128xf32>
    %469 = vector.extract_strided_slice %458 {offsets = [0, 128], sizes = [8, 128], strides = [1, 1]} : vector<8x384xf32> to vector<8x128xf32>
    %470 = arith.addf %468, %469 : vector<8x128xf32>
    %471 = arith.negf %470 : vector<8x128xf32>
    %472 = math.exp %471 : vector<8x128xf32>
    %cst_119 = arith.constant 1.000000e+00 : f32
    %473 = vector.broadcast %cst_119 : f32 to vector<8x128xf32>
    %474 = arith.addf %473, %472 : vector<8x128xf32>
    %475 = arith.divf %473, %474 : vector<8x128xf32>
    %476 = vector.extract_strided_slice %459 {offsets = [0, 256], sizes = [8, 128], strides = [1, 1]} : vector<8x384xf32> to vector<8x128xf32>
    %477 = vector.extract_strided_slice %458 {offsets = [0, 256], sizes = [8, 128], strides = [1, 1]} : vector<8x384xf32> to vector<8x128xf32>
    %478 = arith.addf %477, %259 : vector<8x128xf32>
    %479 = arith.mulf %467, %478 : vector<8x128xf32>
    %480 = arith.addf %476, %479 : vector<8x128xf32>
    %481 = math.tanh %480 : vector<8x128xf32>
    %482 = arith.subf %456, %481 : vector<8x128xf32>
    %483 = arith.mulf %475, %482 : vector<8x128xf32>
    %484 = arith.addf %481, %483 : vector<8x128xf32>
    %c0_120 = arith.constant 0 : index
    %c0_121 = arith.constant 0 : index
    %485 = vector.load %arg14[%c0_120, %c0_121] : memref<8x128xf32, #tpu.memory_space<vmem>>, vector<8x128xf32>
    tpu.vector_store %arg14[%c0_120, %c0_121], %484 {strides = array<i32>} : memref<8x128xf32, #tpu.memory_space<vmem>>, vector<8x128xf32>,
    %c0_i32_122 = arith.constant 0 : i32
    %486 = arith.cmpi eq, %arg0, %c0_i32_122 : i32
    %487 = arith.extui %486 : i1 to i32
    %c0_i32_123 = arith.constant 0 : i32
    %488 = arith.cmpi ne, %487, %c0_i32_123 : i32
    scf.if %488 {
      %489 = arith.truncf %484 : vector<8x128xf32> to vector<8x128xbf16>
      %c0_124 = arith.constant 0 : index
      %c0_125 = arith.constant 0 : index
      %490 = vector.load %arg10[%c0_124, %c0_125] : memref<128x128xbf16, #tpu.memory_space<vmem>>, vector<128x128xbf16>
      %cst_126 = arith.constant dense<0.000000e+00> : vector<8x128xf32>
      %491 = tpu.matmul %489, %490, %cst_126 {dimension_numbers = #tpu.dot_dimension_numbers<[1], [0], [0], [1], [0, 0, 1, 1], [], []>} : vector<8x128xbf16>, vector<128x128xbf16>, vector<8x128xf32> -> vector<8x128xf32>
      %c0_127 = arith.constant 0 : index
      %c0_128 = arith.constant 0 : index
      %492 = vector.load %arg11[%c0_127, %c0_128] : memref<1x128xf32, #tpu.memory_space<vmem>>, vector<1x128xf32>
      %493 = vector.broadcast %492 : vector<1x128xf32> to vector<8x128xf32>
      %494 = arith.addf %491, %493 : vector<8x128xf32>
      %c0_129 = arith.constant 0 : index
      %c0_130 = arith.constant 0 : index
      %495 = vector.load %arg12[%c0_129, %c0_130] : memref<8x128xf32, #tpu.memory_space<vmem>>, vector<8x128xf32>
      tpu.vector_store %arg12[%c0_129, %c0_130], %494 {strides = array<i32>} : memref<8x128xf32, #tpu.memory_space<vmem>>, vector<8x128xf32>,
    } else {
    }
    return
  }
  func.func @transform_0(%arg0: i32) -> (i32, i32) {
    %c0_i32 = arith.constant 0 : i32
    %c0_i32_0 = arith.constant 0 : i32
    return %arg0, %c0_i32 : i32, i32
  }
  func.func @transform_1(%arg0: i32) -> (i32, i32) {
    %c0_i32 = arith.constant 0 : i32
    %c0_i32_0 = arith.constant 0 : i32
    %c0_i32_1 = arith.constant 0 : i32
    return %c0_i32, %c0_i32_0 : i32, i32
  }
  func.func @transform_2(%arg0: i32) -> (i32, i32) {
    %c0_i32 = arith.constant 0 : i32
    %c0_i32_0 = arith.constant 0 : i32
    %c0_i32_1 = arith.constant 0 : i32
    return %c0_i32, %c0_i32_0 : i32, i32
  }
  func.func @transform_3(%arg0: i32) -> (i32, i32) {
    %c0_i32 = arith.constant 0 : i32
    %c0_i32_0 = arith.constant 0 : i32
    %c0_i32_1 = arith.constant 0 : i32
    return %c0_i32, %c0_i32_0 : i32, i32
  }
  func.func @transform_4(%arg0: i32) -> (i32, i32) {
    %c0_i32 = arith.constant 0 : i32
    %c0_i32_0 = arith.constant 0 : i32
    %c0_i32_1 = arith.constant 0 : i32
    return %c0_i32, %c0_i32_0 : i32, i32
  }
  func.func @transform_5(%arg0: i32) -> (i32, i32) {
    %c0_i32 = arith.constant 0 : i32
    %c0_i32_0 = arith.constant 0 : i32
    %c0_i32_1 = arith.constant 0 : i32
    return %c0_i32, %c0_i32_0 : i32, i32
  }
  func.func @transform_6(%arg0: i32) -> (i32, i32) {
    %c0_i32 = arith.constant 0 : i32
    %c0_i32_0 = arith.constant 0 : i32
    %c0_i32_1 = arith.constant 0 : i32
    return %c0_i32, %c0_i32_0 : i32, i32
  }
  func.func @transform_7(%arg0: i32) -> (i32, i32) {
    %c0_i32 = arith.constant 0 : i32
    %c0_i32_0 = arith.constant 0 : i32
    %c0_i32_1 = arith.constant 0 : i32
    return %c0_i32, %c0_i32_0 : i32, i32
  }
  func.func @transform_8(%arg0: i32) -> (i32, i32) {
    %c0_i32 = arith.constant 0 : i32
    %c0_i32_0 = arith.constant 0 : i32
    %c0_i32_1 = arith.constant 0 : i32
    return %c0_i32, %c0_i32_0 : i32, i32
  }
  func.func @transform_9(%arg0: i32) -> (i32, i32) {
    %c0_i32 = arith.constant 0 : i32
    %c0_i32_0 = arith.constant 0 : i32
    %c0_i32_1 = arith.constant 0 : i32
    return %c0_i32, %c0_i32_0 : i32, i32
  }
  func.func @transform_10(%arg0: i32) -> (i32, i32) {
    %c0_i32 = arith.constant 0 : i32
    %c0_i32_0 = arith.constant 0 : i32
    %c0_i32_1 = arith.constant 0 : i32
    return %c0_i32, %c0_i32_0 : i32, i32
  }
  func.func @transform_11(%arg0: i32) -> (i32, i32) {
    %c0_i32 = arith.constant 0 : i32
    %c0_i32_0 = arith.constant 0 : i32
    %c0_i32_1 = arith.constant 0 : i32
    return %c0_i32, %c0_i32_0 : i32, i32
  }
}

</mosaic_0001>

<bundles_post_ra>
// kernel: gru_forward.1
= control target key start
LH: loop header
LB: loop body
LE: loop exit
PB: predicated region body
PF: predicated region fallthrough
CT: control target
= control target key end

     0   :  { %16 = vsyncpa [#allocation8], 0  ;;  %s5240_s0 = inlined_call_operand.vmem [shape: bf16[64,128], index: 0, kind: input, shape index: {}]   ;;  %s5241_s1 = inlined_call_operand.hbm [shape: bf16[128,384], index: 1, kind: input, shape index: {}]   ;;  %s5242_s2 = inlined_call_operand.hbm [shape: bf16[128,384], index: 2, kind: input, shape index: {}]   ;;  %s5243_s3 = inlined_call_operand.vmem [shape: f32[1,384], index: 3, kind: input, shape index: {}]   ;;  %s5244_s4 = inlined_call_operand.vmem [shape: f32[1,128], index: 4, kind: input, shape index: {}]   ;;  %s5245_s5 = inlined_call_operand.hbm [shape: bf16[128,384], index: 5, kind: input, shape index: {}]   ;;  %s5246_s6 = inlined_call_operand.hbm [shape: bf16[128,384], index: 6, kind: input, shape index: {}]   ;;  %s5247_s7 = inlined_call_operand.vmem [shape: f32[1,384], index: 7, kind: input, shape index: {}]   ;;  %s5248_s8 = inlined_call_operand.vmem [shape: f32[1,128], index: 8, kind: input, shape index: {}]   ;;  %s5249_s9 = inlined_call_operand.vmem [shape: bf16[128,128], index: 9, kind: input, shape index: {}]   ;;  %s5250_s10 = inlined_call_operand.vmem [shape: f32[1,128], index: 10, kind: input, shape index: {}]   ;;  %s5251_s11 = inlined_call_operand.vmem [shape: f32[8,128], index: 11, kind: output, shape index: {}]  }
   0x1   :  { %17 = vsyncpa [#allocation10], 0 }
   0x2   :  { %18 = vsyncpa [#allocation13], 0  ;;  %s4138_s17 = smov [#allocation9]   ;;  %s4139_s19 = smov [#allocation7]  }
   0x3   :  { %s38_s18 = sshll.u32 %s4138_s17, 4  ;;  %s26_s20 = sshll.u32 %s4139_s19, 4  ;;  %s39_s18 = int_to_ptr.vmem [resolvable:$true] %s38_s18  ;;  %s27_s20 = int_to_ptr.vmem [resolvable:$true] %s26_s20 }
   0x4   :  { %s4060_s21 = scalar_lea.vmem %s39_s18, 3072  ;;  %p4065_p1 = scmp.lt.s32.totalorder %s39_s18, %s39_s18 }
   0x5   :  { %p4061_p0 = scmp.ne.s32.totalorder %s39_s18, %s4060_s21  ;;  %p4066_p2 = scmp.lt.s32.totalorder %s4060_s21, %s4060_s21 }
   0x7   :  { %p4067_p3 = por %p4066_p2, %p4065_p1 }
   0x9   :  { %p4068_p4 = pnand %p4067_p3, %p4061_p0 }
   0xb   :  { %4071 = shalt.err (!%p4068_p4)
}
   0xc   :  { %s4140_s22 = smov 192   ;;  %s4141_s23 = smov 12  }
   0xd   :  { %44 = dma.hbm_to_vmem [thread:$0]  %s5242_s2, 3072, %s39_s18, [#allocation10], %s4140_s22, %s4140_s22, %s4141_s23  }
   0xe   :  { %s4080_s26 = scalar_lea.vmem %s27_s20, 3072  ;;  %p4085_p6 = scmp.lt.s32.totalorder %s27_s20, %s27_s20 }
   0xf   :  { %p4081_p5 = scmp.ne.s32.totalorder %s27_s20, %s4080_s26  ;;  %p4086_p7 = scmp.lt.s32.totalorder %s4080_s26, %s4080_s26 }
  0x11   :  { %p4087_p8 = por %p4086_p7, %p4085_p6 }
  0x13   :  { %p4088_p9 = pnand %p4087_p8, %p4081_p5 }
  0x15   :  { %4091 = shalt.err (!%p4088_p9)
}
  0x16   :  { %32 = dma.hbm_to_vmem [thread:$0]  %s5241_s1, 3072, %s27_s20, [#allocation8], %s4140_s22, %s4140_s22, %s4141_s23  }
  0x17   :  { %s4142_s29 = smov [#allocation11]   ;;  %s4143_s12 = smov [#allocation12]  }
  0x18   :  { %s54_s30 = sshll.u32 %s4142_s29, 4  ;;  %s66_s13 = sshll.u32 %s4143_s12, 4  ;;  %s55_s30 = int_to_ptr.vmem [resolvable:$true] %s54_s30  ;;  %s67_s13 = int_to_ptr.vmem [resolvable:$true] %s66_s13 }
  0x19   :  { %s4100_s2 = scalar_lea.vmem %s55_s30, 3072  ;;  %p4105_p11 = scmp.lt.s32.totalorder %s55_s30, %s55_s30 }
  0x1a   :  { %p4101_p10 = scmp.ne.s32.totalorder %s55_s30, %s4100_s2  ;;  %p4106_p12 = scmp.lt.s32.totalorder %s4100_s2, %s4100_s2 }
  0x1c   :  { %p4107_p13 = por %p4106_p12, %p4105_p11 }
  0x1e   :  { %p4108_p0 = pnand %p4107_p13, %p4101_p10 }
  0x20   :  { %4111 = shalt.err (!%p4108_p0)
}
  0x21   :  { %60 = dma.hbm_to_vmem [thread:$0]  %s5245_s5, 3072, %s55_s30, [#allocation10], %s4140_s22, %s4140_s22, %s4141_s23  }
  0x22   :  { %s4120_s1 = scalar_lea.vmem %s67_s13, 3072  ;;  %p4125_p2 = scmp.lt.s32.totalorder %s67_s13, %s67_s13 }
  0x23   :  { %p4121_p1 = scmp.ne.s32.totalorder %s67_s13, %s4120_s1  ;;  %p4126_p3 = scmp.lt.s32.totalorder %s4120_s1, %s4120_s1 }
  0x25   :  { %p4127_p4 = por %p4126_p3, %p4125_p2 }
  0x27   :  { %p4128_p5 = pnand %p4127_p4, %p4121_p1 }
  0x29   :  { %4131 = shalt.err (!%p4128_p5)
}
  0x2a   :  { %72 = dma.hbm_to_vmem [thread:$0]  %s5246_s6, 3072, %s67_s13, [#allocation13], %s4140_s22, %s4140_s22, %s4141_s23  }
  0x2b   :  { %4132 = dma.done.wait [#allocation8], 3072  }
  0x2c   :  { %4133 = vsyncadd [#allocation8], 4294964224 }
  0x2d   :  { %4134 = dma.done.wait [#allocation10], 6144  }
  0x2e   :  { %4135 = vsyncadd [#allocation10], 4294961152 }
  0x2f   :  { %4136 = dma.done.wait [#allocation13], 3072  }
  0x30   :  { %4137 = vsyncadd [#allocation13], 4294964224  ;;  %v5257_v0 = vmov 0   ;;  %v3705_v1 = vld [vmem:[#allocation7 + $0xac] ss:$12 sps:$4 sm:$0xff]   ;;  %v3731_v12 = vld [vmem:[%s5240_s0] sm:$0xff]   ;;  %v142_v55 = vlaneseq }
  0x31   :  { %341 = vmatprep.mubr.bf16.mxu0 %v5257_v0  ;;  %v3707_v2 = vld [vmem:[#allocation7 + $0xa8] ss:$12 sps:$4 sm:$0xff]   ;;  %309 = vmatprep.subr.bf16.mxu0 %v3705_v1  ;;  %v3710_v4 = vld [vmem:[#allocation7 + $0x90] ss:$12 sps:$4 sm:$0xff]   ;;  %v3713_v6 = vld [vmem:[#allocation7 + $0x78] ss:$12 sps:$4 sm:$0xff]  }
  0x32   :  { %v3708_v3 = vld [vmem:[#allocation7 + $0x94] ss:$12 sps:$4 sm:$0xff]   ;;  %310 = vmatpush1.bf16.msra.mxu0 %v3707_v2  ;;  %v3711_v5 = vld [vmem:[#allocation7 + $0x7c] ss:$12 sps:$4 sm:$0xff]   ;;  %v3714_v7 = vld [vmem:[#allocation7 + $0x64] ss:$12 sps:$4 sm:$0xff]   ;;  %3323 = vmatprep.mubr.bf16.mxu1 %v3731_v12 }
  0x33   :  { %311 = vmatprep.subr.bf16.mxu0 %v3708_v3  ;;  %v3726_v8 = vld [vmem:[#allocation7 + $0xb0] ss:$12 sps:$4 sm:$0xff]   ;;  %v3716_v9 = vld [vmem:[#allocation7 + $0x60] ss:$12 sps:$4 sm:$0xff]   ;;  %v3730_v11 = vld [vmem:[#allocation7 + $0x98] ss:$12 sps:$4 sm:$0xff]  }
  0x34   :  { %v3717_v10 = vld [vmem:[#allocation7 + $0x4c] ss:$12 sps:$4 sm:$0xff]   ;;  %3307 = vmatprep.subr.bf16.mxu1 %v3726_v8  ;;  %v3719_v13 = vld [vmem:[#allocation7 + $0x48] ss:$12 sps:$4 sm:$0xff]   ;;  %v3722_v17 = vld [vmem:[#allocation7 + $0x30] ss:$12 sps:$4 sm:$0xff]  }
  0x35   :  { %3308 = vmatpush3.bf16.msra.mxu1 %v3726_v8  ;;  %v3735_v14 = vld [vmem:[#allocation7 + $0x80] ss:$12 sps:$4 sm:$0xff]   ;;  %v3739_v16 = vld [vmem:[#allocation7 + $0x68] ss:$12 sps:$4 sm:$0xff]   ;;  %v3744_v19 = vld [vmem:[#allocation7 + $0x50] ss:$12 sps:$4 sm:$0xff]  }
  0x36   :  { %312 = vmatpush1.bf16.msra.mxu0 %v3710_v4  ;;  %3309 = vmatprep.subr.bf16.mxu1 %v3730_v11  ;;  %v3720_v15 = vld [vmem:[#allocation7 + $0x34] ss:$12 sps:$4 sm:$0xff]   ;;  %v3723_v18 = vld [vmem:[#allocation7 + $0x1c] ss:$12 sps:$4 sm:$0xff]   ;;  %v3725_v20 = vld [vmem:[#allocation7 + $0x18] ss:$12 sps:$4 sm:$0xff]  }
  0x37   :  { %313 = vmatprep.subr.bf16.mxu0 %v3711_v5  ;;  %v3727_v21 = vld [vmem:[#allocation7 + $0x4] ss:$12 sps:$4 sm:$0xff]   ;;  %v3729_v23 = vld [vmem:[#allocation7] ss:$12 sps:$4 sm:$0xff]   ;;  %v4238_v26 = vld [vmem:[#allocation9 + $0xa8] ss:$12 sps:$4 sm:$0xff]  }
  0x38   :  { %v3748_v22 = vld [vmem:[#allocation7 + $0x38] ss:$12 sps:$4 sm:$0xff]   ;;  %v3753_v25 = vld [vmem:[#allocation7 + $0x20] ss:$12 sps:$4 sm:$0xff]   ;;  %v3757_v28 = vld [vmem:[#allocation7 + $0x8] ss:$12 sps:$4 sm:$0xff]  }
  0x39   :  { %3310 = vmatpush3.bf16.msra.mxu1 %v3730_v11  ;;  %v4236_v24 = vld [vmem:[#allocation9 + $0xac] ss:$12 sps:$4 sm:$0xff]   ;;  %v4241_v27 = vld [vmem:[#allocation9 + $0x94] ss:$12 sps:$4 sm:$0xff]   ;;  %v4244_v29 = vld [vmem:[#allocation9 + $0x90] ss:$12 sps:$4 sm:$0xff]  }
  0x3a   :  { %314 = vmatpush1.bf16.msra.mxu0 %v3713_v6  ;;  %3311 = vmatprep.subr.bf16.mxu1 %v3735_v14  ;;  %v4248_v30 = vld [vmem:[#allocation9 + $0x7c] ss:$12 sps:$4 sm:$0xff]   ;;  %v4254_v32 = vld [vmem:[#allocation9 + $0x78] ss:$12 sps:$4 sm:$0xff]   ;;  %v4259_v34 = vld [vmem:[#allocation9 + $0x60] ss:$12 sps:$4 sm:$0xff]  }
  0x3b   :  { %315 = vmatprep.subr.bf16.mxu0 %v3714_v7  ;;  %v3740_v31 = vld [vmem:[%s5240_s0 + $0x8] sm:$0xff]   ;;  %v4257_v33 = vld [vmem:[#allocation9 + $0x64] ss:$12 sps:$4 sm:$0xff]   ;;  %v5259_v38 = vmov 0.0   ;;  %v4277_v41 = vld [vmem:[#allocation9 + $0x34] ss:$12 sps:$4 sm:$0xff]  }
  0x3c   :  { %v3749_v35 = vld [vmem:[%s5240_s0 + $0x10] sm:$0xff]   ;;  %v4266_v37 = vld [vmem:[#allocation9 + $0x4c] ss:$12 sps:$4 sm:$0xff]   ;;  %v4290_v45 = vld [vmem:[#allocation9 + $0x1c] ss:$12 sps:$4 sm:$0xff]   ;;  %vm4146_vm0 = vmmov 0  }
  0x3d   :  { %3312 = vmatpush3.bf16.msra.mxu1 %v3735_v14  ;;  %v4264_v36 = vld [vmem:[#allocation9 + $0xb0] ss:$12 sps:$4 sm:$0xff]   ;;  %v4271_v39 = vld [vmem:[#allocation9 + $0x98] ss:$12 sps:$4 sm:$0xff]   ;;  %v4274_v40 = vld [vmem:[#allocation9 + $0x48] ss:$12 sps:$4 sm:$0xff]  }
  0x3e   :  { %316 = vmatpush1.bf16.msra.mxu0 %v3716_v9  ;;  %3313 = vmatprep.subr.bf16.mxu1 %v3739_v16  ;;  %v4281_v42 = vld [vmem:[#allocation9 + $0x80] ss:$12 sps:$4 sm:$0xff]   ;;  %v3758_v43 = vld [vmem:[%s5240_s0 + $0x18] sm:$0xff]   ;;  %v4295_v46 = vld [vmem:[#allocation9 + $0x68] ss:$12 sps:$4 sm:$0xff]   ;;  %v5255_v53 = vmov 0.0|0.0  }
  0x3f   :  { %317 = vmatprep.subr.bf16.mxu0 %v3717_v10  ;;  %v4287_v44 = vld [vmem:[#allocation9 + $0x30] ss:$12 sps:$4 sm:$0xff]   ;;  %v4298_v47 = vld [vmem:[#allocation9 + $0x18] ss:$12 sps:$4 sm:$0xff]   ;;  %v4310_v50 = vld [vmem:[#allocation9] ss:$12 sps:$4 sm:$0xff]  }
  0x40   :  { %v4303_v48 = vld [vmem:[#allocation9 + $0x4] ss:$12 sps:$4 sm:$0xff]   ;;  %v4322_v52 = vld [vmem:[#allocation9 + $0x20] ss:$12 sps:$4 sm:$0xff]   ;;  %v4332_v54 = vld [vmem:[#allocation9 + $0x8] ss:$12 sps:$4 sm:$0xff]  }
  0x41   :  { %3314 = vmatpush3.bf16.msra.mxu1 %v3739_v16  ;;  %v4307_v49 = vld [vmem:[#allocation9 + $0x50] ss:$12 sps:$4 sm:$0xff]   ;;  %v4316_v51 = vld [vmem:[#allocation9 + $0x38] ss:$12 sps:$4 sm:$0xff]   ;;  %v4370_v56 = vshrl.u32 %v142_v55, 7 }
  0x42   :  { %318 = vmatpush1.bf16.msra.mxu0 %v3719_v13  ;;  %3315 = vmatprep.subr.bf16.mxu1 %v3744_v19  ;;  %v140_v58 = vld [vmem:[%s5243_s3] sm:$0x7] }
  0x43   :  { %319 = vmatprep.subr.bf16.mxu0 %v3720_v15  ;;  %5263 = vst [vmem:[#allocation17_spill] sm:$0xff] %v4370_v56  ;;  %v5254_v57 = vsub.s32 0, %v4370_v56  ;;  %v5253_v60 = vsub.s32 1, %v4370_v56  ;;  %v5252_v63 = vsub.s32 2, %v4370_v56 }
  0x45   :  { %3316 = vmatpush3.bf16.msra.mxu1 %v3744_v19  ;;  %v145_v62 = vrot.slane %v140_v58, %v5254_v57  ;;  %v149_v2 = vrot.slane %v140_v58, %v5253_v60  ;;  %v4388_v6 = vrot.slane %v140_v58, %v5252_v63 }
  0x46   :  { %320 = vmatpush1.bf16.msra.mxu0 %v3722_v17  ;;  %3317 = vmatprep.subr.bf16.mxu1 %v3748_v22 }
  0x47   :  { %321 = vmatprep.subr.bf16.mxu0 %v3723_v18 }
  0x49   :  { %3318 = vmatpush3.bf16.msra.mxu1 %v3748_v22 }
  0x4a   :  { %322 = vmatpush1.bf16.msra.mxu0 %v3725_v20  ;;  %3319 = vmatprep.subr.bf16.mxu1 %v3753_v25 }
  0x4b   :  { %323 = vmatprep.subr.bf16.mxu0 %v3727_v21 }
  0x4d   :  { %3320 = vmatpush3.bf16.msra.mxu1 %v3753_v25 }
  0x4e   :  { %324 = vmatpush1.bf16.msra.mxu0 %v3729_v23  ;;  %3321 = vmatprep.subr.bf16.mxu1 %v3757_v28 }
  0x4f   :  { %640 = vmatprep.subr.bf16.mxu0 %v4236_v24 }
  0x51   :  { %342 = vmatmul.mubr.bf16.vlgmr.msra.gmra.mxu0 %v3731_v12  ;;  %3322 = vmatpush3.bf16.msra.mxu1 %v3757_v28 }
  0x52   :  { %641 = vmatpush1.bf16.msra.mxu0 %v4238_v26  ;;  %351 = vmatprep.mubr.bf16.mxu0 %v5257_v0 }
  0x53   :  { %642 = vmatprep.subr.bf16.mxu0 %v4241_v27  ;;  %3331 = vmatprep.subr.bf16.mxu1 %v5259_v38 }
  0x54   :  { %3324 = vmatmul.mubr.bf16.vlgmr.msra.gmra.mxu1 %v3740_v31 }
  0x55   :  { %3332 = vmatpush3.bf16.msra.mxu1 %v4264_v36  ;;  %3327 = vmatprep.mubr.bf16.mxu1 %v3749_v35 }
  0x56   :  { %643 = vmatpush1.bf16.msra.mxu0 %v4244_v29  ;;  %3333 = vmatprep.subr.bf16.mxu1 %v5259_v38 }
  0x57   :  { %644 = vmatprep.subr.bf16.mxu0 %v4248_v30 }
  0x59   :  { %352 = vmatmul.mubr.bf16.gmra.mxu0 %v3740_v31  ;;  %3334 = vmatpush3.bf16.msra.mxu1 %v4271_v39 }
  0x5a   :  { %645 = vmatpush1.bf16.msra.mxu0 %v4254_v32  ;;  %361 = vmatprep.mubr.bf16.mxu0 %v5257_v0 }
  0x5b   :  { %646 = vmatprep.subr.bf16.mxu0 %v4257_v33  ;;  %3335 = vmatprep.subr.bf16.mxu1 %v5259_v38 }
  0x5c   :  { %3328 = vmatmul.mubr.bf16.gmra.mxu1 %v3758_v43 }
  0x5d   :  { %3336 = vmatpush3.bf16.msra.mxu1 %v4281_v42  ;;  %3347 = vmatprep.mubr.msk.bf16.mxu1 %vm4146_vm0, %v5259_v38 }
  0x5e   :  { %647 = vmatpush1.bf16.msra.mxu0 %v4259_v34  ;;  %3337 = vmatprep.subr.bf16.mxu1 %v5259_v38 }
  0x5f   :  { %648 = vmatprep.subr.bf16.mxu0 %v4266_v37 }
  0x61   :  { %362 = vmatmul.mubr.bf16.gmra.mxu0 %v3749_v35  ;;  %3338 = vmatpush3.bf16.msra.mxu1 %v4295_v46 }
  0x62   :  { %649 = vmatpush1.bf16.msra.mxu0 %v4274_v40  ;;  %371 = vmatprep.mubr.bf16.mxu0 %v5257_v0 }
  0x63   :  { %650 = vmatprep.subr.bf16.mxu0 %v4277_v41  ;;  %3339 = vmatprep.subr.bf16.mxu1 %v5259_v38 }
  0x65   :  { %3340 = vmatpush3.bf16.msra.mxu1 %v4307_v49 }
  0x66   :  { %651 = vmatpush1.bf16.msra.mxu0 %v4287_v44  ;;  %3341 = vmatprep.subr.bf16.mxu1 %v5259_v38 }
  0x67   :  { %652 = vmatprep.subr.bf16.mxu0 %v4290_v45 }
  0x69   :  { %372 = vmatmul.mubr.bf16.gmra.mxu0 %v3758_v43  ;;  %3342 = vmatpush3.bf16.msra.mxu1 %v4316_v51 }
  0x6a   :  { %653 = vmatpush1.bf16.msra.mxu0 %v4298_v47  ;;  %672 = vmatprep.mubr.bf16.mxu0 %v5257_v0 }
  0x6b   :  { %654 = vmatprep.subr.bf16.mxu0 %v4303_v48  ;;  %3343 = vmatprep.subr.bf16.mxu1 %v5259_v38 }
  0x6d   :  { %3344 = vmatpush3.bf16.msra.mxu1 %v4322_v52 }
  0x6e   :  { %655 = vmatpush1.bf16.msra.mxu0 %v4310_v50  ;;  %3345 = vmatprep.subr.bf16.mxu1 %v5259_v38 }
  0x6f   :  { %747 = vmatprep.subr.bf16.mxu0 %v4236_v24 }
  0x71   :  { %673 = vmatmul.mubr.bf16.vlgmr.msra.gmra.mxu0 %v5255_v53  ;;  %3346 = vmatpush3.bf16.msra.mxu1 %v4332_v54 }
  0x72   :  { %748 = vmatpush1.bf16.msra.mxu0 %v4238_v26  ;;  %779 = vmatprep.mubr.bf16.mxu0 %v5257_v0 }
  0x73   :  { %749 = vmatprep.subr.bf16.mxu0 %v4241_v27  ;;  %3351 = vmatprep.subr.bf16.mxu1 %v5259_v38 }
  0x74   :  { %3348 = vmatmul.mubr.bf16.vlgmr.msra.gmra.mxu1 %v5255_v53 }
  0x75   :  { %3352 = vmatpush3.bf16.msra.mxu1 %v4264_v36  ;;  %3367 = vmatprep.mubr.msk.bf16.mxu1 %vm4146_vm0, %v5259_v38 }
  0x76   :  { %750 = vmatpush1.bf16.msra.mxu0 %v4244_v29  ;;  %3353 = vmatprep.subr.bf16.mxu1 %v5259_v38 }
  0x77   :  { %751 = vmatprep.subr.bf16.mxu0 %v4248_v30 }
  0x79   :  { %3354 = vmatpush3.bf16.msra.mxu1 %v4271_v39 }
  0x7a   :  { %752 = vmatpush1.bf16.msra.mxu0 %v4254_v32  ;;  %3355 = vmatprep.subr.bf16.mxu1 %v5259_v38 }
  0x7b   :  { %753 = vmatprep.subr.bf16.mxu0 %v4257_v33 }
  0x7d   :  { %3356 = vmatpush3.bf16.msra.mxu1 %v4281_v42 }
  0x7e   :  { %754 = vmatpush1.bf16.msra.mxu0 %v4259_v34  ;;  %3357 = vmatprep.subr.bf16.mxu1 %v5259_v38 }
  0x7f   :  { %755 = vmatprep.subr.bf16.mxu0 %v4266_v37 }
  0x81   :  { %3358 = vmatpush3.bf16.msra.mxu1 %v4295_v46 }
  0x82   :  { %756 = vmatpush1.bf16.msra.mxu0 %v4274_v40  ;;  %3359 = vmatprep.subr.bf16.mxu1 %v5259_v38 }
  0x83   :  { %757 = vmatprep.subr.bf16.mxu0 %v4277_v41 }
  0x85   :  { %3360 = vmatpush3.bf16.msra.mxu1 %v4307_v49 }
  0x86   :  { %758 = vmatpush1.bf16.msra.mxu0 %v4287_v44  ;;  %3361 = vmatprep.subr.bf16.mxu1 %v5259_v38 }
  0x87   :  { %759 = vmatprep.subr.bf16.mxu0 %v4290_v45 }
  0x89   :  { %3362 = vmatpush3.bf16.msra.mxu1 %v4316_v51 }
  0x8a   :  { %760 = vmatpush1.bf16.msra.mxu0 %v4298_v47  ;;  %3363 = vmatprep.subr.bf16.mxu1 %v5259_v38 }
  0x8b   :  { %761 = vmatprep.subr.bf16.mxu0 %v4303_v48 }
  0x8d   :  { %3364 = vmatpush3.bf16.msra.mxu1 %v4322_v52 }
  0x8e   :  { %762 = vmatpush1.bf16.msra.mxu0 %v4310_v50  ;;  %3365 = vmatprep.subr.bf16.mxu1 %v5259_v38 }
  0x8f   :  { %854 = vmatprep.subr.bf16.mxu0 %v4236_v24 }
  0x91   :  { %3366 = vmatpush3.bf16.msra.mxu1 %v4332_v54 }
  0x92   :  { %3371 = vmatprep.subr.bf16.mxu1 %v5259_v38 }
 0x111   :  { %v343_v59 = vpop.f32.mrf.mxu0 }
 0x112   :  { %v344_v63 = vadd.f32 %v343_v59, %v145_v62  ;;  %v4438_v59 = vld [vmem:[%s5244_s4] ss:$0 sm:$0xff] }
 0x113   :  { %v345_v61 = vpop.f32.mrf.mxu0 }
 0x114   :  { %v3325_v10 = vpop.f32.mrf.mxu1  ;;  %v346_v38 = vadd.f32 %v345_v61, %v149_v2 }
 0x115   :  { %v347_v1 = vpop.f32.mrf.mxu0  ;;  %v4395_v12 = vadd.f32 %v3325_v10, %v4388_v6 }
 0x116   :  { %v4382_v3 = vadd.f32 %v347_v1, %v145_v62  ;;  %v416_v14 = vpop.f32.mrf.mxu1 }
 0x117   :  { %v349_v4 = vpop.f32.mrf.mxu0  ;;  %v417_v61 = vadd.f32 %v416_v14, %v4388_v6  ;;  %v5269_v14 = vmov 0  }
 0x118   :  { %v4384_v5 = vadd.f32 %v349_v4, %v149_v2  ;;  %v3326_v17 = vpop.f32.mrf.mxu1 }
 0x119   :  { %v353_v7 = vpop.f32.mrf.mxu0  ;;  %v4402_v19 = vadd.f32 %v3326_v17, %v4388_v6 }
 0x11a   :  { %v4390_v8 = vadd.f32 %v353_v7, %v145_v62  ;;  %v419_v21 = vpop.f32.mrf.mxu1 }
 0x11b   :  { %v355_v9 = vpop.f32.mrf.mxu0  ;;  %v4407_v23 = vadd.f32 %v419_v21, %v4388_v6 }
 0x11c   :  { %v4392_v11 = vadd.f32 %v355_v9, %v149_v2  ;;  %v3329_v28 = vpop.f32.mrf.mxu1 }
 0x11d   :  { %v357_v13 = vpop.f32.mrf.mxu0  ;;  %v4412_v35 = vadd.f32 %v3329_v28, %v4388_v6 }
 0x11e   :  { %v4397_v15 = vadd.f32 %v357_v13, %v145_v62  ;;  %v432_v55 = vpop.f32.mrf.mxu1 }
 0x11f   :  { %v359_v16 = vpop.f32.mrf.mxu0  ;;  %5264 = vst [vmem:[#allocation18_spill] sm:$0xff] %v4412_v35  ;;  %v4417_v1 = vadd.f32 %v432_v55, %v4388_v6 }
 0x120   :  { %v4399_v18 = vadd.f32 %v359_v16, %v149_v2  ;;  %v3330_v7 = vpop.f32.mrf.mxu1 }
 0x121   :  { %v363_v20 = vpop.f32.mrf.mxu0  ;;  %v4422_v10 = vadd.f32 %v3330_v7, %v4388_v6 }
 0x122   :  { %v4404_v22 = vadd.f32 %v363_v20, %v145_v62  ;;  %v435_v16 = vpop.f32.mrf.mxu1 }
 0x123   :  { %v365_v25 = vpop.f32.mrf.mxu0  ;;  %5265 = vst [vmem:[#allocation19_spill] sm:$0xff] %v4422_v10  ;;  %v4427_v20 = vadd.f32 %v435_v16, %v4388_v6  ;;  %v5268_v6 = vmov 0.0  }
 0x124   :  { %v4409_v31 = vadd.f32 %v365_v25, %v149_v2 }
 0x125   :  { %v367_v43 = vpop.f32.mrf.mxu0 }
 0x126   :  { %v4414_v58 = vadd.f32 %v367_v43, %v145_v62 }
 0x127   :  { %v369_v4 = vpop.f32.mrf.mxu0 }
 0x128   :  { %v4419_v9 = vadd.f32 %v369_v4, %v149_v2 }
 0x129   :  { %v373_v13 = vpop.f32.mrf.mxu0 }
 0x12a   :  { %v4424_v17 = vadd.f32 %v373_v13, %v145_v62 }
 0x12b   :  { %v375_v21 = vpop.f32.mrf.mxu0 }
 0x12c   :  { %v4429_v25 = vadd.f32 %v375_v21, %v149_v2 }
 0x12d   :  { %v377_v28 = vpop.f32.mrf.mxu0 }
 0x12e   :  { %5266 = vst [vmem:[#allocation20_spill] sm:$0xff] %v4429_v25  ;;  %v4431_v43 = vadd.f32 %v377_v28, %v145_v62 }
 0x12f   :  { %v379_v55 = vpop.f32.mrf.mxu0 }
 0x130   :  { %5267 = vst [vmem:[#allocation21_spill] sm:$0xff] %v4431_v43  ;;  %v4433_v4 = vadd.f32 %v379_v55, %v149_v2 }
 0x131   :  { %v674_v60 = vpop.f32.mrf.mxu0 }
 0x132   :  { %v724_v7 = vadd.f32 %v674_v60, %v344_v63 }
 0x133   :  { %v676_v57 = vpop.f32.mrf.mxu0 }
 0x134   :  { %v3040_v53 = vmul.f32 -1.442695, %v724_v7  ;;  %v715_v16 = vpop.f32.mrf.mxu1  ;;  %v731_v56 = vadd.f32 %v676_v57, %v346_v38 }
 0x135   :  { %v678_v0 = vpop.f32.mrf.mxu0 }
 0x136   :  { %3845 = vpow2.f32 %v3040_v53  ;;  %v3349_v10 = vpop.f32.mrf.mxu1  ;;  %v3041_v35 = vmul.f32 -1.442695, %v731_v56  ;;  %v738_v0 = vadd.f32 %v4438_v59, %v715_v16 }
 0x137   :  { %v679_v13 = vpop.f32.mrf.mxu0 }
 0x138   :  { %v718_v21 = vpop.f32.mrf.mxu1  ;;  %3847 = vpow2.f32 %v3041_v35 }
 0x13a   :  { %v3350_v25 = vpop.f32.mrf.mxu1 }
 0x143   :  { %v3846_v28 = vpop.eup %3845 }
 0x144   :  { %v728_v43 = vadd.f32 1.0, %v3846_v28 }
 0x145   :  { %v3848_v53 = vpop.eup %3847 }
 0x146   :  { %3849 = vrcp.f32 %v728_v43  ;;  %v735_v57 = vadd.f32 1.0, %v3848_v53 }
 0x153   :  { %v3850_v60 = vpop.eup %3849 }
 0x154   :  { %v739_v38 = vmul.f32 %v3850_v60, %v738_v0 }
 0x156   :  { %v740_v62 = vadd.f32 %v739_v38, %v417_v61 }
 0x158   :  { %3851 = vtanh.f32 %v740_v62 }
 0x159   :  { %3853 = vrcp.f32 %v735_v57 }
 0x165   :  { %v3852_v56 = vpop.eup %3851 }
 0x166   :  { %v742_v63 = vsub.f32 0.0, %v3852_v56  ;;  %v3854_v2 = vpop.eup %3853 }
 0x168   :  { %v743_v35 = vmul.f32 %v3854_v2, %v742_v63 }
 0x16a   :  { %v4442_v10 = vadd.f32 %v3852_v56, %v743_v35 }
 0x16c   :  { %v746_v25 = vpack.c.bf16 %v4442_v10, %v4442_v10 }
 0x16e   :  { %780 = vmatmul.mubr.bf16.vlgmr.msra.gmra.mxu0 %v746_v25  ;;  %3368 = vmatmul.mubr.bf16.vlgmr.msra.gmra.mxu1 %v746_v25 }
 0x16f   :  { %855 = vmatpush1.bf16.msra.mxu0 %v4238_v26  ;;  %3372 = vmatpush3.bf16.msra.mxu1 %v4264_v36 }
 0x170   :  { %856 = vmatprep.subr.bf16.mxu0 %v4241_v27  ;;  %3373 = vmatprep.subr.bf16.mxu1 %v5268_v6 }
 0x171   :  { %886 = vmatprep.mubr.bf16.mxu0 %v5269_v14  ;;  %3387 = vmatprep.mubr.msk.bf16.mxu1 %vm4146_vm0, %v5268_v6 }
 0x173   :  { %857 = vmatpush1.bf16.msra.mxu0 %v4244_v29  ;;  %3374 = vmatpush3.bf16.msra.mxu1 %v4271_v39 }
 0x174   :  { %858 = vmatprep.subr.bf16.mxu0 %v4248_v30  ;;  %3375 = vmatprep.subr.bf16.mxu1 %v5268_v6 }
 0x177   :  { %859 = vmatpush1.bf16.msra.mxu0 %v4254_v32  ;;  %3376 = vmatpush3.bf16.msra.mxu1 %v4281_v42 }
 0x178   :  { %860 = vmatprep.subr.bf16.mxu0 %v4257_v33  ;;  %3377 = vmatprep.subr.bf16.mxu1 %v5268_v6 }
 0x17b   :  { %861 = vmatpush1.bf16.msra.mxu0 %v4259_v34  ;;  %3378 = vmatpush3.bf16.msra.mxu1 %v4295_v46 }
 0x17c   :  { %862 = vmatprep.subr.bf16.mxu0 %v4266_v37  ;;  %3379 = vmatprep.subr.bf16.mxu1 %v5268_v6 }
 0x17f   :  { %863 = vmatpush1.bf16.msra.mxu0 %v4274_v40  ;;  %3380 = vmatpush3.bf16.msra.mxu1 %v4307_v49 }
 0x180   :  { %864 = vmatprep.subr.bf16.mxu0 %v4277_v41  ;;  %3381 = vmatprep.subr.bf16.mxu1 %v5268_v6 }
 0x183   :  { %865 = vmatpush1.bf16.msra.mxu0 %v4287_v44  ;;  %3382 = vmatpush3.bf16.msra.mxu1 %v4316_v51 }
 0x184   :  { %866 = vmatprep.subr.bf16.mxu0 %v4290_v45  ;;  %3383 = vmatprep.subr.bf16.mxu1 %v5268_v6 }
 0x187   :  { %867 = vmatpush1.bf16.msra.mxu0 %v4298_v47  ;;  %3384 = vmatpush3.bf16.msra.mxu1 %v4322_v52 }
 0x188   :  { %868 = vmatprep.subr.bf16.mxu0 %v4303_v48  ;;  %3385 = vmatprep.subr.bf16.mxu1 %v5268_v6 }
 0x18b   :  { %869 = vmatpush1.bf16.msra.mxu0 %v4310_v50  ;;  %3386 = vmatpush3.bf16.msra.mxu1 %v4332_v54 }
 0x18c   :  { %961 = vmatprep.subr.bf16.mxu0 %v4236_v24  ;;  %3391 = vmatprep.subr.bf16.mxu1 %v5268_v6 }
 0x22e   :  { %v781_v43 = vpop.f32.mrf.mxu0  ;;  %v822_v55 = vpop.f32.mrf.mxu1 }
 0x22f   :  { %v831_v7 = vadd.f32 %v781_v43, %v4382_v3  ;;  %v845_v63 = vadd.f32 %v4438_v59, %v822_v55 }
 0x230   :  { %v783_v13 = vpop.f32.mrf.mxu0  ;;  %v3369_v16 = vpop.f32.mrf.mxu1 }
 0x231   :  { %v3042_v21 = vmul.f32 -1.442695, %v831_v7  ;;  %v838_v61 = vadd.f32 %v783_v13, %v4384_v5 }
 0x232   :  { %v785_v28 = vpop.f32.mrf.mxu0  ;;  %v825_v0 = vpop.f32.mrf.mxu1 }
 0x233   :  { %3855 = vpow2.f32 %v3042_v21  ;;  %v3043_v38 = vmul.f32 -1.442695, %v838_v61 }
 0x234   :  { %v786_v53 = vpop.f32.mrf.mxu0  ;;  %v3370_v60 = vpop.f32.mrf.mxu1 }
 0x235   :  { %3857 = vpow2.f32 %v3043_v38 }
 0x240   :  { %v3856_v57 = vpop.eup %3855 }
 0x241   :  { %v835_v62 = vadd.f32 1.0, %v3856_v57 }
 0x242   :  { %v3858_v56 = vpop.eup %3857 }
 0x243   :  { %3859 = vrcp.f32 %v835_v62  ;;  %v842_v25 = vadd.f32 1.0, %v3858_v56 }
 0x250   :  { %v3860_v2 = vpop.eup %3859 }
 0x251   :  { %v846_v3 = vmul.f32 %v3860_v2, %v845_v63 }
 0x253   :  { %v847_v35 = vadd.f32 %v846_v3, %v4407_v23 }
 0x255   :  { %3861 = vtanh.f32 %v847_v35 }
 0x256   :  { %3863 = vrcp.f32 %v842_v25 }
 0x262   :  { %v3862_v43 = vpop.eup %3861 }
 0x263   :  { %v849_v7 = vsub.f32 %v4442_v10, %v3862_v43  ;;  %v3864_v16 = vpop.eup %3863 }
 0x265   :  { %v850_v5 = vmul.f32 %v3864_v16, %v849_v7 }
 0x267   :  { %v4486_v13 = vadd.f32 %v3862_v43, %v850_v5 }
 0x269   :  { %v853_v21 = vpack.c.bf16 %v4486_v13, %v4486_v13 }
 0x26b   :  { %887 = vmatmul.mubr.bf16.vlgmr.msra.gmra.mxu0 %v853_v21  ;;  %3388 = vmatmul.mubr.bf16.vlgmr.msra.gmra.mxu1 %v853_v21 }
 0x26c   :  { %962 = vmatpush1.bf16.msra.mxu0 %v4238_v26  ;;  %3392 = vmatpush3.bf16.msra.mxu1 %v4264_v36 }
 0x26d   :  { %963 = vmatprep.subr.bf16.mxu0 %v4241_v27  ;;  %3393 = vmatprep.subr.bf16.mxu1 %v5268_v6 }
 0x26e   :  { %993 = vmatprep.mubr.bf16.mxu0 %v5269_v14  ;;  %3407 = vmatprep.mubr.msk.bf16.mxu1 %vm4146_vm0, %v5268_v6 }
 0x270   :  { %964 = vmatpush1.bf16.msra.mxu0 %v4244_v29  ;;  %3394 = vmatpush3.bf16.msra.mxu1 %v4271_v39 }
 0x271   :  { %965 = vmatprep.subr.bf16.mxu0 %v4248_v30  ;;  %3395 = vmatprep.subr.bf16.mxu1 %v5268_v6 }
 0x274   :  { %966 = vmatpush1.bf16.msra.mxu0 %v4254_v32  ;;  %3396 = vmatpush3.bf16.msra.mxu1 %v4281_v42 }
 0x275   :  { %967 = vmatprep.subr.bf16.mxu0 %v4257_v33  ;;  %3397 = vmatprep.subr.bf16.mxu1 %v5268_v6 }
 0x278   :  { %968 = vmatpush1.bf16.msra.mxu0 %v4259_v34  ;;  %3398 = vmatpush3.bf16.msra.mxu1 %v4295_v46 }
 0x279   :  { %969 = vmatprep.subr.bf16.mxu0 %v4266_v37  ;;  %3399 = vmatprep.subr.bf16.mxu1 %v5268_v6 }
 0x27c   :  { %970 = vmatpush1.bf16.msra.mxu0 %v4274_v40  ;;  %3400 = vmatpush3.bf16.msra.mxu1 %v4307_v49 }
 0x27d   :  { %971 = vmatprep.subr.bf16.mxu0 %v4277_v41  ;;  %3401 = vmatprep.subr.bf16.mxu1 %v5268_v6 }
 0x280   :  { %972 = vmatpush1.bf16.msra.mxu0 %v4287_v44  ;;  %3402 = vmatpush3.bf16.msra.mxu1 %v4316_v51 }
 0x281   :  { %973 = vmatprep.subr.bf16.mxu0 %v4290_v45  ;;  %3403 = vmatprep.subr.bf16.mxu1 %v5268_v6 }
 0x284   :  { %974 = vmatpush1.bf16.msra.mxu0 %v4298_v47  ;;  %3404 = vmatpush3.bf16.msra.mxu1 %v4322_v52 }
 0x285   :  { %975 = vmatprep.subr.bf16.mxu0 %v4303_v48  ;;  %3405 = vmatprep.subr.bf16.mxu1 %v5268_v6 }
 0x288   :  { %976 = vmatpush1.bf16.msra.mxu0 %v4310_v50  ;;  %3406 = vmatpush3.bf16.msra.mxu1 %v4332_v54 }
 0x289   :  { %1068 = vmatprep.subr.bf16.mxu0 %v4236_v24  ;;  %3411 = vmatprep.subr.bf16.mxu1 %v5268_v6 }
 0x32b   :  { %v888_v23 = vpop.f32.mrf.mxu0  ;;  %v929_v55 = vpop.f32.mrf.mxu1 }
 0x32c   :  { %v938_v28 = vadd.f32 %v888_v23, %v4390_v8  ;;  %v952_v25 = vadd.f32 %v4438_v59, %v929_v55 }
 0x32d   :  { %v890_v0 = vpop.f32.mrf.mxu0  ;;  %v3389_v53 = vpop.f32.mrf.mxu1 }
 0x32e   :  { %v3044_v60 = vmul.f32 -1.442695, %v938_v28  ;;  %v945_v56 = vadd.f32 %v890_v0, %v4392_v11 }
 0x32f   :  { %v892_v61 = vpop.f32.mrf.mxu0  ;;  %v932_v38 = vpop.f32.mrf.mxu1 }
 0x330   :  { %3865 = vpow2.f32 %v3044_v60  ;;  %v3045_v63 = vmul.f32 -1.442695, %v945_v56 }
 0x331   :  { %v893_v57 = vpop.f32.mrf.mxu0  ;;  %v3390_v62 = vpop.f32.mrf.mxu1 }
 0x332   :  { %3867 = vpow2.f32 %v3045_v63 }
 0x33d   :  { %v3866_v2 = vpop.eup %3865 }
 0x33e   :  { %v942_v3 = vadd.f32 1.0, %v3866_v2 }
 0x33f   :  { %v3868_v35 = vpop.eup %3867 }
 0x340   :  { %3869 = vrcp.f32 %v942_v3  ;;  %v949_v16 = vadd.f32 1.0, %v3868_v35 }
 0x34d   :  { %v3870_v43 = vpop.eup %3869 }
 0x34e   :  { %v953_v8 = vmul.f32 %v3870_v43, %v952_v25 }
 0x350   :  { %v954_v7 = vadd.f32 %v953_v8, %v4395_v12 }
 0x352   :  { %3871 = vtanh.f32 %v954_v7 }
 0x353   :  { %3873 = vrcp.f32 %v949_v16 }
 0x35f   :  { %v3872_v5 = vpop.eup %3871 }
 0x360   :  { %v956_v21 = vsub.f32 %v4486_v13, %v3872_v5  ;;  %v3874_v23 = vpop.eup %3873 }
 0x362   :  { %v957_v11 = vmul.f32 %v3874_v23, %v956_v21 }
 0x364   :  { %v4530_v28 = vadd.f32 %v3872_v5, %v957_v11 }
 0x366   :  { %v960_v0 = vpack.c.bf16 %v4530_v28, %v4530_v28 }
 0x368   :  { %994 = vmatmul.mubr.bf16.vlgmr.msra.gmra.mxu0 %v960_v0  ;;  %3408 = vmatmul.mubr.bf16.vlgmr.msra.gmra.mxu1 %v960_v0 }
 0x369   :  { %1069 = vmatpush1.bf16.msra.mxu0 %v4238_v26  ;;  %3412 = vmatpush3.bf16.msra.mxu1 %v4264_v36 }
 0x36a   :  { %1070 = vmatprep.subr.bf16.mxu0 %v4241_v27  ;;  %3413 = vmatprep.subr.bf16.mxu1 %v5268_v6 }
 0x36b   :  { %1100 = vmatprep.mubr.bf16.mxu0 %v5269_v14  ;;  %3427 = vmatprep.mubr.msk.bf16.mxu1 %vm4146_vm0, %v5268_v6 }
 0x36d   :  { %1071 = vmatpush1.bf16.msra.mxu0 %v4244_v29  ;;  %3414 = vmatpush3.bf16.msra.mxu1 %v4271_v39 }
 0x36e   :  { %1072 = vmatprep.subr.bf16.mxu0 %v4248_v30  ;;  %3415 = vmatprep.subr.bf16.mxu1 %v5268_v6 }
 0x371   :  { %1073 = vmatpush1.bf16.msra.mxu0 %v4254_v32  ;;  %3416 = vmatpush3.bf16.msra.mxu1 %v4281_v42 }
 0x372   :  { %1074 = vmatprep.subr.bf16.mxu0 %v4257_v33  ;;  %3417 = vmatprep.subr.bf16.mxu1 %v5268_v6 }
 0x375   :  { %1075 = vmatpush1.bf16.msra.mxu0 %v4259_v34  ;;  %3418 = vmatpush3.bf16.msra.mxu1 %v4295_v46 }
 0x376   :  { %1076 = vmatprep.subr.bf16.mxu0 %v4266_v37  ;;  %3419 = vmatprep.subr.bf16.mxu1 %v5268_v6 }
 0x379   :  { %1077 = vmatpush1.bf16.msra.mxu0 %v4274_v40  ;;  %3420 = vmatpush3.bf16.msra.mxu1 %v4307_v49 }
 0x37a   :  { %1078 = vmatprep.subr.bf16.mxu0 %v4277_v41  ;;  %3421 = vmatprep.subr.bf16.mxu1 %v5268_v6 }
 0x37d   :  { %1079 = vmatpush1.bf16.msra.mxu0 %v4287_v44  ;;  %3422 = vmatpush3.bf16.msra.mxu1 %v4316_v51 }
 0x37e   :  { %1080 = vmatprep.subr.bf16.mxu0 %v4290_v45  ;;  %3423 = vmatprep.subr.bf16.mxu1 %v5268_v6 }
 0x381   :  { %1081 = vmatpush1.bf16.msra.mxu0 %v4298_v47  ;;  %3424 = vmatpush3.bf16.msra.mxu1 %v4322_v52 }
 0x382   :  { %1082 = vmatprep.subr.bf16.mxu0 %v4303_v48  ;;  %3425 = vmatprep.subr.bf16.mxu1 %v5268_v6 }
 0x385   :  { %1083 = vmatpush1.bf16.msra.mxu0 %v4310_v50  ;;  %3426 = vmatpush3.bf16.msra.mxu1 %v4332_v54 }
 0x386   :  { %1175 = vmatprep.subr.bf16.mxu0 %v4236_v24  ;;  %3431 = vmatprep.subr.bf16.mxu1 %v5268_v6 }
 0x428   :  { %v995_v12 = vpop.f32.mrf.mxu0  ;;  %v1036_v55 = vpop.f32.mrf.mxu1 }
 0x429   :  { %v1045_v53 = vadd.f32 %v995_v12, %v4397_v15  ;;  %v1059_v43 = vadd.f32 %v4438_v59, %v1036_v55 }
 0x42a   :  { %v997_v60 = vpop.f32.mrf.mxu0  ;;  %v3409_v61 = vpop.f32.mrf.mxu1 }
 0x42b   :  { %v3046_v38 = vmul.f32 -1.442695, %v1045_v53  ;;  %v1052_v2 = vadd.f32 %v997_v60, %v4399_v18 }
 0x42c   :  { %v999_v57 = vpop.f32.mrf.mxu0  ;;  %v1039_v62 = vpop.f32.mrf.mxu1 }
 0x42d   :  { %3875 = vpow2.f32 %v3046_v38  ;;  %v3047_v3 = vmul.f32 -1.442695, %v1052_v2  ;;  %v4624_v2 = vld [vmem:[#allocation9 + $0xa8] ss:$12 sps:$4 sm:$0xff]  }
 0x42e   :  { %v1000_v56 = vpop.f32.mrf.mxu0  ;;  %v3410_v63 = vpop.f32.mrf.mxu1 }
 0x42f   :  { %3877 = vpow2.f32 %v3047_v3  ;;  %v4630_v3 = vld [vmem:[#allocation9 + $0x94] ss:$12 sps:$4 sm:$0xff]  }
 0x43a   :  { %v3876_v35 = vpop.eup %3875 }
 0x43b   :  { %v1049_v25 = vadd.f32 1.0, %v3876_v35  ;;  %v4637_v35 = vld [vmem:[#allocation9 + $0x90] ss:$12 sps:$4 sm:$0xff]  }
 0x43c   :  { %v3878_v24 = vpop.eup %3877 }
 0x43d   :  { %3879 = vrcp.f32 %v1049_v25  ;;  %v1056_v16 = vadd.f32 1.0, %v3878_v24  ;;  %v4640_v25 = vld [vmem:[#allocation9 + $0x98] ss:$12 sps:$4 sm:$0xff]   ;;  %v4643_v24 = vld [vmem:[#allocation9 + $0x7c] ss:$12 sps:$4 sm:$0xff]  }
 0x44a   :  { %v3880_v8 = vpop.eup %3879 }
 0x44b   :  { %v1060_v15 = vmul.f32 %v3880_v8, %v1059_v43  ;;  %v4647_v43 = vld [vmem:[#allocation9 + $0x78] ss:$12 sps:$4 sm:$0xff]   ;;  %v4650_v8 = vld [vmem:[#allocation9 + $0x80] ss:$12 sps:$4 sm:$0xff]  }
 0x44d   :  { %v1061_v7 = vadd.f32 %v1060_v15, %v4402_v19  ;;  %v4653_v15 = vld [vmem:[#allocation9 + $0x64] ss:$12 sps:$4 sm:$0xff]  }
 0x44f   :  { %3881 = vtanh.f32 %v1061_v7  ;;  %v4657_v7 = vld [vmem:[#allocation9 + $0x60] ss:$12 sps:$4 sm:$0xff]  }
 0x450   :  { %3883 = vrcp.f32 %v1056_v16  ;;  %v4661_v16 = vld [vmem:[#allocation9 + $0x4c] ss:$12 sps:$4 sm:$0xff]  }
 0x45c   :  { %v3882_v5 = vpop.eup %3881 }
 0x45d   :  { %v1063_v21 = vsub.f32 %v4530_v28, %v3882_v5  ;;  %v3884_v23 = vpop.eup %3883 }
 0x45f   :  { %v1064_v18 = vmul.f32 %v3884_v23, %v1063_v21  ;;  %v4669_v21 = vld [vmem:[#allocation9 + $0x34] ss:$12 sps:$4 sm:$0xff]   ;;  %v4673_v23 = vld [vmem:[#allocation9 + $0x30] ss:$12 sps:$4 sm:$0xff]  }
 0x461   :  { %v4574_v11 = vadd.f32 %v3882_v5, %v1064_v18  ;;  %v4665_v5 = vld [vmem:[#allocation9 + $0x48] ss:$12 sps:$4 sm:$0xff]  }
 0x463   :  { %v1067_v0 = vpack.c.bf16 %v4574_v11, %v4574_v11 }
 0x465   :  { %1101 = vmatmul.mubr.bf16.vlgmr.msra.gmra.mxu0 %v1067_v0  ;;  %3428 = vmatmul.mubr.bf16.vlgmr.msra.gmra.mxu1 %v1067_v0 }
 0x466   :  { %1176 = vmatpush1.bf16.msra.mxu0 %v4238_v26  ;;  %3432 = vmatpush3.bf16.msra.mxu1 %v4264_v36  ;;  %v4611_v26 = vld [vmem:[#allocation9 + $0xac] ss:$12 sps:$4 sm:$0xff]  }
 0x467   :  { %1177 = vmatprep.subr.bf16.mxu0 %v4241_v27  ;;  %3433 = vmatprep.subr.bf16.mxu1 %v5268_v6 }
 0x468   :  { %1207 = vmatprep.mubr.bf16.mxu0 %v5269_v14  ;;  %3447 = vmatprep.mubr.msk.bf16.mxu1 %vm4146_vm0, %v5268_v6 }
 0x46a   :  { %1178 = vmatpush1.bf16.msra.mxu0 %v4244_v29  ;;  %3434 = vmatpush3.bf16.msra.mxu1 %v4271_v39 }
 0x46b   :  { %1179 = vmatprep.subr.bf16.mxu0 %v4248_v30  ;;  %3435 = vmatprep.subr.bf16.mxu1 %v5268_v6 }
 0x46e   :  { %1180 = vmatpush1.bf16.msra.mxu0 %v4254_v32  ;;  %3436 = vmatpush3.bf16.msra.mxu1 %v4281_v42 }
 0x46f   :  { %1181 = vmatprep.subr.bf16.mxu0 %v4257_v33  ;;  %3437 = vmatprep.subr.bf16.mxu1 %v5268_v6 }
 0x472   :  { %1182 = vmatpush1.bf16.msra.mxu0 %v4259_v34  ;;  %3438 = vmatpush3.bf16.msra.mxu1 %v4295_v46 }
 0x473   :  { %1183 = vmatprep.subr.bf16.mxu0 %v4266_v37  ;;  %3439 = vmatprep.subr.bf16.mxu1 %v5268_v6 }
 0x476   :  { %1184 = vmatpush1.bf16.msra.mxu0 %v4274_v40  ;;  %3440 = vmatpush3.bf16.msra.mxu1 %v4307_v49 }
 0x477   :  { %1185 = vmatprep.subr.bf16.mxu0 %v4277_v41  ;;  %3441 = vmatprep.subr.bf16.mxu1 %v5268_v6 }
 0x47a   :  { %1186 = vmatpush1.bf16.msra.mxu0 %v4287_v44  ;;  %3442 = vmatpush3.bf16.msra.mxu1 %v4316_v51 }
 0x47b   :  { %1187 = vmatprep.subr.bf16.mxu0 %v4290_v45  ;;  %3443 = vmatprep.subr.bf16.mxu1 %v5268_v6 }
 0x47e   :  { %1188 = vmatpush1.bf16.msra.mxu0 %v4298_v47  ;;  %3444 = vmatpush3.bf16.msra.mxu1 %v4322_v52 }
 0x47f   :  { %1189 = vmatprep.subr.bf16.mxu0 %v4303_v48  ;;  %3445 = vmatprep.subr.bf16.mxu1 %v5268_v6 }
 0x482   :  { %1190 = vmatpush1.bf16.msra.mxu0 %v4310_v50  ;;  %3446 = vmatpush3.bf16.msra.mxu1 %v4332_v54 }
 0x483   :  { %1282 = vmatprep.subr.bf16.mxu0 %v4611_v26  ;;  %3451 = vmatprep.subr.bf16.mxu1 %v5268_v6 }
 0x525   :  { %v1102_v27 = vpop.f32.mrf.mxu0  ;;  %v1143_v29 = vpop.f32.mrf.mxu1 }
 0x526   :  { %v1152_v30 = vadd.f32 %v1102_v27, %v4404_v22  ;;  %v1166_v55 = vadd.f32 %v4438_v59, %v1143_v29 }
 0x527   :  { %v1104_v32 = vpop.f32.mrf.mxu0  ;;  %v3429_v33 = vpop.f32.mrf.mxu1 }
 0x528   :  { %v3048_v34 = vmul.f32 -1.442695, %v1152_v30  ;;  %v1159_v41 = vadd.f32 %v1104_v32, %v4409_v31 }
 0x529   :  { %v1106_v36 = vpop.f32.mrf.mxu0  ;;  %v1146_v37 = vpop.f32.mrf.mxu1 }
 0x52a   :  { %3885 = vpow2.f32 %v3048_v34  ;;  %v3049_v42 = vmul.f32 -1.442695, %v1159_v41 }
 0x52b   :  { %v1107_v39 = vpop.f32.mrf.mxu0  ;;  %v3430_v40 = vpop.f32.mrf.mxu1 }
 0x52c   :  { %3887 = vpow2.f32 %v3049_v42 }
 0x537   :  { %v3886_v44 = vpop.eup %3885 }
 0x538   :  { %v1156_v19 = vadd.f32 1.0, %v3886_v44 }
 0x539   :  { %v3888_v12 = vpop.eup %3887 }
 0x53a   :  { %3889 = vrcp.f32 %v1156_v19  ;;  %v1163_v61 = vadd.f32 1.0, %v3888_v12  ;;  %v4021_v19 = vld [vmem:[#allocation9 + $0x50] ss:$12 sps:$4 sm:$0xff]   ;;  %v4022_v12 = vld [vmem:[#allocation9 + $0x38] ss:$12 sps:$4 sm:$0xff]  }
 0x547   :  { %v3890_v53 = vpop.eup %3889 }
 0x548   :  { %v1167_v22 = vmul.f32 %v3890_v53, %v1166_v55  ;;  %v4023_v55 = vld [vmem:[#allocation9 + $0x1c] ss:$12 sps:$4 sm:$0xff]   ;;  %v4024_v53 = vld [vmem:[#allocation9 + $0x18] ss:$12 sps:$4 sm:$0xff]  }
 0x54a   :  { %v1168_v60 = vadd.f32 %v1167_v22, %v4417_v1  ;;  %v4627_v1 = vld [vmem:[#allocation9 + $0xb0] ss:$12 sps:$4 sm:$0xff]   ;;  %v4025_v22 = vld [vmem:[#allocation9 + $0x20] ss:$12 sps:$4 sm:$0xff]  }
 0x54c   :  { %3891 = vtanh.f32 %v1168_v60  ;;  %v4026_v60 = vld [vmem:[#allocation9 + $0x4] ss:$12 sps:$4 sm:$0xff]  }
 0x54d   :  { %3893 = vrcp.f32 %v1163_v61  ;;  %v4027_v61 = vld [vmem:[#allocation9] ss:$12 sps:$4 sm:$0xff]  }
 0x559   :  { %v3892_v38 = vpop.eup %3891 }
 0x55a   :  { %v1170_v57 = vsub.f32 %v4574_v11, %v3892_v38  ;;  %v3894_v62 = vpop.eup %3893 }
 0x55c   :  { %v1171_v31 = vmul.f32 %v3894_v62, %v1170_v57  ;;  %v3776_v57 = vld [vmem:[#allocation11 + $0xb0] ss:$12 sps:$4 sm:$0xff]  }
 0x55e   :  { %v4620_v56 = vadd.f32 %v3892_v38, %v1171_v31  ;;  %v3775_v38 = vld [vmem:[#allocation11 + $0xac] ss:$12 sps:$4 sm:$0xff]  }
 0x560   :  { %v1174_v63 = vpack.c.bf16 %v4620_v56, %v4620_v56 }
 0x562   :  { %1208 = vmatmul.mubr.bf16.vlgmr.msra.gmra.mxu0 %v1174_v63  ;;  %3448 = vmatmul.mubr.bf16.vlgmr.msra.gmra.mxu1 %v1174_v63 }
 0x563   :  { %1283 = vmatpush1.bf16.msra.mxu0 %v4624_v2  ;;  %3452 = vmatpush3.bf16.msra.mxu1 %v4627_v1 }
 0x564   :  { %1284 = vmatprep.subr.bf16.mxu0 %v4630_v3  ;;  %3453 = vmatprep.subr.bf16.mxu1 %v5268_v6 }
 0x565   :  { %1314 = vmatprep.mubr.bf16.mxu0 %v5269_v14  ;;  %3467 = vmatprep.mubr.msk.bf16.mxu1 %vm4146_vm0, %v5268_v6 }
 0x567   :  { %1285 = vmatpush1.bf16.msra.mxu0 %v4637_v35  ;;  %3454 = vmatpush3.bf16.msra.mxu1 %v4640_v25 }
 0x568   :  { %1286 = vmatprep.subr.bf16.mxu0 %v4643_v24  ;;  %3455 = vmatprep.subr.bf16.mxu1 %v5268_v6 }
 0x56b   :  { %1287 = vmatpush1.bf16.msra.mxu0 %v4647_v43  ;;  %3456 = vmatpush3.bf16.msra.mxu1 %v4650_v8 }
 0x56c   :  { %1288 = vmatprep.subr.bf16.mxu0 %v4653_v15  ;;  %3457 = vmatprep.subr.bf16.mxu1 %v5268_v6 }
 0x56f   :  { %1289 = vmatpush1.bf16.msra.mxu0 %v4657_v7  ;;  %3458 = vmatpush3.bf16.msra.mxu1 %v4295_v46 }
 0x570   :  { %1290 = vmatprep.subr.bf16.mxu0 %v4661_v16  ;;  %3459 = vmatprep.subr.bf16.mxu1 %v5268_v6 }
 0x573   :  { %1291 = vmatpush1.bf16.msra.mxu0 %v4665_v5  ;;  %3460 = vmatpush3.bf16.msra.mxu1 %v4307_v49 }
 0x574   :  { %1292 = vmatprep.subr.bf16.mxu0 %v4669_v21  ;;  %3461 = vmatprep.subr.bf16.mxu1 %v5268_v6 }
 0x577   :  { %1293 = vmatpush1.bf16.msra.mxu0 %v4673_v23  ;;  %3462 = vmatpush3.bf16.msra.mxu1 %v4316_v51 }
 0x578   :  { %1294 = vmatprep.subr.bf16.mxu0 %v4290_v45  ;;  %3463 = vmatprep.subr.bf16.mxu1 %v5268_v6 }
 0x57b   :  { %1295 = vmatpush1.bf16.msra.mxu0 %v4298_v47  ;;  %3464 = vmatpush3.bf16.msra.mxu1 %v4322_v52 }
 0x57c   :  { %1296 = vmatprep.subr.bf16.mxu0 %v4303_v48  ;;  %3465 = vmatprep.subr.bf16.mxu1 %v5268_v6 }
 0x57f   :  { %1297 = vmatpush1.bf16.msra.mxu0 %v4310_v50  ;;  %3466 = vmatpush3.bf16.msra.mxu1 %v4332_v54 }
 0x580   :  { %1389 = vmatprep.subr.bf16.mxu0 %v4611_v26  ;;  %3471 = vmatprep.subr.bf16.mxu1 %v5268_v6 }
 0x622   :  { %v1209_v46 = vpop.f32.mrf.mxu0  ;;  %v1250_v45 = vpop.f32.mrf.mxu1 }
 0x623   :  { %v1259_v49 = vadd.f32 %v1209_v46, %v4414_v58  ;;  %v1273_v33 = vadd.f32 %v4438_v59, %v1250_v45  ;;  %v5271_v46 = vld [vmem:[#allocation18_spill] sm:$0xff] }
 0x624   :  { %v1211_v51 = vpop.f32.mrf.mxu0  ;;  %v3449_v47 = vpop.f32.mrf.mxu1 }
 0x625   :  { %v3050_v18 = vmul.f32 -1.442695, %v1259_v49  ;;  %v1266_v50 = vadd.f32 %v1211_v51, %v4419_v9 }
 0x626   :  { %v1213_v52 = vpop.f32.mrf.mxu0  ;;  %v1253_v0 = vpop.f32.mrf.mxu1 }
 0x627   :  { %3895 = vpow2.f32 %v3050_v18  ;;  %v3051_v29 = vmul.f32 -1.442695, %v1266_v50  ;;  %v3779_v50 = vld [vmem:[#allocation11 + $0x94] ss:$12 sps:$4 sm:$0xff]  }
 0x628   :  { %v1214_v48 = vpop.f32.mrf.mxu0  ;;  %v3450_v27 = vpop.f32.mrf.mxu1 }
 0x629   :  { %3897 = vpow2.f32 %v3051_v29  ;;  %v3773_v48 = vld [vmem:[#allocation11 + $0xa8] ss:$12 sps:$4 sm:$0xff]   ;;  %v1504_v29 = vpack.c.bf16 %v4486_v13, %v4442_v10  ;;  %v3785_v10 = vld [vmem:[#allocation11 + $0x60] ss:$12 sps:$4 sm:$0xff]  }
 0x62a   :  { %v3791_v13 = vld [vmem:[#allocation11 + $0x4c] ss:$12 sps:$4 sm:$0xff]  }
 0x634   :  { %v3896_v30 = vpop.eup %3895 }
 0x635   :  { %v1263_v32 = vadd.f32 1.0, %v3896_v30  ;;  %v3777_v30 = vld [vmem:[#allocation11 + $0x90] ss:$12 sps:$4 sm:$0xff]  }
 0x636   :  { %v3898_v26 = vpop.eup %3897 }
 0x637   :  { %3899 = vrcp.f32 %v1263_v32  ;;  %v1270_v37 = vadd.f32 1.0, %v3898_v26  ;;  %v3783_v32 = vld [vmem:[#allocation11 + $0x7c] ss:$12 sps:$4 sm:$0xff]   ;;  %v3784_v26 = vld [vmem:[#allocation11 + $0x80] ss:$12 sps:$4 sm:$0xff]  }
 0x644   :  { %v3900_v34 = vpop.eup %3899 }
 0x645   :  { %v1274_v58 = vmul.f32 %v3900_v34, %v1273_v33  ;;  %v3781_v33 = vld [vmem:[#allocation11 + $0x78] ss:$12 sps:$4 sm:$0xff]  }
 0x646   :  { %v3787_v34 = vld [vmem:[#allocation11 + $0x64] ss:$12 sps:$4 sm:$0xff]  }
 0x647   :  { %v1275_v36 = vadd.f32 %v1274_v58, %v4427_v20  ;;  %v4020_v20 = vld [vmem:[#allocation9 + $0x68] ss:$12 sps:$4 sm:$0xff]  }
 0x648   :  { %v3788_v58 = vld [vmem:[#allocation11 + $0x68] ss:$12 sps:$4 sm:$0xff]  }
 0x649   :  { %3901 = vtanh.f32 %v1275_v36  ;;  %v3792_v36 = vld [vmem:[#allocation11 + $0x50] ss:$12 sps:$4 sm:$0xff]  }
 0x64a   :  { %3903 = vrcp.f32 %v1270_v37  ;;  %v3789_v37 = vld [vmem:[#allocation11 + $0x48] ss:$12 sps:$4 sm:$0xff]  }
 0x656   :  { %v3902_v39 = vpop.eup %3901 }
 0x657   :  { %v1277_v40 = vsub.f32 %v4620_v56, %v3902_v39  ;;  %v3904_v41 = vpop.eup %3903 }
 0x659   :  { %v1278_v9 = vmul.f32 %v3904_v41, %v1277_v40  ;;  %v3796_v40 = vld [vmem:[#allocation11 + $0x38] ss:$12 sps:$4 sm:$0xff]   ;;  %v3793_v41 = vld [vmem:[#allocation11 + $0x30] ss:$12 sps:$4 sm:$0xff]  }
 0x65b   :  { %v4692_v42 = vadd.f32 %v3902_v39, %v1278_v9  ;;  %v3795_v39 = vld [vmem:[#allocation11 + $0x34] ss:$12 sps:$4 sm:$0xff]   ;;  %v3799_v9 = vld [vmem:[#allocation11 + $0x1c] ss:$12 sps:$4 sm:$0xff]  }
 0x65d   :  { %v1281_v44 = vpack.c.bf16 %v4692_v42, %v4692_v42 }
 0x65f   :  { %1315 = vmatmul.mubr.bf16.vlgmr.msra.gmra.mxu0 %v1281_v44  ;;  %3468 = vmatmul.mubr.bf16.vlgmr.msra.gmra.mxu1 %v1281_v44  ;;  %v3800_v44 = vld [vmem:[#allocation11 + $0x20] ss:$12 sps:$4 sm:$0xff]  }
 0x660   :  { %1390 = vmatpush1.bf16.msra.mxu0 %v4624_v2  ;;  %3472 = vmatpush3.bf16.msra.mxu1 %v4627_v1 }
 0x661   :  { %1391 = vmatprep.subr.bf16.mxu0 %v4630_v3  ;;  %3473 = vmatprep.subr.bf16.mxu1 %v5268_v6 }
 0x662   :  { %1421 = vmatprep.mubr.bf16.mxu0 %v5269_v14  ;;  %3487 = vmatprep.mubr.msk.bf16.mxu1 %vm4146_vm0, %v5268_v6 }
 0x664   :  { %1392 = vmatpush1.bf16.msra.mxu0 %v4637_v35  ;;  %3474 = vmatpush3.bf16.msra.mxu1 %v4640_v25 }
 0x665   :  { %1393 = vmatprep.subr.bf16.mxu0 %v4643_v24  ;;  %3475 = vmatprep.subr.bf16.mxu1 %v5268_v6 }
 0x668   :  { %1394 = vmatpush1.bf16.msra.mxu0 %v4647_v43  ;;  %3476 = vmatpush3.bf16.msra.mxu1 %v4650_v8  ;;  %v5270_v8 = vld [vmem:[#allocation20_spill] sm:$0xff] }
 0x669   :  { %1395 = vmatprep.subr.bf16.mxu0 %v4653_v15  ;;  %3477 = vmatprep.subr.bf16.mxu1 %v5268_v6 }
 0x66c   :  { %1396 = vmatpush1.bf16.msra.mxu0 %v4657_v7  ;;  %3478 = vmatpush3.bf16.msra.mxu1 %v4020_v20  ;;  %v3797_v20 = vld [vmem:[#allocation11 + $0x18] ss:$12 sps:$4 sm:$0xff]  }
 0x66d   :  { %1397 = vmatprep.subr.bf16.mxu0 %v4661_v16  ;;  %3479 = vmatprep.subr.bf16.mxu1 %v5268_v6 }
 0x670   :  { %1398 = vmatpush1.bf16.msra.mxu0 %v4665_v5  ;;  %3480 = vmatpush3.bf16.msra.mxu1 %v4021_v19  ;;  %v3803_v19 = vld [vmem:[#allocation11 + $0x4] ss:$12 sps:$4 sm:$0xff]  }
 0x671   :  { %1399 = vmatprep.subr.bf16.mxu0 %v4669_v21  ;;  %3481 = vmatprep.subr.bf16.mxu1 %v5268_v6 }
 0x674   :  { %1400 = vmatpush1.bf16.msra.mxu0 %v4673_v23  ;;  %3482 = vmatpush3.bf16.msra.mxu1 %v4022_v12  ;;  %v3804_v12 = vld [vmem:[#allocation11 + $0x8] ss:$12 sps:$4 sm:$0xff]  }
 0x675   :  { %1401 = vmatprep.subr.bf16.mxu0 %v4023_v55  ;;  %3483 = vmatprep.subr.bf16.mxu1 %v5268_v6  ;;  %v3801_v55 = vld [vmem:[#allocation11] ss:$12 sps:$4 sm:$0xff]  }
 0x678   :  { %1402 = vmatpush1.bf16.msra.mxu0 %v4024_v53  ;;  %3484 = vmatpush3.bf16.msra.mxu1 %v4025_v22  ;;  %v1505_v53 = vpack.c.bf16 %v4574_v11, %v4530_v28  ;;  %v1506_v22 = vpack.c.bf16 %v4692_v42, %v4620_v56  ;;  %v4747_v28 = vld [vmem:[#allocation12 + $0x94] ss:$12 sps:$4 sm:$0xff]   ;;  %v4749_v11 = vld [vmem:[#allocation12 + $0x90] ss:$12 sps:$4 sm:$0xff]  }
 0x679   :  { %1403 = vmatprep.subr.bf16.mxu0 %v4026_v60  ;;  %3485 = vmatprep.subr.bf16.mxu1 %v5268_v6  ;;  %v4741_v60 = vld [vmem:[#allocation12 + $0xac] ss:$12 sps:$4 sm:$0xff]   ;;  %v4753_v56 = vld [vmem:[#allocation12 + $0x7c] ss:$12 sps:$4 sm:$0xff]  }
 0x67c   :  { %1404 = vmatpush1.bf16.msra.mxu0 %v4027_v61  ;;  %3486 = vmatpush3.bf16.msra.mxu1 %v4332_v54  ;;  %v4743_v61 = vld [vmem:[#allocation12 + $0xa8] ss:$12 sps:$4 sm:$0xff]  }
 0x67d   :  { %1685 = vmatprep.subr.bf16.mxu0 %v3775_v38  ;;  %3491 = vmatprep.subr.bf16.mxu1 %v3776_v57  ;;  %v4759_v38 = vld [vmem:[#allocation12 + $0x64] ss:$12 sps:$4 sm:$0xff]  }
 0x71f   :  { %v1316_v62 = vpop.f32.mrf.mxu0  ;;  %v1357_v31 = vpop.f32.mrf.mxu1 }
 0x720   :  { %v1366_v63 = vadd.f32 %v1316_v62, %v4424_v17  ;;  %v1380_v21 = vadd.f32 %v4438_v59, %v1357_v31  ;;  %v3780_v59 = vld [vmem:[#allocation11 + $0x98] ss:$12 sps:$4 sm:$0xff]   ;;  %v4767_v31 = vld [vmem:[#allocation12 + $0x48] ss:$12 sps:$4 sm:$0xff]  }
 0x721   :  { %v1318_v2 = vpop.f32.mrf.mxu0  ;;  %v3469_v1 = vpop.f32.mrf.mxu1  ;;  %v4765_v62 = vld [vmem:[#allocation12 + $0x4c] ss:$12 sps:$4 sm:$0xff]  }
 0x722   :  { %v3052_v3 = vmul.f32 -1.442695, %v1366_v63  ;;  %v1373_v15 = vadd.f32 %v1318_v2, %v5270_v8  ;;  %v4771_v63 = vld [vmem:[#allocation12 + $0x34] ss:$12 sps:$4 sm:$0xff]   ;;  %v4773_v2 = vld [vmem:[#allocation12 + $0x30] ss:$12 sps:$4 sm:$0xff]  }
 0x723   :  { %v1320_v35 = vpop.f32.mrf.mxu0  ;;  %v1360_v25 = vpop.f32.mrf.mxu1  ;;  %v4777_v1 = vld [vmem:[#allocation12 + $0x1c] ss:$12 sps:$4 sm:$0xff]   ;;  %v4797_v8 = vld [vmem:[#allocation12 + $0x80] ss:$12 sps:$4 sm:$0xff]  }
 0x724   :  { %3905 = vpow2.f32 %v3052_v3  ;;  %v3053_v7 = vmul.f32 -1.442695, %v1373_v15  ;;  %v4779_v3 = vld [vmem:[#allocation12 + $0x18] ss:$12 sps:$4 sm:$0xff]   ;;  %v4783_v25 = vld [vmem:[#allocation12 + $0xb0] ss:$12 sps:$4 sm:$0xff]  }
 0x725   :  { %v1321_v24 = vpop.f32.mrf.mxu0  ;;  %v3470_v43 = vpop.f32.mrf.mxu1  ;;  %v4781_v35 = vld [vmem:[#allocation12 + $0x4] ss:$12 sps:$4 sm:$0xff]   ;;  %v4801_v15 = vld [vmem:[#allocation12 + $0x68] ss:$12 sps:$4 sm:$0xff]  }
 0x726   :  { %3907 = vpow2.f32 %v3053_v7  ;;  %v4788_v24 = vld [vmem:[#allocation12] ss:$12 sps:$4 sm:$0xff]   ;;  %v4793_v43 = vld [vmem:[#allocation12 + $0x98] ss:$12 sps:$4 sm:$0xff]   ;;  %v4805_v7 = vld [vmem:[#allocation12 + $0x50] ss:$12 sps:$4 sm:$0xff]  }
 0x731   :  { %v3906_v54 = vpop.eup %3905 }
 0x732   :  { %v1370_v16 = vadd.f32 1.0, %v3906_v54  ;;  %v4809_v54 = vld [vmem:[#allocation12 + $0x38] ss:$12 sps:$4 sm:$0xff]  }
 0x733   :  { %v3908_v5 = vpop.eup %3907 }
 0x734   :  { %3909 = vrcp.f32 %v1370_v16  ;;  %v1377_v49 = vadd.f32 1.0, %v3908_v5  ;;  %v4813_v16 = vld [vmem:[#allocation12 + $0x20] ss:$12 sps:$4 sm:$0xff]   ;;  %v4817_v5 = vld [vmem:[#allocation12 + $0x8] ss:$12 sps:$4 sm:$0xff]  }
 0x741   :  { %v3910_v23 = vpop.eup %3909 }
 0x742   :  { %v1381_v17 = vmul.f32 %v3910_v23, %v1380_v21 }
 0x744   :  { %v1382_v45 = vadd.f32 %v1381_v17, %v5271_v46  ;;  %v5272_v17 = vld [vmem:[#allocation21_spill] sm:$0xff] }
 0x746   :  { %3911 = vtanh.f32 %v1382_v45 }
 0x747   :  { %3913 = vrcp.f32 %v1377_v49 }
 0x753   :  { %v3912_v51 = vpop.eup %3911 }
 0x754   :  { %v1384_v47 = vsub.f32 %v4692_v42, %v3912_v51  ;;  %v3914_v18 = vpop.eup %3913  ;;  %v4755_v42 = vld [vmem:[#allocation12 + $0x78] ss:$12 sps:$4 sm:$0xff]  }
 0x756   :  { %v1385_v52 = vmul.f32 %v3914_v18, %v1384_v47 }
 0x758   :  { %v4726_v0 = vadd.f32 %v3912_v51, %v1385_v52 }
 0x75a   :  { %v1388_v27 = vpack.c.bf16 %v4726_v0, %v4726_v0 }
 0x75c   :  { %1422 = vmatmul.mubr.bf16.vlgmr.msra.gmra.mxu0 %v1388_v27  ;;  %3488 = vmatmul.mubr.bf16.vlgmr.msra.gmra.mxu1 %v1388_v27 }
 0x75d   :  { %1686 = vmatpush1.bf16.msra.mxu0 %v3773_v48  ;;  %3492 = vmatpush3.bf16.msra.mxu1 %v3776_v57  ;;  %v4761_v57 = vld [vmem:[#allocation12 + $0x60] ss:$12 sps:$4 sm:$0xff]  }
 0x75e   :  { %3507 = vmatprep.mubr.bf16.mxu1 %v1504_v29  ;;  %1687 = vmatprep.subr.bf16.mxu0 %v3779_v50 }
 0x75f   :  { %3493 = vmatprep.subr.bf16.mxu1 %v3780_v59  ;;  %1717 = vmatprep.mubr.bf16.mxu0 %v5269_v14 }
 0x761   :  { %1688 = vmatpush1.bf16.msra.mxu0 %v3777_v30  ;;  %3494 = vmatpush3.bf16.msra.mxu1 %v3780_v59 }
 0x762   :  { %1689 = vmatprep.subr.bf16.mxu0 %v3783_v32  ;;  %3495 = vmatprep.subr.bf16.mxu1 %v3784_v26  ;;  %v4028_v32 = vld [vmem:[%s5244_s4] ss:$0 sm:$0xff] }
 0x765   :  { %1690 = vmatpush1.bf16.msra.mxu0 %v3781_v33  ;;  %3496 = vmatpush3.bf16.msra.mxu1 %v3784_v26 }
 0x766   :  { %1691 = vmatprep.subr.bf16.mxu0 %v3787_v34  ;;  %3497 = vmatprep.subr.bf16.mxu1 %v3788_v58 }
 0x769   :  { %1692 = vmatpush1.bf16.msra.mxu0 %v3785_v10  ;;  %3498 = vmatpush3.bf16.msra.mxu1 %v3788_v58  ;;  %v5273_v58 = vld [vmem:[#allocation19_spill] sm:$0xff] }
 0x76a   :  { %1693 = vmatprep.subr.bf16.mxu0 %v3791_v13  ;;  %3499 = vmatprep.subr.bf16.mxu1 %v3792_v36 }
 0x76d   :  { %1694 = vmatpush1.bf16.msra.mxu0 %v3789_v37  ;;  %3500 = vmatpush3.bf16.msra.mxu1 %v3792_v36 }
 0x76e   :  { %1695 = vmatprep.subr.bf16.mxu0 %v3795_v39  ;;  %3501 = vmatprep.subr.bf16.mxu1 %v3796_v40 }
 0x771   :  { %1696 = vmatpush1.bf16.msra.mxu0 %v3793_v41  ;;  %3502 = vmatpush3.bf16.msra.mxu1 %v3796_v40 }
 0x772   :  { %1697 = vmatprep.subr.bf16.mxu0 %v3799_v9  ;;  %3503 = vmatprep.subr.bf16.mxu1 %v3800_v44  ;;  %v5274_v9 = vmov 0.0|0.0  }
 0x775   :  { %1698 = vmatpush1.bf16.msra.mxu0 %v3797_v20  ;;  %3504 = vmatpush3.bf16.msra.mxu1 %v3800_v44 }
 0x776   :  { %1699 = vmatprep.subr.bf16.mxu0 %v3803_v19  ;;  %3505 = vmatprep.subr.bf16.mxu1 %v3804_v12 }
 0x779   :  { %1700 = vmatpush1.bf16.msra.mxu0 %v3801_v55  ;;  %3506 = vmatpush3.bf16.msra.mxu1 %v3804_v12 }
 0x77a   :  { %3515 = vmatprep.subr.bf16.mxu1 %v5268_v6  ;;  %2016 = vmatprep.subr.bf16.mxu0 %v4741_v60 }
 0x77c   :  { %1718 = vmatmul.mubr.bf16.vlgmr.msra.gmra.mxu0 %v1504_v29  ;;  %3508 = vmatmul.mubr.bf16.vlgmr.msra.gmra.mxu1 %v1505_v53 }
 0x77d   :  { %3511 = vmatprep.mubr.bf16.mxu1 %v1506_v22  ;;  %1727 = vmatprep.mubr.bf16.mxu0 %v5269_v14 }
 0x77e   :  { %2017 = vmatpush1.bf16.msra.mxu0 %v4743_v61  ;;  %3516 = vmatpush3.bf16.msra.mxu1 %v4783_v25 }
 0x77f   :  { %2018 = vmatprep.subr.bf16.mxu0 %v4747_v28  ;;  %3517 = vmatprep.subr.bf16.mxu1 %v5268_v6 }
 0x782   :  { %2019 = vmatpush1.bf16.msra.mxu0 %v4749_v11  ;;  %3518 = vmatpush3.bf16.msra.mxu1 %v4793_v43 }
 0x783   :  { %2020 = vmatprep.subr.bf16.mxu0 %v4753_v56  ;;  %3519 = vmatprep.subr.bf16.mxu1 %v5268_v6 }
 0x784   :  { %1728 = vmatmul.mubr.bf16.gmra.mxu0 %v1505_v53 }
 0x785   :  { %1737 = vmatprep.mubr.bf16.mxu0 %v5269_v14 }
 0x786   :  { %2021 = vmatpush1.bf16.msra.mxu0 %v4755_v42  ;;  %3520 = vmatpush3.bf16.msra.mxu1 %v4797_v8 }
 0x787   :  { %2022 = vmatprep.subr.bf16.mxu0 %v4759_v38  ;;  %3521 = vmatprep.subr.bf16.mxu1 %v5268_v6 }
 0x78a   :  { %2023 = vmatpush1.bf16.msra.mxu0 %v4761_v57  ;;  %3522 = vmatpush3.bf16.msra.mxu1 %v4801_v15 }
 0x78b   :  { %2024 = vmatprep.subr.bf16.mxu0 %v4765_v62  ;;  %3523 = vmatprep.subr.bf16.mxu1 %v5268_v6 }
 0x78c   :  { %1738 = vmatmul.mubr.bf16.gmra.mxu0 %v1506_v22 }
 0x78d   :  { %1747 = vmatprep.mubr.bf16.mxu0 %v5269_v14 }
 0x78e   :  { %2025 = vmatpush1.bf16.msra.mxu0 %v4767_v31  ;;  %3524 = vmatpush3.bf16.msra.mxu1 %v4805_v7 }
 0x78f   :  { %2026 = vmatprep.subr.bf16.mxu0 %v4771_v63  ;;  %3525 = vmatprep.subr.bf16.mxu1 %v5268_v6 }
 0x792   :  { %2027 = vmatpush1.bf16.msra.mxu0 %v4773_v2  ;;  %3526 = vmatpush3.bf16.msra.mxu1 %v4809_v54 }
 0x793   :  { %2028 = vmatprep.subr.bf16.mxu0 %v4777_v1  ;;  %3527 = vmatprep.subr.bf16.mxu1 %v5268_v6 }
 0x796   :  { %2029 = vmatpush1.bf16.msra.mxu0 %v4779_v3  ;;  %3528 = vmatpush3.bf16.msra.mxu1 %v4813_v16 }
 0x797   :  { %2030 = vmatprep.subr.bf16.mxu0 %v4781_v35  ;;  %3529 = vmatprep.subr.bf16.mxu1 %v5268_v6 }
 0x79a   :  { %2031 = vmatpush1.bf16.msra.mxu0 %v4788_v24  ;;  %3530 = vmatpush3.bf16.msra.mxu1 %v4817_v5 }
 0x79b   :  { %2122 = vmatprep.subr.bf16.mxu0 %v4741_v60  ;;  %3535 = vmatprep.subr.bf16.mxu1 %v5268_v6 }
 0x81c   :  { %v1423_v21 = vpop.f32.mrf.mxu0  ;;  %v1464_v23 = vpop.f32.mrf.mxu1 }
 0x81d   :  { %v1473_v46 = vadd.f32 %v1423_v21, %v5272_v17  ;;  %v1487_v26 = vadd.f32 %v4028_v32, %v1464_v23 }
 0x81e   :  { %v1425_v45 = vpop.f32.mrf.mxu0  ;;  %v3489_v49 = vpop.f32.mrf.mxu1 }
 0x81f   :  { %v3054_v51 = vmul.f32 -1.442695, %v1473_v46  ;;  %v1480_v27 = vadd.f32 %v1425_v45, %v4433_v4 }
 0x820   :  { %v1427_v47 = vpop.f32.mrf.mxu0  ;;  %v1467_v18 = vpop.f32.mrf.mxu1 }
 0x821   :  { %3915 = vpow2.f32 %v3054_v51  ;;  %v3055_v50 = vmul.f32 -1.442695, %v1480_v27  ;;  %v1540_v18 = vld [vmem:[%s5247_s7] sm:$0x7] }
 0x822   :  { %v1428_v52 = vpop.f32.mrf.mxu0  ;;  %v3490_v48 = vpop.f32.mrf.mxu1 }
 0x823   :  { %3917 = vpow2.f32 %v3055_v50 }
 0x82e   :  { %v3916_v59 = vpop.eup %3915 }
 0x82f   :  { %v1477_v29 = vadd.f32 1.0, %v3916_v59  ;;  %v5278_v59 = vld [vmem:[#allocation17_spill] sm:$0xff] }
 0x830   :  { %v3918_v30 = vpop.eup %3917 }
 0x831   :  { %3919 = vrcp.f32 %v1477_v29  ;;  %v1484_v13 = vadd.f32 1.0, %v3918_v30  ;;  %v5279_v29 = vsub.s32 0, %v5278_v59 }
 0x833   :  { %v4909_v30 = vrot.slane %v1540_v18, %v5279_v29 }
 0x83c   :  { %v4882_v21 = vpop.f32.mrf.mxu1 }
 0x83e   :  { %v3920_v33 = vpop.eup %3919  ;;  %v1792_v17 = vpop.f32.mrf.mxu1 }
 0x83f   :  { %v1488_v34 = vmul.f32 %v3920_v33, %v1487_v26 }
 0x840   :  { %v4888_v45 = vpop.f32.mrf.mxu1 }
 0x841   :  { %v1489_v10 = vadd.f32 %v1488_v34, %v5273_v58 }
 0x842   :  { %v4892_v51 = vpop.f32.mrf.mxu1 }
 0x843   :  { %3921 = vtanh.f32 %v1489_v10 }
 0x844   :  { %3923 = vrcp.f32 %v1484_v13 }
 0x850   :  { %v3922_v36 = vpop.eup %3921 }
 0x851   :  { %v1491_v4 = vsub.f32 %v4726_v0, %v3922_v36  ;;  %v3924_v37 = vpop.eup %3923 }
 0x853   :  { %v1492_v39 = vmul.f32 %v3924_v37, %v1491_v4 }
 0x855   :  { %v1493_v40 = vadd.f32 %v3922_v36, %v1492_v39 }
 0x857   :  { %v1507_v41 = vpack.c.bf16 %v1493_v40, %v4726_v0  ;;  %v1719_v0 = vpop.f32.mrf.mxu0 }
 0x858   :  { %v1720_v58 = vadd.f32 %v1719_v0, %v4909_v30 }
 0x859   :  { %1748 = vmatmul.mubr.bf16.gmra.mxu0 %v1507_v41  ;;  %3512 = vmatmul.mubr.bf16.gmra.mxu1 %v1507_v41  ;;  %v1721_v44 = vpop.f32.mrf.mxu0 }
 0x85a   :  { %2048 = vmatprep.mubr.bf16.mxu0 %v5269_v14  ;;  %3531 = vmatprep.mubr.msk.bf16.mxu1 %vm4146_vm0, %v5268_v6 }
 0x85b   :  { %v4870_v20 = vpop.f32.mrf.mxu0 }
 0x85d   :  { %v4872_v19 = vpop.f32.mrf.mxu0 }
 0x85f   :  { %v4874_v12 = vpop.f32.mrf.mxu0 }
 0x861   :  { %2049 = vmatmul.mubr.bf16.vlgmr.msra.gmra.mxu0 %v5274_v9  ;;  %3532 = vmatmul.mubr.bf16.vlgmr.msra.gmra.mxu1 %v5274_v9  ;;  %v4876_v55 = vpop.f32.mrf.mxu0  ;;  %v5283_v9 = vsub.s32 1, %v5278_v59 }
 0x862   :  { %2123 = vmatpush1.bf16.msra.mxu0 %v4743_v61  ;;  %3536 = vmatpush3.bf16.msra.mxu1 %v4783_v25 }
 0x863   :  { %2124 = vmatprep.subr.bf16.mxu0 %v4747_v28  ;;  %3537 = vmatprep.subr.bf16.mxu1 %v5268_v6  ;;  %v4878_v53 = vpop.f32.mrf.mxu0  ;;  %v4922_v29 = vrot.slane %v1540_v18, %v5283_v9 }
 0x864   :  { %2154 = vmatprep.mubr.bf16.mxu0 %v5269_v14  ;;  %3551 = vmatprep.mubr.msk.bf16.mxu1 %vm4146_vm0, %v5268_v6 }
 0x865   :  { %v4880_v22 = vpop.f32.mrf.mxu0 }
 0x866   :  { %2125 = vmatpush1.bf16.msra.mxu0 %v4749_v11  ;;  %3538 = vmatpush3.bf16.msra.mxu1 %v4793_v43 }
 0x867   :  { %2126 = vmatprep.subr.bf16.mxu0 %v4753_v56  ;;  %3539 = vmatprep.subr.bf16.mxu1 %v5268_v6  ;;  %v4884_v23 = vpop.f32.mrf.mxu0 }
 0x869   :  { %v4886_v46 = vpop.f32.mrf.mxu0 }
 0x86a   :  { %2127 = vmatpush1.bf16.msra.mxu0 %v4755_v42  ;;  %3540 = vmatpush3.bf16.msra.mxu1 %v4797_v8 }
 0x86b   :  { %2128 = vmatprep.subr.bf16.mxu0 %v4759_v38  ;;  %3541 = vmatprep.subr.bf16.mxu1 %v5268_v6  ;;  %v4890_v49 = vpop.f32.mrf.mxu0 }
 0x86d   :  { %v4894_v47 = vpop.f32.mrf.mxu0 }
 0x86e   :  { %2129 = vmatpush1.bf16.msra.mxu0 %v4761_v57  ;;  %3542 = vmatpush3.bf16.msra.mxu1 %v4801_v15 }
 0x86f   :  { %2130 = vmatprep.subr.bf16.mxu0 %v4765_v62  ;;  %3543 = vmatprep.subr.bf16.mxu1 %v5268_v6 }
 0x872   :  { %2131 = vmatpush1.bf16.msra.mxu0 %v4767_v31  ;;  %3544 = vmatpush3.bf16.msra.mxu1 %v4805_v7 }
 0x873   :  { %2132 = vmatprep.subr.bf16.mxu0 %v4771_v63  ;;  %3545 = vmatprep.subr.bf16.mxu1 %v5268_v6 }
 0x876   :  { %2133 = vmatpush1.bf16.msra.mxu0 %v4773_v2  ;;  %3546 = vmatpush3.bf16.msra.mxu1 %v4809_v54 }
 0x877   :  { %2134 = vmatprep.subr.bf16.mxu0 %v4777_v1  ;;  %3547 = vmatprep.subr.bf16.mxu1 %v5268_v6 }
 0x87a   :  { %2135 = vmatpush1.bf16.msra.mxu0 %v4779_v3  ;;  %3548 = vmatpush3.bf16.msra.mxu1 %v4813_v16 }
 0x87b   :  { %2136 = vmatprep.subr.bf16.mxu0 %v4781_v35  ;;  %3549 = vmatprep.subr.bf16.mxu1 %v5268_v6 }
 0x87e   :  { %2137 = vmatpush1.bf16.msra.mxu0 %v4788_v24  ;;  %3550 = vmatpush3.bf16.msra.mxu1 %v4817_v5 }
 0x87f   :  { %2228 = vmatprep.subr.bf16.mxu0 %v4741_v60  ;;  %3555 = vmatprep.subr.bf16.mxu1 %v5268_v6 }
 0x919   :  { %v4899_v52 = vpop.f32.mrf.mxu0  ;;  %v4901_v48 = vpop.f32.mrf.mxu1 }
 0x91a   :  { %5275 = vst [vmem:[#allocation20_spill] sm:$0xff] %v4899_v52  ;;  %5276 = vst [vmem:[#allocation18_spill] sm:$0xff] %v4901_v48 }
 0x91b   :  { %v4903_v27 = vpop.f32.mrf.mxu0  ;;  %v4905_v50 = vpop.f32.mrf.mxu1 }
 0x91c   :  { %5277 = vst [vmem:[#allocation21_spill] sm:$0xff] %v4903_v27 }
 0x91d   :  { %v4911_v32 = vpop.f32.mrf.mxu0  ;;  %v4913_v26 = vpop.f32.mrf.mxu1 }
 0x91e   :  { %5280 = vst [vmem:[#allocation19_spill] sm:$0xff] %v4911_v32  ;;  %5281 = vst [vmem:[#allocation17_spill] sm:$0xff] %v4913_v26 }
 0x91f   :  { %v4915_v33 = vpop.f32.mrf.mxu0  ;;  %v4917_v34 = vpop.f32.mrf.mxu1 }
 0x920   :  { %5282 = vst [vmem:[#allocation22_spill] sm:$0xff] %v4915_v33  ;;  %v1722_v33 = vadd.f32 %v1721_v44, %v4922_v29 }
 0x921   :  { %v2050_v10 = vpop.f32.mrf.mxu0  ;;  %v2091_v13 = vpop.f32.mrf.mxu1 }
 0x922   :  { %v2100_v36 = vadd.f32 %v2050_v10, %v1720_v58  ;;  %v4928_v58 = vld [vmem:[%s5248_s8] ss:$0 sm:$0xff] }
 0x923   :  { %v2052_v4 = vpop.f32.mrf.mxu0  ;;  %v3533_v37 = vpop.f32.mrf.mxu1  ;;  %v2114_v10 = vadd.f32 %v4928_v58, %v2091_v13 }
 0x924   :  { %v3105_v39 = vmul.f32 -1.442695, %v2100_v36  ;;  %v2107_v48 = vadd.f32 %v2052_v4, %v1722_v33  ;;  %v5284_v37 = vsub.s32 2, %v5278_v59 }
 0x925   :  { %v2054_v40 = vpop.f32.mrf.mxu0  ;;  %v2094_v41 = vpop.f32.mrf.mxu1 }
 0x926   :  { %3925 = vpow2.f32 %v3105_v39  ;;  %v3106_v27 = vmul.f32 -1.442695, %v2107_v48 }
 0x927   :  { %v2055_v26 = vpop.f32.mrf.mxu0  ;;  %v3534_v32 = vpop.f32.mrf.mxu1 }
 0x928   :  { %3927 = vpow2.f32 %v3106_v27  ;;  %v4933_v26 = vrot.slane %v1540_v18, %v5284_v37 }
 0x92a   :  { %v1793_v44 = vadd.f32 %v1792_v17, %v4933_v26  ;;  %v1724_v17 = vadd.f32 %v4870_v20, %v4909_v30 }
 0x933   :  { %v3926_v0 = vpop.eup %3925 }
 0x934   :  { %v2104_v52 = vadd.f32 1.0, %v3926_v0 }
 0x935   :  { %v3928_v36 = vpop.eup %3927 }
 0x936   :  { %3929 = vrcp.f32 %v2104_v52  ;;  %v2111_v33 = vadd.f32 1.0, %v3928_v36 }
 0x943   :  { %v3930_v32 = vpop.eup %3929 }
 0x944   :  { %v2115_v48 = vmul.f32 %v3930_v32, %v2114_v10 }
 0x946   :  { %v2116_v4 = vadd.f32 %v2115_v48, %v1793_v44 }
 0x948   :  { %3931 = vtanh.f32 %v2116_v4 }
 0x949   :  { %3933 = vrcp.f32 %v2111_v33  ;;  %v1726_v33 = vadd.f32 %v4872_v19, %v4922_v29 }
 0x955   :  { %v3932_v52 = vpop.eup %3931 }
 0x956   :  { %v2118_v27 = vsub.f32 0.0, %v3932_v52  ;;  %v3934_v39 = vpop.eup %3933 }
 0x958   :  { %v2119_v40 = vmul.f32 %v3934_v39, %v2118_v27 }
 0x95a   :  { %v4936_v41 = vadd.f32 %v3932_v52, %v2119_v40 }
 0x95c   :  { %v2121_v13 = vpack.c.bf16 %v4936_v41, %v4936_v41 }
 0x95e   :  { %2155 = vmatmul.mubr.bf16.vlgmr.msra.gmra.mxu0 %v2121_v13  ;;  %3552 = vmatmul.mubr.bf16.vlgmr.msra.gmra.mxu1 %v2121_v13 }
 0x95f   :  { %2229 = vmatpush1.bf16.msra.mxu0 %v4743_v61  ;;  %3556 = vmatpush3.bf16.msra.mxu1 %v4783_v25 }
 0x960   :  { %2230 = vmatprep.subr.bf16.mxu0 %v4747_v28  ;;  %3557 = vmatprep.subr.bf16.mxu1 %v5268_v6 }
 0x961   :  { %2260 = vmatprep.mubr.bf16.mxu0 %v5269_v14  ;;  %3571 = vmatprep.mubr.msk.bf16.mxu1 %vm4146_vm0, %v5268_v6 }
 0x963   :  { %2231 = vmatpush1.bf16.msra.mxu0 %v4749_v11  ;;  %3558 = vmatpush3.bf16.msra.mxu1 %v4793_v43 }
 0x964   :  { %2232 = vmatprep.subr.bf16.mxu0 %v4753_v56  ;;  %3559 = vmatprep.subr.bf16.mxu1 %v5268_v6 }
 0x967   :  { %2233 = vmatpush1.bf16.msra.mxu0 %v4755_v42  ;;  %3560 = vmatpush3.bf16.msra.mxu1 %v4797_v8 }
 0x968   :  { %2234 = vmatprep.subr.bf16.mxu0 %v4759_v38  ;;  %3561 = vmatprep.subr.bf16.mxu1 %v5268_v6 }
 0x96b   :  { %2235 = vmatpush1.bf16.msra.mxu0 %v4761_v57  ;;  %3562 = vmatpush3.bf16.msra.mxu1 %v4801_v15 }
 0x96c   :  { %2236 = vmatprep.subr.bf16.mxu0 %v4765_v62  ;;  %3563 = vmatprep.subr.bf16.mxu1 %v5268_v6 }
 0x96f   :  { %2237 = vmatpush1.bf16.msra.mxu0 %v4767_v31  ;;  %3564 = vmatpush3.bf16.msra.mxu1 %v4805_v7 }
 0x970   :  { %2238 = vmatprep.subr.bf16.mxu0 %v4771_v63  ;;  %3565 = vmatprep.subr.bf16.mxu1 %v5268_v6 }
 0x973   :  { %2239 = vmatpush1.bf16.msra.mxu0 %v4773_v2  ;;  %3566 = vmatpush3.bf16.msra.mxu1 %v4809_v54 }
 0x974   :  { %2240 = vmatprep.subr.bf16.mxu0 %v4777_v1  ;;  %3567 = vmatprep.subr.bf16.mxu1 %v5268_v6 }
 0x977   :  { %2241 = vmatpush1.bf16.msra.mxu0 %v4779_v3  ;;  %3568 = vmatpush3.bf16.msra.mxu1 %v4813_v16 }
 0x978   :  { %2242 = vmatprep.subr.bf16.mxu0 %v4781_v35  ;;  %3569 = vmatprep.subr.bf16.mxu1 %v5268_v6 }
 0x97b   :  { %2243 = vmatpush1.bf16.msra.mxu0 %v4788_v24  ;;  %3570 = vmatpush3.bf16.msra.mxu1 %v4817_v5 }
 0x97c   :  { %2334 = vmatprep.subr.bf16.mxu0 %v4741_v60  ;;  %3575 = vmatprep.subr.bf16.mxu1 %v5268_v6 }
 0xa1e   :  { %v2156_v18 = vpop.f32.mrf.mxu0  ;;  %v2197_v59 = vpop.f32.mrf.mxu1 }
 0xa1f   :  { %v2206_v9 = vadd.f32 %v2156_v18, %v1724_v17  ;;  %v2220_v40 = vadd.f32 %v4928_v58, %v2197_v59  ;;  %v1796_v17 = vadd.f32 %v4892_v51, %v4933_v26  ;;  %v1730_v51 = vadd.f32 %v4874_v12, %v4909_v30 }
 0xa20   :  { %v2158_v0 = vpop.f32.mrf.mxu0  ;;  %v3553_v10 = vpop.f32.mrf.mxu1 }
 0xa21   :  { %v3107_v36 = vmul.f32 -1.442695, %v2206_v9  ;;  %v2213_v4 = vadd.f32 %v2158_v0, %v1726_v33 }
 0xa22   :  { %v2160_v37 = vpop.f32.mrf.mxu0  ;;  %v2200_v32 = vpop.f32.mrf.mxu1 }
 0xa23   :  { %3935 = vpow2.f32 %v3107_v36  ;;  %v3108_v52 = vmul.f32 -1.442695, %v2213_v4 }
 0xa24   :  { %v2161_v44 = vpop.f32.mrf.mxu0  ;;  %v3554_v48 = vpop.f32.mrf.mxu1 }
 0xa25   :  { %3937 = vpow2.f32 %v3108_v52 }
 0xa30   :  { %v3936_v27 = vpop.eup %3935 }
 0xa31   :  { %v2210_v39 = vadd.f32 1.0, %v3936_v27 }
 0xa32   :  { %v3938_v20 = vpop.eup %3937 }
 0xa33   :  { %3939 = vrcp.f32 %v2210_v39  ;;  %v2217_v10 = vadd.f32 1.0, %v3938_v20 }
 0xa40   :  { %v3940_v13 = vpop.eup %3939 }
 0xa41   :  { %v2221_v18 = vmul.f32 %v3940_v13, %v2220_v40  ;;  %v1732_v13 = vadd.f32 %v4876_v55, %v4922_v29 }
 0xa43   :  { %v2222_v9 = vadd.f32 %v2221_v18, %v1796_v17 }
 0xa45   :  { %3941 = vtanh.f32 %v2222_v9 }
 0xa46   :  { %3943 = vrcp.f32 %v2217_v10 }
 0xa52   :  { %v3942_v36 = vpop.eup %3941 }
 0xa53   :  { %v2224_v19 = vsub.f32 %v4936_v41, %v3942_v36  ;;  %v3944_v0 = vpop.eup %3943 }
 0xa55   :  { %v2225_v37 = vmul.f32 %v3944_v0, %v2224_v19  ;;  %v1801_v0 = vadd.f32 %v4882_v21, %v4933_v26  ;;  %v1734_v21 = vadd.f32 %v4878_v53, %v4909_v30 }
 0xa57   :  { %v4983_v32 = vadd.f32 %v3942_v36, %v2225_v37 }
 0xa59   :  { %v2227_v44 = vpack.c.bf16 %v4983_v32, %v4983_v32 }
 0xa5b   :  { %2261 = vmatmul.mubr.bf16.vlgmr.msra.gmra.mxu0 %v2227_v44  ;;  %3572 = vmatmul.mubr.bf16.vlgmr.msra.gmra.mxu1 %v2227_v44 }
 0xa5c   :  { %2335 = vmatpush1.bf16.msra.mxu0 %v4743_v61  ;;  %3576 = vmatpush3.bf16.msra.mxu1 %v4783_v25 }
 0xa5d   :  { %2336 = vmatprep.subr.bf16.mxu0 %v4747_v28  ;;  %3577 = vmatprep.subr.bf16.mxu1 %v5268_v6 }
 0xa5e   :  { %2366 = vmatprep.mubr.bf16.mxu0 %v5269_v14  ;;  %3591 = vmatprep.mubr.msk.bf16.mxu1 %vm4146_vm0, %v5268_v6 }
 0xa60   :  { %2337 = vmatpush1.bf16.msra.mxu0 %v4749_v11  ;;  %3578 = vmatpush3.bf16.msra.mxu1 %v4793_v43 }
 0xa61   :  { %2338 = vmatprep.subr.bf16.mxu0 %v4753_v56  ;;  %3579 = vmatprep.subr.bf16.mxu1 %v5268_v6 }
 0xa64   :  { %2339 = vmatpush1.bf16.msra.mxu0 %v4755_v42  ;;  %3580 = vmatpush3.bf16.msra.mxu1 %v4797_v8 }
 0xa65   :  { %2340 = vmatprep.subr.bf16.mxu0 %v4759_v38  ;;  %3581 = vmatprep.subr.bf16.mxu1 %v5268_v6 }
 0xa68   :  { %2341 = vmatpush1.bf16.msra.mxu0 %v4761_v57  ;;  %3582 = vmatpush3.bf16.msra.mxu1 %v4801_v15 }
 0xa69   :  { %2342 = vmatprep.subr.bf16.mxu0 %v4765_v62  ;;  %3583 = vmatprep.subr.bf16.mxu1 %v5268_v6 }
 0xa6c   :  { %2343 = vmatpush1.bf16.msra.mxu0 %v4767_v31  ;;  %3584 = vmatpush3.bf16.msra.mxu1 %v4805_v7 }
 0xa6d   :  { %2344 = vmatprep.subr.bf16.mxu0 %v4771_v63  ;;  %3585 = vmatprep.subr.bf16.mxu1 %v5268_v6 }
 0xa70   :  { %2345 = vmatpush1.bf16.msra.mxu0 %v4773_v2  ;;  %3586 = vmatpush3.bf16.msra.mxu1 %v4809_v54 }
 0xa71   :  { %2346 = vmatprep.subr.bf16.mxu0 %v4777_v1  ;;  %3587 = vmatprep.subr.bf16.mxu1 %v5268_v6 }
 0xa74   :  { %2347 = vmatpush1.bf16.msra.mxu0 %v4779_v3  ;;  %3588 = vmatpush3.bf16.msra.mxu1 %v4813_v16 }
 0xa75   :  { %2348 = vmatprep.subr.bf16.mxu0 %v4781_v35  ;;  %3589 = vmatprep.subr.bf16.mxu1 %v5268_v6 }
 0xa78   :  { %2349 = vmatpush1.bf16.msra.mxu0 %v4788_v24  ;;  %3590 = vmatpush3.bf16.msra.mxu1 %v4817_v5 }
 0xa79   :  { %2440 = vmatprep.subr.bf16.mxu0 %v4741_v60  ;;  %3595 = vmatprep.subr.bf16.mxu1 %v5268_v6 }
 0xb1b   :  { %v2262_v41 = vpop.f32.mrf.mxu0  ;;  %v2303_v59 = vpop.f32.mrf.mxu1 }
 0xb1c   :  { %v2312_v48 = vadd.f32 %v2262_v41, %v1730_v51  ;;  %v2326_v36 = vadd.f32 %v4928_v58, %v2303_v59 }
 0xb1d   :  { %v2264_v33 = vpop.f32.mrf.mxu0  ;;  %v3573_v4 = vpop.f32.mrf.mxu1 }
 0xb1e   :  { %v3109_v52 = vmul.f32 -1.442695, %v2312_v48  ;;  %v2319_v17 = vadd.f32 %v2264_v33, %v1732_v13 }
 0xb1f   :  { %v2266_v27 = vpop.f32.mrf.mxu0  ;;  %v2306_v39 = vpop.f32.mrf.mxu1 }
 0xb20   :  { %3945 = vpow2.f32 %v3109_v52  ;;  %v3110_v18 = vmul.f32 -1.442695, %v2319_v17 }
 0xb21   :  { %v2267_v20 = vpop.f32.mrf.mxu0  ;;  %v3574_v40 = vpop.f32.mrf.mxu1 }
 0xb22   :  { %3947 = vpow2.f32 %v3110_v18 }
 0xb2d   :  { %v3946_v9 = vpop.eup %3945 }
 0xb2e   :  { %v2316_v10 = vadd.f32 1.0, %v3946_v9 }
 0xb2f   :  { %v3948_v12 = vpop.eup %3947 }
 0xb30   :  { %3949 = vrcp.f32 %v2316_v10  ;;  %v2323_v51 = vadd.f32 1.0, %v3948_v12  ;;  %v1736_v10 = vadd.f32 %v4880_v22, %v4922_v29 }
 0xb3d   :  { %v3950_v19 = vpop.eup %3949 }
 0xb3e   :  { %v2327_v37 = vmul.f32 %v3950_v19, %v2326_v36 }
 0xb40   :  { %v2328_v44 = vadd.f32 %v2327_v37, %v1801_v0 }
 0xb42   :  { %3951 = vtanh.f32 %v2328_v44 }
 0xb43   :  { %3953 = vrcp.f32 %v2323_v51  ;;  %v1804_v51 = vadd.f32 %v4888_v45, %v4933_v26  ;;  %v1740_v45 = vadd.f32 %v4884_v23, %v4909_v30 }
 0xb4f   :  { %v3952_v41 = vpop.eup %3951 }
 0xb50   :  { %v2330_v55 = vsub.f32 %v4983_v32, %v3952_v41  ;;  %v3954_v48 = vpop.eup %3953 }
 0xb52   :  { %v2331_v33 = vmul.f32 %v3954_v48, %v2330_v55 }
 0xb54   :  { %v5030_v4 = vadd.f32 %v3952_v41, %v2331_v33 }
 0xb56   :  { %v2333_v52 = vpack.c.bf16 %v5030_v4, %v5030_v4 }
 0xb58   :  { %2367 = vmatmul.mubr.bf16.vlgmr.msra.gmra.mxu0 %v2333_v52  ;;  %3592 = vmatmul.mubr.bf16.vlgmr.msra.gmra.mxu1 %v2333_v52 }
 0xb59   :  { %2441 = vmatpush1.bf16.msra.mxu0 %v4743_v61  ;;  %3596 = vmatpush3.bf16.msra.mxu1 %v4783_v25 }
 0xb5a   :  { %2442 = vmatprep.subr.bf16.mxu0 %v4747_v28  ;;  %3597 = vmatprep.subr.bf16.mxu1 %v5268_v6 }
 0xb5b   :  { %2472 = vmatprep.mubr.bf16.mxu0 %v5269_v14  ;;  %3611 = vmatprep.mubr.msk.bf16.mxu1 %vm4146_vm0, %v5268_v6 }
 0xb5d   :  { %2443 = vmatpush1.bf16.msra.mxu0 %v4749_v11  ;;  %3598 = vmatpush3.bf16.msra.mxu1 %v4793_v43 }
 0xb5e   :  { %2444 = vmatprep.subr.bf16.mxu0 %v4753_v56  ;;  %3599 = vmatprep.subr.bf16.mxu1 %v5268_v6 }
 0xb61   :  { %2445 = vmatpush1.bf16.msra.mxu0 %v4755_v42  ;;  %3600 = vmatpush3.bf16.msra.mxu1 %v4797_v8 }
 0xb62   :  { %2446 = vmatprep.subr.bf16.mxu0 %v4759_v38  ;;  %3601 = vmatprep.subr.bf16.mxu1 %v5268_v6 }
 0xb65   :  { %2447 = vmatpush1.bf16.msra.mxu0 %v4761_v57  ;;  %3602 = vmatpush3.bf16.msra.mxu1 %v4801_v15 }
 0xb66   :  { %2448 = vmatprep.subr.bf16.mxu0 %v4765_v62  ;;  %3603 = vmatprep.subr.bf16.mxu1 %v5268_v6 }
 0xb69   :  { %2449 = vmatpush1.bf16.msra.mxu0 %v4767_v31  ;;  %3604 = vmatpush3.bf16.msra.mxu1 %v4805_v7 }
 0xb6a   :  { %2450 = vmatprep.subr.bf16.mxu0 %v4771_v63  ;;  %3605 = vmatprep.subr.bf16.mxu1 %v5268_v6 }
 0xb6d   :  { %2451 = vmatpush1.bf16.msra.mxu0 %v4773_v2  ;;  %3606 = vmatpush3.bf16.msra.mxu1 %v4809_v54 }
 0xb6e   :  { %2452 = vmatprep.subr.bf16.mxu0 %v4777_v1  ;;  %3607 = vmatprep.subr.bf16.mxu1 %v5268_v6 }
 0xb71   :  { %2453 = vmatpush1.bf16.msra.mxu0 %v4779_v3  ;;  %3608 = vmatpush3.bf16.msra.mxu1 %v4813_v16 }
 0xb72   :  { %2454 = vmatprep.subr.bf16.mxu0 %v4781_v35  ;;  %3609 = vmatprep.subr.bf16.mxu1 %v5268_v6 }
 0xb75   :  { %2455 = vmatpush1.bf16.msra.mxu0 %v4788_v24  ;;  %3610 = vmatpush3.bf16.msra.mxu1 %v4817_v5 }
 0xb76   :  { %2546 = vmatprep.subr.bf16.mxu0 %v4741_v60  ;;  %3615 = vmatprep.subr.bf16.mxu1 %v5268_v6 }
 0xc18   :  { %v2368_v32 = vpop.f32.mrf.mxu0  ;;  %v2409_v59 = vpop.f32.mrf.mxu1 }
 0xc19   :  { %v2418_v27 = vadd.f32 %v2368_v32, %v1734_v21  ;;  %v2432_v37 = vadd.f32 %v4928_v58, %v2409_v59 }
 0xc1a   :  { %v2370_v39 = vpop.f32.mrf.mxu0  ;;  %v3593_v20 = vpop.f32.mrf.mxu1 }
 0xc1b   :  { %v3111_v40 = vmul.f32 -1.442695, %v2418_v27  ;;  %v2425_v12 = vadd.f32 %v2370_v39, %v1736_v10 }
 0xc1c   :  { %v2372_v13 = vpop.f32.mrf.mxu0  ;;  %v2412_v17 = vpop.f32.mrf.mxu1 }
 0xc1d   :  { %3955 = vpow2.f32 %v3111_v40  ;;  %v3112_v36 = vmul.f32 -1.442695, %v2425_v12  ;;  %v1742_v12 = vadd.f32 %v4886_v46, %v4922_v29 }
 0xc1e   :  { %v2373_v18 = vpop.f32.mrf.mxu0  ;;  %v3594_v9 = vpop.f32.mrf.mxu1 }
 0xc1f   :  { %3957 = vpow2.f32 %v3112_v36 }
 0xc2a   :  { %v3956_v19 = vpop.eup %3955 }
 0xc2b   :  { %v2422_v0 = vadd.f32 1.0, %v3956_v19 }
 0xc2c   :  { %v3958_v53 = vpop.eup %3957 }
 0xc2d   :  { %3959 = vrcp.f32 %v2422_v0  ;;  %v2429_v48 = vadd.f32 1.0, %v3958_v53 }
 0xc3a   :  { %v3960_v44 = vpop.eup %3959 }
 0xc3b   :  { %v2433_v41 = vmul.f32 %v3960_v44, %v2432_v37 }
 0xc3d   :  { %v2434_v55 = vadd.f32 %v2433_v41, %v1804_v51  ;;  %v1809_v51 = vadd.f32 %v4905_v50, %v4933_v26 }
 0xc3f   :  { %3961 = vtanh.f32 %v2434_v55 }
 0xc40   :  { %3963 = vrcp.f32 %v2429_v48 }
 0xc4c   :  { %v3962_v33 = vpop.eup %3961 }
 0xc4d   :  { %v2436_v22 = vsub.f32 %v5030_v4, %v3962_v33  ;;  %v3964_v52 = vpop.eup %3963 }
 0xc4f   :  { %v2437_v21 = vmul.f32 %v3964_v52, %v2436_v22 }
 0xc51   :  { %v5077_v32 = vadd.f32 %v3962_v33, %v2437_v21 }
 0xc53   :  { %v2439_v27 = vpack.c.bf16 %v5077_v32, %v5077_v32 }
 0xc55   :  { %2473 = vmatmul.mubr.bf16.vlgmr.msra.gmra.mxu0 %v2439_v27  ;;  %3612 = vmatmul.mubr.bf16.vlgmr.msra.gmra.mxu1 %v2439_v27 }
 0xc56   :  { %2547 = vmatpush1.bf16.msra.mxu0 %v4743_v61  ;;  %3616 = vmatpush3.bf16.msra.mxu1 %v4783_v25 }
 0xc57   :  { %2548 = vmatprep.subr.bf16.mxu0 %v4747_v28  ;;  %3617 = vmatprep.subr.bf16.mxu1 %v5268_v6 }
 0xc58   :  { %2578 = vmatprep.mubr.bf16.mxu0 %v5269_v14  ;;  %3631 = vmatprep.mubr.msk.bf16.mxu1 %vm4146_vm0, %v5268_v6 }
 0xc5a   :  { %2549 = vmatpush1.bf16.msra.mxu0 %v4749_v11  ;;  %3618 = vmatpush3.bf16.msra.mxu1 %v4793_v43 }
 0xc5b   :  { %2550 = vmatprep.subr.bf16.mxu0 %v4753_v56  ;;  %3619 = vmatprep.subr.bf16.mxu1 %v5268_v6 }
 0xc5e   :  { %2551 = vmatpush1.bf16.msra.mxu0 %v4755_v42  ;;  %3620 = vmatpush3.bf16.msra.mxu1 %v4797_v8 }
 0xc5f   :  { %2552 = vmatprep.subr.bf16.mxu0 %v4759_v38  ;;  %3621 = vmatprep.subr.bf16.mxu1 %v5268_v6 }
 0xc62   :  { %2553 = vmatpush1.bf16.msra.mxu0 %v4761_v57  ;;  %3622 = vmatpush3.bf16.msra.mxu1 %v4801_v15 }
 0xc63   :  { %2554 = vmatprep.subr.bf16.mxu0 %v4765_v62  ;;  %3623 = vmatprep.subr.bf16.mxu1 %v5268_v6 }
 0xc66   :  { %2555 = vmatpush1.bf16.msra.mxu0 %v4767_v31  ;;  %3624 = vmatpush3.bf16.msra.mxu1 %v4805_v7 }
 0xc67   :  { %2556 = vmatprep.subr.bf16.mxu0 %v4771_v63  ;;  %3625 = vmatprep.subr.bf16.mxu1 %v5268_v6 }
 0xc6a   :  { %2557 = vmatpush1.bf16.msra.mxu0 %v4773_v2  ;;  %3626 = vmatpush3.bf16.msra.mxu1 %v4809_v54 }
 0xc6b   :  { %2558 = vmatprep.subr.bf16.mxu0 %v4777_v1  ;;  %3627 = vmatprep.subr.bf16.mxu1 %v5268_v6 }
 0xc6e   :  { %2559 = vmatpush1.bf16.msra.mxu0 %v4779_v3  ;;  %3628 = vmatpush3.bf16.msra.mxu1 %v4813_v16 }
 0xc6f   :  { %2560 = vmatprep.subr.bf16.mxu0 %v4781_v35  ;;  %3629 = vmatprep.subr.bf16.mxu1 %v5268_v6 }
 0xc72   :  { %2561 = vmatpush1.bf16.msra.mxu0 %v4788_v24  ;;  %3630 = vmatpush3.bf16.msra.mxu1 %v4817_v5 }
 0xc73   :  { %2652 = vmatprep.subr.bf16.mxu0 %v4741_v60  ;;  %3635 = vmatprep.subr.bf16.mxu1 %v5268_v6 }
 0xd15   :  { %v2474_v4 = vpop.f32.mrf.mxu0  ;;  %v2515_v59 = vpop.f32.mrf.mxu1 }
 0xd16   :  { %v2524_v39 = vadd.f32 %v2474_v4, %v1740_v45  ;;  %v2538_v37 = vadd.f32 %v4928_v58, %v2515_v59  ;;  %v4029_v4 = vld [vmem:[#allocation12 + $0xa8] ss:$12 sps:$4 sm:$0xff]  }
 0xd17   :  { %v2476_v20 = vpop.f32.mrf.mxu0  ;;  %v3613_v40 = vpop.f32.mrf.mxu1  ;;  %v4031_v59 = vld [vmem:[#allocation12 + $0x94] ss:$12 sps:$4 sm:$0xff]  }
 0xd18   :  { %v3113_v13 = vmul.f32 -1.442695, %v2524_v39  ;;  %v2531_v36 = vadd.f32 %v2476_v20, %v1742_v12  ;;  %v4032_v39 = vld [vmem:[#allocation12 + $0x90] ss:$12 sps:$4 sm:$0xff]   ;;  %v4033_v20 = vld [vmem:[#allocation12 + $0x98] ss:$12 sps:$4 sm:$0xff]  }
 0xd19   :  { %v2478_v17 = vpop.f32.mrf.mxu0  ;;  %v2518_v18 = vpop.f32.mrf.mxu1  ;;  %v4034_v40 = vld [vmem:[#allocation12 + $0x7c] ss:$12 sps:$4 sm:$0xff]  }
 0xd1a   :  { %3965 = vpow2.f32 %v3113_v13  ;;  %v3114_v19 = vmul.f32 -1.442695, %v2531_v36  ;;  %v4035_v13 = vld [vmem:[#allocation12 + $0x78] ss:$12 sps:$4 sm:$0xff]   ;;  %v4036_v17 = vld [vmem:[#allocation12 + $0x80] ss:$12 sps:$4 sm:$0xff]  }
 0xd1b   :  { %v2479_v9 = vpop.f32.mrf.mxu0  ;;  %v3614_v10 = vpop.f32.mrf.mxu1  ;;  %v4037_v18 = vld [vmem:[#allocation12 + $0x64] ss:$12 sps:$4 sm:$0xff]   ;;  %v4041_v12 = vld [vmem:[#allocation12 + $0x48] ss:$12 sps:$4 sm:$0xff]  }
 0xd1c   :  { %3967 = vpow2.f32 %v3114_v19  ;;  %v4039_v9 = vld [vmem:[#allocation12 + $0x68] ss:$12 sps:$4 sm:$0xff]   ;;  %v4040_v10 = vld [vmem:[#allocation12 + $0x4c] ss:$12 sps:$4 sm:$0xff]   ;;  %v4042_v36 = vld [vmem:[#allocation12 + $0x50] ss:$12 sps:$4 sm:$0xff]  }
 0xd1d   :  { %v4043_v19 = vld [vmem:[#allocation12 + $0x34] ss:$12 sps:$4 sm:$0xff]  }
 0xd27   :  { %v3966_v0 = vpop.eup %3965 }
 0xd28   :  { %v2528_v53 = vadd.f32 1.0, %v3966_v0  ;;  %v4044_v0 = vld [vmem:[#allocation12 + $0x30] ss:$12 sps:$4 sm:$0xff]  }
 0xd29   :  { %v3968_v23 = vpop.eup %3967 }
 0xd2a   :  { %3969 = vrcp.f32 %v2528_v53  ;;  %v2535_v48 = vadd.f32 1.0, %v3968_v23  ;;  %v4045_v53 = vld [vmem:[#allocation12 + $0x38] ss:$12 sps:$4 sm:$0xff]   ;;  %v4046_v23 = vld [vmem:[#allocation12 + $0x1c] ss:$12 sps:$4 sm:$0xff]  }
 0xd37   :  { %v3970_v44 = vpop.eup %3969 }
 0xd38   :  { %v2539_v41 = vmul.f32 %v3970_v44, %v2538_v37  ;;  %v4047_v37 = vld [vmem:[#allocation12 + $0x18] ss:$12 sps:$4 sm:$0xff]   ;;  %v4048_v44 = vld [vmem:[#allocation12 + $0x20] ss:$12 sps:$4 sm:$0xff]  }
 0xd3a   :  { %v2540_v55 = vadd.f32 %v2539_v41, %v1809_v51  ;;  %v4049_v51 = vld [vmem:[#allocation12 + $0x4] ss:$12 sps:$4 sm:$0xff]   ;;  %v4050_v41 = vld [vmem:[#allocation12] ss:$12 sps:$4 sm:$0xff]  }
 0xd3c   :  { %3971 = vtanh.f32 %v2540_v55  ;;  %v4051_v55 = vld [vmem:[#allocation12 + $0x8] ss:$12 sps:$4 sm:$0xff]  }
 0xd3d   :  { %3973 = vrcp.f32 %v2535_v48  ;;  %v5285_v48 = vld [vmem:[#allocation20_spill] sm:$0xff] }
 0xd49   :  { %v3972_v33 = vpop.eup %3971 }
 0xd4a   :  { %v2542_v46 = vsub.f32 %v5077_v32, %v3972_v33  ;;  %v3974_v22 = vpop.eup %3973 }
 0xd4c   :  { %v2543_v52 = vmul.f32 %v3974_v22, %v2542_v46 }
 0xd4e   :  { %v5124_v21 = vadd.f32 %v3972_v33, %v2543_v52  ;;  %v1750_v33 = vadd.f32 %v5285_v48, %v4909_v30  ;;  %v5290_v48 = vld [vmem:[#allocation17_spill] sm:$0xff] }
 0xd50   :  { %v2545_v27 = vpack.c.bf16 %v5124_v21, %v5124_v21 }
 0xd52   :  { %2579 = vmatmul.mubr.bf16.vlgmr.msra.gmra.mxu0 %v2545_v27  ;;  %3632 = vmatmul.mubr.bf16.vlgmr.msra.gmra.mxu1 %v2545_v27 }
 0xd53   :  { %2653 = vmatpush1.bf16.msra.mxu0 %v4743_v61  ;;  %3636 = vmatpush3.bf16.msra.mxu1 %v4783_v25  ;;  %v1744_v61 = vadd.f32 %v4890_v49, %v4909_v30 }
 0xd54   :  { %2654 = vmatprep.subr.bf16.mxu0 %v4747_v28  ;;  %3637 = vmatprep.subr.bf16.mxu1 %v5268_v6 }
 0xd55   :  { %2684 = vmatprep.mubr.bf16.mxu0 %v5269_v14  ;;  %3651 = vmatprep.mubr.msk.bf16.mxu1 %vm4146_vm0, %v5268_v6 }
 0xd57   :  { %2655 = vmatpush1.bf16.msra.mxu0 %v4749_v11  ;;  %3638 = vmatpush3.bf16.msra.mxu1 %v4793_v43 }
 0xd58   :  { %2656 = vmatprep.subr.bf16.mxu0 %v4753_v56  ;;  %3639 = vmatprep.subr.bf16.mxu1 %v5268_v6 }
 0xd5b   :  { %2657 = vmatpush1.bf16.msra.mxu0 %v4755_v42  ;;  %3640 = vmatpush3.bf16.msra.mxu1 %v4797_v8 }
 0xd5c   :  { %2658 = vmatprep.subr.bf16.mxu0 %v4759_v38  ;;  %3641 = vmatprep.subr.bf16.mxu1 %v5268_v6 }
 0xd5f   :  { %2659 = vmatpush1.bf16.msra.mxu0 %v4761_v57  ;;  %3642 = vmatpush3.bf16.msra.mxu1 %v4801_v15  ;;  %v1812_v15 = vadd.f32 %v4917_v34, %v4933_v26  ;;  %v4030_v34 = vld [vmem:[#allocation12 + $0xb0] ss:$12 sps:$4 sm:$0xff]  }
 0xd60   :  { %2660 = vmatprep.subr.bf16.mxu0 %v4765_v62  ;;  %3643 = vmatprep.subr.bf16.mxu1 %v5268_v6 }
 0xd63   :  { %2661 = vmatpush1.bf16.msra.mxu0 %v4767_v31  ;;  %3644 = vmatpush3.bf16.msra.mxu1 %v4805_v7 }
 0xd64   :  { %2662 = vmatprep.subr.bf16.mxu0 %v4771_v63  ;;  %3645 = vmatprep.subr.bf16.mxu1 %v5268_v6 }
 0xd67   :  { %2663 = vmatpush1.bf16.msra.mxu0 %v4773_v2  ;;  %3646 = vmatpush3.bf16.msra.mxu1 %v4809_v54 }
 0xd68   :  { %2664 = vmatprep.subr.bf16.mxu0 %v4777_v1  ;;  %3647 = vmatprep.subr.bf16.mxu1 %v5268_v6  ;;  %v1746_v1 = vadd.f32 %v4894_v47, %v4922_v29 }
 0xd6b   :  { %2665 = vmatpush1.bf16.msra.mxu0 %v4779_v3  ;;  %3648 = vmatpush3.bf16.msra.mxu1 %v4813_v16 }
 0xd6c   :  { %2666 = vmatprep.subr.bf16.mxu0 %v4781_v35  ;;  %3649 = vmatprep.subr.bf16.mxu1 %v5268_v6 }
 0xd6f   :  { %2667 = vmatpush1.bf16.msra.mxu0 %v4788_v24  ;;  %3650 = vmatpush3.bf16.msra.mxu1 %v4817_v5 }
 0xd70   :  { %2758 = vmatprep.subr.bf16.mxu0 %v4741_v60  ;;  %3655 = vmatprep.subr.bf16.mxu1 %v5268_v6 }
 0xe12   :  { %v2580_v28 = vpop.f32.mrf.mxu0  ;;  %v2621_v11 = vpop.f32.mrf.mxu1 }
 0xe13   :  { %v2630_v56 = vadd.f32 %v2580_v28, %v1744_v61  ;;  %v2644_v43 = vadd.f32 %v4928_v58, %v2621_v11 }
 0xe14   :  { %v2582_v42 = vpop.f32.mrf.mxu0  ;;  %v3633_v38 = vpop.f32.mrf.mxu1 }
 0xe15   :  { %v3115_v57 = vmul.f32 -1.442695, %v2630_v56  ;;  %v2637_v60 = vadd.f32 %v2582_v42, %v1746_v1  ;;  %v5286_v38 = vld [vmem:[#allocation21_spill] sm:$0xff] }
 0xe16   :  { %v2584_v62 = vpop.f32.mrf.mxu0  ;;  %v2624_v31 = vpop.f32.mrf.mxu1 }
 0xe17   :  { %3975 = vpow2.f32 %v3115_v57  ;;  %v3116_v3 = vmul.f32 -1.442695, %v2637_v60  ;;  %v1752_v57 = vadd.f32 %v5286_v38, %v4922_v29 }
 0xe18   :  { %v2585_v63 = vpop.f32.mrf.mxu0  ;;  %v3634_v2 = vpop.f32.mrf.mxu1 }
 0xe19   :  { %3977 = vpow2.f32 %v3116_v3 }
 0xe24   :  { %v3976_v35 = vpop.eup %3975 }
 0xe25   :  { %v2634_v25 = vadd.f32 1.0, %v3976_v35  ;;  %v5287_v35 = vld [vmem:[#allocation18_spill] sm:$0xff] }
 0xe26   :  { %v3978_v24 = vpop.eup %3977 }
 0xe27   :  { %3979 = vrcp.f32 %v2634_v25  ;;  %v2641_v16 = vadd.f32 1.0, %v3978_v24  ;;  %v1817_v25 = vadd.f32 %v5287_v35, %v4933_v26 }
 0xe34   :  { %v3980_v8 = vpop.eup %3979 }
 0xe35   :  { %v2645_v7 = vmul.f32 %v3980_v8, %v2644_v43 }
 0xe37   :  { %v2646_v54 = vadd.f32 %v2645_v7, %v1812_v15 }
 0xe39   :  { %3981 = vtanh.f32 %v2646_v54 }
 0xe3a   :  { %3983 = vrcp.f32 %v2641_v16 }
 0xe46   :  { %v3982_v5 = vpop.eup %3981 }
 0xe47   :  { %v2648_v49 = vsub.f32 %v5124_v21, %v3982_v5  ;;  %v3984_v47 = vpop.eup %3983 }
 0xe49   :  { %v2649_v50 = vmul.f32 %v3984_v47, %v2648_v49  ;;  %v3837_v47 = vld [vmem:[%s5249_s9 + $0x38] sm:$0xff]  }
 0xe4b   :  { %v5171_v32 = vadd.f32 %v3982_v5, %v2649_v50  ;;  %v3838_v50 = vld [vmem:[%s5249_s9 + $0x30] sm:$0xff]  }
 0xe4d   :  { %v2651_v45 = vpack.c.bf16 %v5171_v32, %v5171_v32 }
 0xe4f   :  { %2685 = vmatmul.mubr.bf16.vlgmr.msra.gmra.mxu0 %v2651_v45  ;;  %3652 = vmatmul.mubr.bf16.vlgmr.msra.gmra.mxu1 %v2651_v45  ;;  %v3840_v45 = vld [vmem:[%s5249_s9 + $0x20] sm:$0xff]  }
 0xe50   :  { %2759 = vmatpush1.bf16.msra.mxu0 %v4029_v4  ;;  %3656 = vmatpush3.bf16.msra.mxu1 %v4030_v34  ;;  %v3841_v4 = vld [vmem:[%s5249_s9 + $0x18] sm:$0xff]   ;;  %v3842_v34 = vld [vmem:[%s5249_s9 + $0x10] sm:$0xff]  }
 0xe51   :  { %2760 = vmatprep.subr.bf16.mxu0 %v4031_v59  ;;  %3657 = vmatprep.subr.bf16.mxu1 %v5268_v6  ;;  %v3843_v59 = vld [vmem:[%s5249_s9 + $0x8] sm:$0xff]  }
 0xe52   :  { %2790 = vmatprep.mubr.bf16.mxu0 %v5269_v14  ;;  %3671 = vmatprep.mubr.msk.bf16.mxu1 %vm4146_vm0, %v5268_v6  ;;  %v4038_v14 = vld [vmem:[#allocation12 + $0x60] ss:$12 sps:$4 sm:$0xff]  }
 0xe54   :  { %2761 = vmatpush1.bf16.msra.mxu0 %v4032_v39  ;;  %3658 = vmatpush3.bf16.msra.mxu1 %v4033_v20  ;;  %v3844_v39 = vld [vmem:[%s5249_s9] sm:$0xff]   ;;  %v5288_v20 = vld [vmem:[#allocation19_spill] sm:$0xff] }
 0xe55   :  { %2762 = vmatprep.subr.bf16.mxu0 %v4034_v40  ;;  %3659 = vmatprep.subr.bf16.mxu1 %v5268_v6  ;;  %v1754_v40 = vadd.f32 %v5288_v20, %v4909_v30 }
 0xe58   :  { %2763 = vmatpush1.bf16.msra.mxu0 %v4035_v13  ;;  %3660 = vmatpush3.bf16.msra.mxu1 %v4036_v17 }
 0xe59   :  { %2764 = vmatprep.subr.bf16.mxu0 %v4037_v18  ;;  %3661 = vmatprep.subr.bf16.mxu1 %v5268_v6 }
 0xe5c   :  { %2765 = vmatpush1.bf16.msra.mxu0 %v4038_v14  ;;  %3662 = vmatpush3.bf16.msra.mxu1 %v4039_v9 }
 0xe5d   :  { %2766 = vmatprep.subr.bf16.mxu0 %v4040_v10  ;;  %3663 = vmatprep.subr.bf16.mxu1 %v5268_v6 }
 0xe60   :  { %2767 = vmatpush1.bf16.msra.mxu0 %v4041_v12  ;;  %3664 = vmatpush3.bf16.msra.mxu1 %v4042_v36 }
 0xe61   :  { %2768 = vmatprep.subr.bf16.mxu0 %v4043_v19  ;;  %3665 = vmatprep.subr.bf16.mxu1 %v5268_v6 }
 0xe64   :  { %2769 = vmatpush1.bf16.msra.mxu0 %v4044_v0  ;;  %3666 = vmatpush3.bf16.msra.mxu1 %v4045_v53  ;;  %v5289_v53 = vld [vmem:[#allocation22_spill] sm:$0xff] }
 0xe65   :  { %2770 = vmatprep.subr.bf16.mxu0 %v4046_v23  ;;  %3667 = vmatprep.subr.bf16.mxu1 %v5268_v6  ;;  %v1756_v23 = vadd.f32 %v5289_v53, %v4922_v29 }
 0xe68   :  { %2771 = vmatpush1.bf16.msra.mxu0 %v4047_v37  ;;  %3668 = vmatpush3.bf16.msra.mxu1 %v4048_v44 }
 0xe69   :  { %2772 = vmatprep.subr.bf16.mxu0 %v4049_v51  ;;  %3669 = vmatprep.subr.bf16.mxu1 %v5268_v6 }
 0xe6c   :  { %2773 = vmatpush1.bf16.msra.mxu0 %v4050_v41  ;;  %3670 = vmatpush3.bf16.msra.mxu1 %v4051_v55 }
 0xe6d   :  { %3675 = vmatprep.subr.bf16.mxu0 %v5268_v6 }
 0xf0f   :  { %v2686_v46 = vpop.f32.mrf.mxu0  ;;  %v2727_v22 = vpop.f32.mrf.mxu1 }
 0xf10   :  { %v2736_v52 = vadd.f32 %v2686_v46, %v1750_v33  ;;  %v2750_v60 = vadd.f32 %v4928_v58, %v2727_v22  ;;  %v1820_v33 = vadd.f32 %v5290_v48, %v4933_v26 }
 0xf11   :  { %v2688_v21 = vpop.f32.mrf.mxu0  ;;  %v3653_v27 = vpop.f32.mrf.mxu1 }
 0xf12   :  { %v3117_v61 = vmul.f32 -1.442695, %v2736_v52  ;;  %v2743_v62 = vadd.f32 %v2688_v21, %v1752_v57 }
 0xf13   :  { %v2690_v28 = vpop.f32.mrf.mxu0  ;;  %v2730_v11 = vpop.f32.mrf.mxu1 }
 0xf14   :  { %3985 = vpow2.f32 %v3117_v61  ;;  %v3118_v31 = vmul.f32 -1.442695, %v2743_v62 }
 0xf15   :  { %v2691_v56 = vpop.f32.mrf.mxu0  ;;  %v3654_v42 = vpop.f32.mrf.mxu1 }
 0xf16   :  { %3987 = vpow2.f32 %v3118_v31 }
 0xf21   :  { %v3986_v63 = vpop.eup %3985 }
 0xf22   :  { %v2740_v2 = vadd.f32 1.0, %v3986_v63 }
 0xf23   :  { %v3988_v1 = vpop.eup %3987 }
 0xf24   :  { %3989 = vrcp.f32 %v2740_v2  ;;  %v2747_v8 = vadd.f32 1.0, %v3988_v1 }
 0xf31   :  { %v3990_v3 = vpop.eup %3989 }
 0xf32   :  { %v2751_v24 = vmul.f32 %v3990_v3, %v2750_v60 }
 0xf34   :  { %v2752_v43 = vadd.f32 %v2751_v24, %v1817_v25 }
 0xf36   :  { %3991 = vtanh.f32 %v2752_v43 }
 0xf37   :  { %3993 = vrcp.f32 %v2747_v8 }
 0xf43   :  { %v3992_v15 = vpop.eup %3991 }
 0xf44   :  { %v2754_v7 = vsub.f32 %v5171_v32, %v3992_v15  ;;  %v3994_v54 = vpop.eup %3993  ;;  %v3839_v32 = vld [vmem:[%s5249_s9 + $0x28] sm:$0xff]  }
 0xf46   :  { %v2755_v16 = vmul.f32 %v3994_v54, %v2754_v7 }
 0xf48   :  { %v2756_v5 = vadd.f32 %v3992_v15, %v2755_v16 }
 0xf4a   :  { %v2757_v49 = vpack.c.bf16 %v2756_v5, %v2756_v5 }
 0xf4c   :  { %2791 = vmatmul.mubr.bf16.vlgmr.msra.gmra.mxu0 %v2757_v49  ;;  %3672 = vmatmul.mubr.bf16.vlgmr.msra.gmra.mxu1 %v2757_v49 }
 0xf4d   :  { %3691 = vmatprep.mubr.msk.bf16.mxu0 %vm4146_vm0, %v5268_v6  ;;  %3676 = vmatpush3.bf16.msra.mxu0 %v3837_v47 }
 0xf4e   :  { %3677 = vmatprep.subr.bf16.mxu0 %v5268_v6 }
 0xf51   :  { %3678 = vmatpush3.bf16.msra.mxu0 %v3838_v50 }
 0xf52   :  { %3679 = vmatprep.subr.bf16.mxu0 %v5268_v6 }
 0xf55   :  { %3680 = vmatpush3.bf16.msra.mxu0 %v3839_v32 }
 0xf56   :  { %3681 = vmatprep.subr.bf16.mxu0 %v5268_v6 }
 0xf59   :  { %3682 = vmatpush3.bf16.msra.mxu0 %v3840_v45 }
 0xf5a   :  { %3683 = vmatprep.subr.bf16.mxu0 %v5268_v6 }
 0xf5d   :  { %3684 = vmatpush3.bf16.msra.mxu0 %v3841_v4 }
 0xf5e   :  { %3685 = vmatprep.subr.bf16.mxu0 %v5268_v6 }
 0xf61   :  { %3686 = vmatpush3.bf16.msra.mxu0 %v3842_v34 }
 0xf62   :  { %3687 = vmatprep.subr.bf16.mxu0 %v5268_v6 }
 0xf65   :  { %3688 = vmatpush3.bf16.msra.mxu0 %v3843_v59 }
 0xf66   :  { %3689 = vmatprep.subr.bf16.mxu0 %v5268_v6 }
 0xf69   :  { %3690 = vmatpush3.bf16.msra.mxu0 %v3844_v39 }
0x100c   :  { %v2792_v13 = vpop.f32.mrf.mxu0  ;;  %v2833_v17 = vpop.f32.mrf.mxu1 }
0x100d   :  { %v2842_v18 = vadd.f32 %v2792_v13, %v1754_v40  ;;  %v2856_v41 = vadd.f32 %v4928_v58, %v2833_v17  ;;  %v3121_v58 = vld [vmem:[%s5250_s10] ss:$0 sm:$0xff] }
0x100e   :  { %v2794_v14 = vpop.f32.mrf.mxu0  ;;  %v3673_v9 = vpop.f32.mrf.mxu1 }
0x100f   :  { %v3119_v10 = vmul.f32 -1.442695, %v2842_v18  ;;  %v2849_v37 = vadd.f32 %v2794_v14, %v1756_v23 }
0x1010   :  { %v2796_v12 = vpop.f32.mrf.mxu0  ;;  %v2836_v36 = vpop.f32.mrf.mxu1 }
0x1011   :  { %3995 = vpow2.f32 %v3119_v10  ;;  %v3120_v6 = vmul.f32 -1.442695, %v2849_v37 }
0x1012   :  { %v2797_v19 = vpop.f32.mrf.mxu0  ;;  %v3674_v0 = vpop.f32.mrf.mxu1 }
0x1013   :  { %3997 = vpow2.f32 %v3120_v6 }
0x101e   :  { %v3996_v44 = vpop.eup %3995 }
0x101f   :  { %v2846_v51 = vadd.f32 1.0, %v3996_v44 }
0x1020   :  { %v3998_v30 = vpop.eup %3997 }
0x1021   :  { %3999 = vrcp.f32 %v2846_v51  ;;  %v2853_v52 = vadd.f32 1.0, %v3998_v30 }
0x102e   :  { %v4000_v55 = vpop.eup %3999 }
0x102f   :  { %v2857_v46 = vmul.f32 %v4000_v55, %v2856_v41 }
0x1031   :  { %v2858_v22 = vadd.f32 %v2857_v46, %v1820_v33 }
0x1033   :  { %4001 = vtanh.f32 %v2858_v22 }
0x1034   :  { %4003 = vrcp.f32 %v2853_v52 }
0x1040   :  { %v4002_v21 = vpop.eup %4001 }
0x1041   :  { %v2860_v29 = vsub.f32 %v2756_v5, %v4002_v21  ;;  %v4004_v27 = vpop.eup %4003 }
0x1043   :  { %v2861_v61 = vmul.f32 %v4004_v27, %v2860_v29 }
0x1045   :  { %v2862_v28 = vadd.f32 %v4002_v21, %v2861_v61 }
0x1047   :  { %v2867_v11 = vpack.c.bf16 %v2862_v28, %v2862_v28 }
0x1049   :  { %3692 = vmatmul.mubr.bf16.vlgmr.msra.gmra.mxu0 %v2867_v11 }
0x1109   :  { %v2973_v56 = vpop.f32.mrf.mxu0 }
0x110a   :  { %v2974_v42 = vadd.f32 %v3121_v58, %v2973_v56 }
0x110b   :  { %v3693_v38 = vpop.f32.mrf.mxu0 }
0x110c   :  { %2979 = vst [vmem:[%s5251_s11] sm:$0xff] %v2974_v42 }
0x110d   :  { %v2976_v26 = vpop.f32.mrf.mxu0 }
0x110f   :  { %v3694_v57 = vpop.f32.mrf.mxu0 }
0x1110   :  { %2984 = vsyncpa [#allocation8], 1 }
0x1111   :  { %2985 = vsyncpa [#allocation10], 1 }
0x1112   :  { %2986 = vsyncpa [#allocation13], 1 }

</bundles_post_ra>
